<compile_context>
chip_gen: v7x
topology: tpu7x:2x2x1
jax: 0.10.0
libtpu: 0.0.40
codegen_flags: <defaults>
</compile_context>

<pallas_src>
import jax
import jax.numpy as jnp
from jax import lax
from jax.experimental import pallas as pl
from jax.experimental.pallas import tpu as pltpu

EPS = 1e-5  # nn.BatchNorm2d default


# --------------------------------- kernel -----------------------------------
def basic_block_kernel(x_ref, w1_ref, b1_ref, w2_ref, b2_ref, out_ref, pad_ref):
    """One image per grid step. All refs in VMEM.

    x_ref   : (1, H, W, Cp)    input tile (channels padded to Cp, lane-dense)
    w1_ref  : (9*Cp, Cp)       ConvBNLayer 3x3 weights, BN fused, im2col layout
    b1_ref  : (1, Cp)          fused bias
    w2_ref  : (9*Cp, Cp)       RepVgg 3x3 weights with 1x1 branch folded in
    b2_ref  : (1, Cp)          fused bias (3x3 + 1x1 branches)
    out_ref : (1, H, W, Cp)
    pad_ref : (H+2, W+2, Cp)   scratch: spatially padded activation
    """
    _, H, W, Cp = x_ref.shape
    Hp, Wp = H + 2, W + 2

    # Zero only the 1-pixel halo strips; the interior is fully overwritten.
    # (Re-done every grid step: the scratch persists across steps / cores.)
    zrow = jnp.zeros((1, Wp, Cp), jnp.float32)
    zcol = jnp.zeros((Hp, 1, Cp), jnp.float32)
    pad_ref[0:1, :, :] = zrow
    pad_ref[Hp - 1:Hp, :, :] = zrow
    pad_ref[:, 0:1, :] = zcol
    pad_ref[:, Wp - 1:Wp, :] = zcol

    def conv3x3(w_ref, b_ref):
        # im2col: single (H*W, 9*Cp) x (9*Cp, Cp) MXU matmul.
        taps = [pad_ref[kh:kh + H, kw:kw + W, :].reshape(H * W, Cp)
                for kh in range(3) for kw in range(3)]
        patch = jnp.concatenate(taps, axis=-1)                 # (H*W, 9*Cp)
        return jnp.dot(patch, w_ref[...],
                       preferred_element_type=jnp.float32) + b_ref[...]

    x = x_ref[0]                                               # (H, W, Cp)

    # --- stage 1: ConvBNLayer(3x3) + ReLU --------------------------------
    pad_ref[1:H + 1, 1:W + 1, :] = x
    y1 = jnp.maximum(conv3x3(w1_ref, b1_ref), 0.0)             # (H*W, Cp)

    # --- stage 2: RepVggBlock (1x1 branch folded into w2/b2) + ReLU ------
    pad_ref[1:H + 1, 1:W + 1, :] = y1.reshape(H, W, Cp)
    y2 = jnp.maximum(conv3x3(w2_ref, b2_ref), 0.0)             # (H*W, Cp)

    # --- shortcut ---------------------------------------------------------
    out_ref[0] = y2.reshape(H, W, Cp) + x


# ------------------------------ JAX wrapper ----------------------------------
def fuse_bn(w_oihw, gamma, beta, mean, var):
    """Fold inference-mode BatchNorm into conv weight/bias."""
    scale = gamma / jnp.sqrt(var + EPS)                        # (Cout,)
    w = w_oihw * scale[:, None, None, None]
    b = beta - mean * scale
    return w, b


def basic_block_forward(x_nchw, params):
    """x_nchw: (B, C, H, W) float32. Returns (B, C, H, W)."""
    x = jnp.transpose(x_nchw, (0, 2, 3, 1)).astype(jnp.float32)   # -> NHWC
    B, H, W, C = x.shape
    Cp = ((C + 127) // 128) * 128                                 # lane-dense channels
    x_p = jnp.pad(x, ((0, 0), (0, 0), (0, 0), (0, Cp - C)))

    # Fold BN into each conv.
    w1, b1 = fuse_bn(*params['conv1'])         # (C, C, 3, 3)
    w3, b3 = fuse_bn(*params['rep3x3'])        # (C, C, 3, 3)
    wk, bk = fuse_bn(*params['rep1x1'])        # (C, C, 1, 1)

    # RepVGG reparameterization: fold the 1x1 branch into the 3x3 center tap.
    w2 = w3 + jnp.pad(wk, ((0, 0), (0, 0), (1, 1), (1, 1)))
    b2 = b3 + bk

    def as_matmul_weight(w_oihw):
        # OIHW -> (kh, kw, Cin, Cout) -> channel-pad -> (9*Cp, Cp)
        w = jnp.transpose(w_oihw, (2, 3, 1, 0))
        w = jnp.pad(w, ((0, 0), (0, 0), (0, Cp - C), (0, Cp - C)))
        return w.reshape(9 * Cp, Cp)

    def as_bias(b):
        return jnp.pad(b, (0, Cp - C)).reshape(1, Cp)

    out = pl.pallas_call(
        basic_block_kernel,
        out_shape=jax.ShapeDtypeStruct((B, H, W, Cp), jnp.float32),
        grid_spec=pltpu.PrefetchScalarGridSpec(
            num_scalar_prefetch=0,
            grid=(B,),
            in_specs=[
                pl.BlockSpec((1, H, W, Cp), lambda b: (b, 0, 0, 0)),
                pl.BlockSpec((9 * Cp, Cp), lambda b: (0, 0)),
                pl.BlockSpec((1, Cp), lambda b: (0, 0)),
                pl.BlockSpec((9 * Cp, Cp), lambda b: (0, 0)),
                pl.BlockSpec((1, Cp), lambda b: (0, 0)),
            ],
            out_specs=pl.BlockSpec((1, H, W, Cp), lambda b: (b, 0, 0, 0)),
            scratch_shapes=[pltpu.VMEM((H + 2, W + 2, Cp), jnp.float32)],
        ),
        compiler_params=pltpu.CompilerParams(
            dimension_semantics=("parallel",),       # batch split across TCs (v7x)
            vmem_limit_bytes=32 * 1024 * 1024,
        ),
    )(x_p, as_matmul_weight(w1), as_bias(b1), as_matmul_weight(w2), as_bias(b2))

    return jnp.transpose(out[..., :C], (0, 3, 1, 2))              # -> NCHW


# ------------------------- pure-JAX reference (NCHW) -------------------------
def _conv_bn_ref(x, w, gamma, beta, mean, var, padding):
    y = lax.conv_general_dilated(
        x, w, window_strides=(1, 1), padding=[(padding, padding)] * 2,
        dimension_numbers=('NCHW', 'OIHW', 'NCHW'))
    inv = gamma / jnp.sqrt(var + EPS)
    return y * inv[None, :, None, None] + (beta - mean * inv)[None, :, None, None]


def basic_block_ref(x, params):
    y = jax.nn.relu(_conv_bn_ref(x, *params['conv1'], padding=1))
    a = _conv_bn_ref(y, *params['rep3x3'], padding=1)
    b = _conv_bn_ref(y, *params['rep1x1'], padding=0)
    y2 = jax.nn.relu(a + b)
    return x + y2


# ----------------------------------------------------------------------------
def make_params(key, ch):
    ks = jax.random.split(key, 15)

    def convbn(i, ksize):
        w = 0.1 * jax.random.normal(ks[i], (ch, ch, ksize, ksize), jnp.float32)
        gamma = jax.random.uniform(ks[i + 1], (ch,), jnp.float32, 0.5, 1.5)
        beta = 0.1 * jax.random.normal(ks[i + 2], (ch,), jnp.float32)
        mean = 0.1 * jax.random.normal(ks[i + 3], (ch,), jnp.float32)
        var = jax.random.uniform(ks[i + 4], (ch,), jnp.float32, 0.5, 1.5)
        return (w, gamma, beta, mean, var)

    return {
        'conv1': convbn(0, 3),    # ConvBNLayer 3x3, pad 1, relu
        'rep3x3': convbn(5, 3),   # RepVgg conv1: 3x3, pad 1
        'rep1x1': convbn(10, 1),  # RepVgg conv2: 1x1, pad 0
    }


if __name__ == "__main__":
    key = jax.random.PRNGKey(0)
    k_x, k_p = jax.random.split(key)

    B, C, H, W = 2, 32, 16, 16
    x = jax.random.normal(k_x, (B, C, H, W), jnp.float32)
    params = make_params(k_p, C)

    out = jax.block_until_ready(basic_block_forward(x, params))
    ref = jax.block_until_ready(basic_block_ref(x, params))

    assert out.shape == (B, C, H, W)
    assert jnp.allclose(out, ref, rtol=1e-4, atol=1e-4), \
        f"max abs err {jnp.max(jnp.abs(out - ref))}"
    print("KERNEL_OK")
</pallas_src>

<mosaic_0001>
module attributes {stable_mosaic.version = 11 : i64} {
  func.func @basic_block_kernel(%arg0: i32, %arg1: memref<1x16x16x128xf32, #tpu.memory_space<vmem>>, %arg2: memref<1152x128xf32, #tpu.memory_space<vmem>>, %arg3: memref<1x128xf32, #tpu.memory_space<vmem>>, %arg4: memref<1152x128xf32, #tpu.memory_space<vmem>>, %arg5: memref<1x128xf32, #tpu.memory_space<vmem>>, %arg6: memref<1x16x16x128xf32, #tpu.memory_space<vmem>>, %arg7: memref<18x18x128xf32, #tpu.memory_space<vmem>>) attributes {dimension_semantics = [#tpu.dimension_semantics<parallel>], iteration_bounds = array<i64: 2>, scalar_prefetch = 0 : i64, scratch_operands = 1 : i64, tpu.core_type = #tpu.core_type<tc>, window_params = [{transform_indices = @transform_0, window_bounds = array<i64: 1, 16, 16, 128>}, {pipeline_mode = #tpu.pipeline_mode<synchronous>, transform_indices = @transform_1, window_bounds = array<i64: 1152, 128>}, {pipeline_mode = #tpu.pipeline_mode<synchronous>, transform_indices = @transform_2, window_bounds = array<i64: 1, 128>}, {pipeline_mode = #tpu.pipeline_mode<synchronous>, transform_indices = @transform_3, window_bounds = array<i64: 1152, 128>}, {pipeline_mode = #tpu.pipeline_mode<synchronous>, transform_indices = @transform_4, window_bounds = array<i64: 1, 128>}, {transform_indices = @transform_5, window_bounds = array<i64: 1, 16, 16, 128>}]} {
    %cst = arith.constant 0.000000e+00 : f32
    %0 = vector.broadcast %cst : f32 to vector<1x18x128xf32>
    %cst_0 = arith.constant 0.000000e+00 : f32
    %1 = vector.broadcast %cst_0 : f32 to vector<18x1x128xf32>
    %c0 = arith.constant 0 : index
    %c0_1 = arith.constant 0 : index
    %c0_2 = arith.constant 0 : index
    %2 = vector.load %arg7[%c0, %c0_1, %c0_2] : memref<18x18x128xf32, #tpu.memory_space<vmem>>, vector<1x18x128xf32>
    tpu.vector_store %arg7[%c0, %c0_1, %c0_2], %0 {strides = array<i32>} : memref<18x18x128xf32, #tpu.memory_space<vmem>>, vector<1x18x128xf32>,
    %c17 = arith.constant 17 : index
    %c0_3 = arith.constant 0 : index
    %c0_4 = arith.constant 0 : index
    %3 = vector.load %arg7[%c17, %c0_3, %c0_4] : memref<18x18x128xf32, #tpu.memory_space<vmem>>, vector<1x18x128xf32>
    tpu.vector_store %arg7[%c17, %c0_3, %c0_4], %0 {strides = array<i32>} : memref<18x18x128xf32, #tpu.memory_space<vmem>>, vector<1x18x128xf32>,
    %c0_5 = arith.constant 0 : index
    %c0_6 = arith.constant 0 : index
    %c0_7 = arith.constant 0 : index
    %4 = vector.load %arg7[%c0_5, %c0_6, %c0_7] : memref<18x18x128xf32, #tpu.memory_space<vmem>>, vector<18x1x128xf32>
    tpu.vector_store %arg7[%c0_5, %c0_6, %c0_7], %1 {strides = array<i32>} : memref<18x18x128xf32, #tpu.memory_space<vmem>>, vector<18x1x128xf32>,
    %c0_8 = arith.constant 0 : index
    %c17_9 = arith.constant 17 : index
    %c0_10 = arith.constant 0 : index
    %5 = vector.load %arg7[%c0_8, %c17_9, %c0_10] : memref<18x18x128xf32, #tpu.memory_space<vmem>>, vector<18x1x128xf32>
    tpu.vector_store %arg7[%c0_8, %c17_9, %c0_10], %1 {strides = array<i32>} : memref<18x18x128xf32, #tpu.memory_space<vmem>>, vector<18x1x128xf32>,
    %c0_11 = arith.constant 0 : index
    %c0_12 = arith.constant 0 : index
    %c0_13 = arith.constant 0 : index
    %c0_14 = arith.constant 0 : index
    %6 = vector.load %arg1[%c0_11, %c0_12, %c0_13, %c0_14] : memref<1x16x16x128xf32, #tpu.memory_space<vmem>>, vector<1x16x16x128xf32>
    %7 = vector.shape_cast %6 : vector<1x16x16x128xf32> to vector<16x16x128xf32>
    %c1 = arith.constant 1 : index
    %c1_15 = arith.constant 1 : index
    %c0_16 = arith.constant 0 : index
    %8 = vector.load %arg7[%c1, %c1_15, %c0_16] : memref<18x18x128xf32, #tpu.memory_space<vmem>>, vector<16x16x128xf32>
    tpu.vector_store %arg7[%c1, %c1_15, %c0_16], %7 {strides = array<i32>} : memref<18x18x128xf32, #tpu.memory_space<vmem>>, vector<16x16x128xf32>,
    %c0_17 = arith.constant 0 : index
    %c0_18 = arith.constant 0 : index
    %c0_19 = arith.constant 0 : index
    %9 = vector.load %arg7[%c0_17, %c0_18, %c0_19] : memref<18x18x128xf32, #tpu.memory_space<vmem>>, vector<16x16x128xf32>
    %10 = vector.shape_cast %9 : vector<16x16x128xf32> to vector<256x128xf32>
    %c0_20 = arith.constant 0 : index
    %c1_21 = arith.constant 1 : index
    %c0_22 = arith.constant 0 : index
    %11 = vector.load %arg7[%c0_20, %c1_21, %c0_22] : memref<18x18x128xf32, #tpu.memory_space<vmem>>, vector<16x16x128xf32>
    %12 = vector.shape_cast %11 : vector<16x16x128xf32> to vector<256x128xf32>
    %c0_23 = arith.constant 0 : index
    %c2 = arith.constant 2 : index
    %c0_24 = arith.constant 0 : index
    %13 = vector.load %arg7[%c0_23, %c2, %c0_24] : memref<18x18x128xf32, #tpu.memory_space<vmem>>, vector<16x16x128xf32>
    %14 = vector.shape_cast %13 : vector<16x16x128xf32> to vector<256x128xf32>
    %c1_25 = arith.constant 1 : index
    %c0_26 = arith.constant 0 : index
    %c0_27 = arith.constant 0 : index
    %15 = vector.load %arg7[%c1_25, %c0_26, %c0_27] : memref<18x18x128xf32, #tpu.memory_space<vmem>>, vector<16x16x128xf32>
    %16 = vector.shape_cast %15 : vector<16x16x128xf32> to vector<256x128xf32>
    %c1_28 = arith.constant 1 : index
    %c1_29 = arith.constant 1 : index
    %c0_30 = arith.constant 0 : index
    %17 = vector.load %arg7[%c1_28, %c1_29, %c0_30] : memref<18x18x128xf32, #tpu.memory_space<vmem>>, vector<16x16x128xf32>
    %18 = vector.shape_cast %17 : vector<16x16x128xf32> to vector<256x128xf32>
    %c1_31 = arith.constant 1 : index
    %c2_32 = arith.constant 2 : index
    %c0_33 = arith.constant 0 : index
    %19 = vector.load %arg7[%c1_31, %c2_32, %c0_33] : memref<18x18x128xf32, #tpu.memory_space<vmem>>, vector<16x16x128xf32>
    %20 = vector.shape_cast %19 : vector<16x16x128xf32> to vector<256x128xf32>
    %c2_34 = arith.constant 2 : index
    %c0_35 = arith.constant 0 : index
    %c0_36 = arith.constant 0 : index
    %21 = vector.load %arg7[%c2_34, %c0_35, %c0_36] : memref<18x18x128xf32, #tpu.memory_space<vmem>>, vector<16x16x128xf32>
    %22 = vector.shape_cast %21 : vector<16x16x128xf32> to vector<256x128xf32>
    %c2_37 = arith.constant 2 : index
    %c1_38 = arith.constant 1 : index
    %c0_39 = arith.constant 0 : index
    %23 = vector.load %arg7[%c2_37, %c1_38, %c0_39] : memref<18x18x128xf32, #tpu.memory_space<vmem>>, vector<16x16x128xf32>
    %24 = vector.shape_cast %23 : vector<16x16x128xf32> to vector<256x128xf32>
    %c2_40 = arith.constant 2 : index
    %c2_41 = arith.constant 2 : index
    %c0_42 = arith.constant 0 : index
    %25 = vector.load %arg7[%c2_40, %c2_41, %c0_42] : memref<18x18x128xf32, #tpu.memory_space<vmem>>, vector<16x16x128xf32>
    %26 = vector.shape_cast %25 : vector<16x16x128xf32> to vector<256x128xf32>
    %27 = tpu.concatenate %10, %12, %14, %16, %18, %20, %22, %24, %26 in 1 : vector<256x128xf32>, vector<256x128xf32>, vector<256x128xf32>, vector<256x128xf32>, vector<256x128xf32>, vector<256x128xf32>, vector<256x128xf32>, vector<256x128xf32>, vector<256x128xf32> -> vector<256x1152xf32>
    %c0_43 = arith.constant 0 : index
    %c0_44 = arith.constant 0 : index
    %28 = vector.load %arg2[%c0_43, %c0_44] : memref<1152x128xf32, #tpu.memory_space<vmem>>, vector<1152x128xf32>
    %cst_45 = arith.constant dense<0.000000e+00> : vector<256x128xf32>
    %29 = tpu.matmul %27, %28, %cst_45 {dimension_numbers = #tpu.dot_dimension_numbers<[1], [0], [0], [1], [0, 0, 1, 1], [], []>} : vector<256x1152xf32>, vector<1152x128xf32>, vector<256x128xf32> -> vector<256x128xf32>
    %c0_46 = arith.constant 0 : index
    %c0_47 = arith.constant 0 : index
    %30 = vector.load %arg3[%c0_46, %c0_47] : memref<1x128xf32, #tpu.memory_space<vmem>>, vector<1x128xf32>
    %31 = vector.broadcast %30 : vector<1x128xf32> to vector<256x128xf32>
    %32 = arith.addf %29, %31 : vector<256x128xf32>
    %cst_48 = arith.constant 0.000000e+00 : f32
    %33 = vector.broadcast %cst_48 : f32 to vector<256x128xf32>
    %34 = arith.maximumf %32, %33 : vector<256x128xf32>
    %35 = vector.shape_cast %34 : vector<256x128xf32> to vector<16x16x128xf32>
    %c1_49 = arith.constant 1 : index
    %c1_50 = arith.constant 1 : index
    %c0_51 = arith.constant 0 : index
    %36 = vector.load %arg7[%c1_49, %c1_50, %c0_51] : memref<18x18x128xf32, #tpu.memory_space<vmem>>, vector<16x16x128xf32>
    tpu.vector_store %arg7[%c1_49, %c1_50, %c0_51], %35 {strides = array<i32>} : memref<18x18x128xf32, #tpu.memory_space<vmem>>, vector<16x16x128xf32>,
    %c0_52 = arith.constant 0 : index
    %c0_53 = arith.constant 0 : index
    %c0_54 = arith.constant 0 : index
    %37 = vector.load %arg7[%c0_52, %c0_53, %c0_54] : memref<18x18x128xf32, #tpu.memory_space<vmem>>, vector<16x16x128xf32>
    %38 = vector.shape_cast %37 : vector<16x16x128xf32> to vector<256x128xf32>
    %c0_55 = arith.constant 0 : index
    %c1_56 = arith.constant 1 : index
    %c0_57 = arith.constant 0 : index
    %39 = vector.load %arg7[%c0_55, %c1_56, %c0_57] : memref<18x18x128xf32, #tpu.memory_space<vmem>>, vector<16x16x128xf32>
    %40 = vector.shape_cast %39 : vector<16x16x128xf32> to vector<256x128xf32>
    %c0_58 = arith.constant 0 : index
    %c2_59 = arith.constant 2 : index
    %c0_60 = arith.constant 0 : index
    %41 = vector.load %arg7[%c0_58, %c2_59, %c0_60] : memref<18x18x128xf32, #tpu.memory_space<vmem>>, vector<16x16x128xf32>
    %42 = vector.shape_cast %41 : vector<16x16x128xf32> to vector<256x128xf32>
    %c1_61 = arith.constant 1 : index
    %c0_62 = arith.constant 0 : index
    %c0_63 = arith.constant 0 : index
    %43 = vector.load %arg7[%c1_61, %c0_62, %c0_63] : memref<18x18x128xf32, #tpu.memory_space<vmem>>, vector<16x16x128xf32>
    %44 = vector.shape_cast %43 : vector<16x16x128xf32> to vector<256x128xf32>
    %c1_64 = arith.constant 1 : index
    %c1_65 = arith.constant 1 : index
    %c0_66 = arith.constant 0 : index
    %45 = vector.load %arg7[%c1_64, %c1_65, %c0_66] : memref<18x18x128xf32, #tpu.memory_space<vmem>>, vector<16x16x128xf32>
    %46 = vector.shape_cast %45 : vector<16x16x128xf32> to vector<256x128xf32>
    %c1_67 = arith.constant 1 : index
    %c2_68 = arith.constant 2 : index
    %c0_69 = arith.constant 0 : index
    %47 = vector.load %arg7[%c1_67, %c2_68, %c0_69] : memref<18x18x128xf32, #tpu.memory_space<vmem>>, vector<16x16x128xf32>
    %48 = vector.shape_cast %47 : vector<16x16x128xf32> to vector<256x128xf32>
    %c2_70 = arith.constant 2 : index
    %c0_71 = arith.constant 0 : index
    %c0_72 = arith.constant 0 : index
    %49 = vector.load %arg7[%c2_70, %c0_71, %c0_72] : memref<18x18x128xf32, #tpu.memory_space<vmem>>, vector<16x16x128xf32>
    %50 = vector.shape_cast %49 : vector<16x16x128xf32> to vector<256x128xf32>
    %c2_73 = arith.constant 2 : index
    %c1_74 = arith.constant 1 : index
    %c0_75 = arith.constant 0 : index
    %51 = vector.load %arg7[%c2_73, %c1_74, %c0_75] : memref<18x18x128xf32, #tpu.memory_space<vmem>>, vector<16x16x128xf32>
    %52 = vector.shape_cast %51 : vector<16x16x128xf32> to vector<256x128xf32>
    %c2_76 = arith.constant 2 : index
    %c2_77 = arith.constant 2 : index
    %c0_78 = arith.constant 0 : index
    %53 = vector.load %arg7[%c2_76, %c2_77, %c0_78] : memref<18x18x128xf32, #tpu.memory_space<vmem>>, vector<16x16x128xf32>
    %54 = vector.shape_cast %53 : vector<16x16x128xf32> to vector<256x128xf32>
    %55 = tpu.concatenate %38, %40, %42, %44, %46, %48, %50, %52, %54 in 1 : vector<256x128xf32>, vector<256x128xf32>, vector<256x128xf32>, vector<256x128xf32>, vector<256x128xf32>, vector<256x128xf32>, vector<256x128xf32>, vector<256x128xf32>, vector<256x128xf32> -> vector<256x1152xf32>
    %c0_79 = arith.constant 0 : index
    %c0_80 = arith.constant 0 : index
    %56 = vector.load %arg4[%c0_79, %c0_80] : memref<1152x128xf32, #tpu.memory_space<vmem>>, vector<1152x128xf32>
    %cst_81 = arith.constant dense<0.000000e+00> : vector<256x128xf32>
    %57 = tpu.matmul %55, %56, %cst_81 {dimension_numbers = #tpu.dot_dimension_numbers<[1], [0], [0], [1], [0, 0, 1, 1], [], []>} : vector<256x1152xf32>, vector<1152x128xf32>, vector<256x128xf32> -> vector<256x128xf32>
    %c0_82 = arith.constant 0 : index
    %c0_83 = arith.constant 0 : index
    %58 = vector.load %arg5[%c0_82, %c0_83] : memref<1x128xf32, #tpu.memory_space<vmem>>, vector<1x128xf32>
    %59 = vector.broadcast %58 : vector<1x128xf32> to vector<256x128xf32>
    %60 = arith.addf %57, %59 : vector<256x128xf32>
    %cst_84 = arith.constant 0.000000e+00 : f32
    %61 = vector.broadcast %cst_84 : f32 to vector<256x128xf32>
    %62 = arith.maximumf %60, %61 : vector<256x128xf32>
    %63 = vector.shape_cast %62 : vector<256x128xf32> to vector<16x16x128xf32>
    %64 = arith.addf %63, %7 : vector<16x16x128xf32>
    %c0_85 = arith.constant 0 : index
    %c0_86 = arith.constant 0 : index
    %c0_87 = arith.constant 0 : index
    %c0_88 = arith.constant 0 : index
    %65 = vector.load %arg6[%c0_85, %c0_86, %c0_87, %c0_88] : memref<1x16x16x128xf32, #tpu.memory_space<vmem>>, vector<1x16x16x128xf32>
    %66 = vector.shape_cast %65 : vector<1x16x16x128xf32> to vector<16x16x128xf32>
    %67 = vector.shape_cast %64 : vector<16x16x128xf32> to vector<1x16x16x128xf32>
    tpu.vector_store %arg6[%c0_85, %c0_86, %c0_87, %c0_88], %67 {strides = array<i32>} : memref<1x16x16x128xf32, #tpu.memory_space<vmem>>, vector<1x16x16x128xf32>,
    return
  }
  func.func @transform_0(%arg0: i32) -> (i32, i32, i32, i32) {
    %c0_i32 = arith.constant 0 : i32
    %c0_i32_0 = arith.constant 0 : i32
    %c0_i32_1 = arith.constant 0 : i32
    %c0_i32_2 = arith.constant 0 : i32
    return %arg0, %c0_i32, %c0_i32_0, %c0_i32_1 : i32, i32, i32, i32
  }
  func.func @transform_1(%arg0: i32) -> (i32, i32) {
    %c0_i32 = arith.constant 0 : i32
    %c0_i32_0 = arith.constant 0 : i32
    %c0_i32_1 = arith.constant 0 : i32
    return %c0_i32, %c0_i32_0 : i32, i32
  }
  func.func @transform_2(%arg0: i32) -> (i32, i32) {
    %c0_i32 = arith.constant 0 : i32
    %c0_i32_0 = arith.constant 0 : i32
    %c0_i32_1 = arith.constant 0 : i32
    return %c0_i32, %c0_i32_0 : i32, i32
  }
  func.func @transform_3(%arg0: i32) -> (i32, i32) {
    %c0_i32 = arith.constant 0 : i32
    %c0_i32_0 = arith.constant 0 : i32
    %c0_i32_1 = arith.constant 0 : i32
    return %c0_i32, %c0_i32_0 : i32, i32
  }
  func.func @transform_4(%arg0: i32) -> (i32, i32) {
    %c0_i32 = arith.constant 0 : i32
    %c0_i32_0 = arith.constant 0 : i32
    %c0_i32_1 = arith.constant 0 : i32
    return %c0_i32, %c0_i32_0 : i32, i32
  }
  func.func @transform_5(%arg0: i32) -> (i32, i32, i32, i32) {
    %c0_i32 = arith.constant 0 : i32
    %c0_i32_0 = arith.constant 0 : i32
    %c0_i32_1 = arith.constant 0 : i32
    %c0_i32_2 = arith.constant 0 : i32
    return %arg0, %c0_i32, %c0_i32_0, %c0_i32_1 : i32, i32, i32, i32
  }
}

</mosaic_0001>

<bundles_post_ra>
// kernel: tpu_custom_call.1
= control target key start
LH: loop header
LB: loop body
LE: loop exit
PB: predicated region body
PF: predicated region fallthrough
CT: control target
= control target key end

     0   :  { %10 = vsyncpa [#allocation4], 0  ;;  %s6985_s0 = inlined_call_operand.hbm [shape: f32[2,16,16,128], index: 0, kind: input, shape index: {}]   ;;  %s6986_s1 = inlined_call_operand.hbm [shape: f32[1152,128], index: 1, kind: input, shape index: {}]   ;;  %s6987_s2 = inlined_call_operand.vmem [shape: f32[1,128], index: 2, kind: input, shape index: {}]   ;;  %s6988_s3 = inlined_call_operand.hbm [shape: f32[1152,128], index: 3, kind: input, shape index: {}]   ;;  %s6989_s4 = inlined_call_operand.vmem [shape: f32[1,128], index: 4, kind: input, shape index: {}]   ;;  %s6990_s5 = inlined_call_operand.hbm [shape: f32[2,16,16,128], index: 5, kind: output, shape index: {}]  }
   0x1   :  { %12 = vsyncpa [#allocation4 + $0x1], 0 }
   0x2   :  { %13 = vsyncpa [#allocation7], 0 }
   0x3   :  { %14 = vsyncpa [#allocation5], 0 }
   0x4   :  { %16 = vsyncpa [#allocation5 + $0x1], 0  ;;  %s5270_s18 = smov 0   ;;  %s5272_s19 = smov 0  }
   0x5   :  { %s5274_s20 = smov 0   ;;  %s5276_s21 = smov 0  }
   0x6 LB: > { %s5291_s22 = sadd.s32 4294967295, %s5228_s21   ;;  %s3775_s23 = sadd.s32 4294967294, %s5228_s21   ;;  %s5228_s21 = sphi %s5276_s21, %s7177_s21   ;;  %s5224_s20 = sphi %s5274_s20, %s7176_s20   ;;  %s5220_s19 = sphi %s5272_s19, %s7175_s19   ;;  %s5216_s18 = sphi %s5270_s18, %s7174_s18  }
   0x7   : > { %p42_p0 = scmp.ne.s32.totalorder %s5220_s19, %s5216_s18  ;;  %p6991_p1 = scmp.eq.s32.totalorder %s5291_s22, 0 }
   0x8   : > { %p156_p3 = scmp.eq.s32.totalorder %s3775_s23, 1  ;;  %p3776_p5 = scmp.ge.s32.totalorder %s5228_s21, 1 }
   0x9   : > { %p5300_p4 = por %p6991_p1, %p42_p0  ;;  %p163_p7 = scmp.lt.s32.totalorder %s5228_s21, 3 }
   0xa   : > { %p5305_p6 = por %p156_p3, %p42_p0  ;;  %s5230_s27 = smov [#allocation6]  }
   0xb   : > { %s7058_s24 = scalar_select %p5300_p4, 1, 0 }
   0xc   : > { %s7059_s25 = scalar_select %p5305_p6, 1, 0 }
   0xd   : > { %p5310_p8 = pnand %p3776_p5, %p163_p7  ;;  %s175_s28 = sshll.u32 %s5230_s27, 4  ;;  %s5314_s28 = int_to_ptr.vmem [resolvable:$true] %s175_s28 }
   0xe   : > { %s5231_s30 = smov [#allocation8]   ;;  %s5072_s9 = scalar_lea.hbm %s6986_s1, 18432 }
   0xf   : > { %p4977_p9 = pneg %p5310_p8  ;;  %s191_s6 = sshll.u32 %s5231_s30, 4  ;;  %s5325_s6 = int_to_ptr.vmem [resolvable:$true] %s191_s6 }
  0x10   : > { %p5073_p12 = scmp.ne.s32.totalorder %s6986_s1, %s5072_s9  ;;  %p5079_p5 = scmp.lt.u32.totalorder %s5072_s9, %s6986_s1 }
  0x11   : > { %p5321_p11 = pnand %p4977_p9, %p6991_p1 }
  0x13   : > { %p5074_p13 = pneg %p5321_p11 }
  0x15   : > { %p5075_p0 = pnand %p5074_p13, %p5073_p12 }
  0x17   : > { %p5076_p3 = pneg %p5075_p0 }
  0x19   : > { %p5081_p7 = pnand %p5079_p5, %p5076_p3 }
  0x1b   : > { %5084 = shalt.err (!%p5081_p7)
}
  0x1c   : > { %s5085_s14 = scalar_lea.vmem %s5314_s28, 18432  ;;  %p5093_p2 = scmp.lt.s32.totalorder %s5314_s28, %s5314_s28 }
  0x1d   : > { %p5086_p9 = scmp.ne.s32.totalorder %s5314_s28, %s5085_s14  ;;  %p5094_p12 = scmp.lt.s32.totalorder %s5085_s14, %s5085_s14 }
  0x1f   : > { %p5088_p10 = pnand %p5086_p9, %p5074_p13  ;;  %p5095_p0 = por %p5094_p12, %p5093_p2 }
  0x21   : > { %p5089_p1 = pneg %p5088_p10 }
  0x23   : > { %p5096_p6 = pnand %p5095_p0, %p5089_p1 }
  0x25   : > { %5099 = shalt.err (!%p5096_p6)
}
  0x26   : > { %s5232_s15 = smov 128   ;;  %s5233_s16 = smov 8  }
  0x27   : > { %4980 = dma.hbm_to_vmem [thread:$0]  (!%p5321_p11), %s6986_s1, 18432, %s5314_s28, [#allocation7], %s5232_s15, %s5232_s15, %s5233_s16  }
  0x28   : > { %s5100_s7 = scalar_lea.hbm %s6988_s3, 18432 }
  0x29   : > { %p5101_p1 = scmp.ne.s32.totalorder %s6988_s3, %s5100_s7  ;;  %p5107_p10 = scmp.lt.u32.totalorder %s5100_s7, %s6988_s3 }
  0x2b   : > { %p5103_p2 = pnand %p5101_p1, %p5074_p13 }
  0x2d   : > { %p5104_p6 = pneg %p5103_p2 }
  0x2f   : > { %p5109_p3 = pnand %p5107_p10, %p5104_p6 }
  0x31   : > { %5112 = shalt.err (!%p5109_p3)
}
  0x32   : > { %s5113_s28 = scalar_lea.vmem %s5325_s6, 18432  ;;  %p5121_p12 = scmp.lt.s32.totalorder %s5325_s6, %s5325_s6 }
  0x33   : > { %p5114_p5 = scmp.ne.s32.totalorder %s5325_s6, %s5113_s28  ;;  %p5122_p0 = scmp.lt.s32.totalorder %s5113_s28, %s5113_s28 }
  0x35   : > { %p5116_p7 = pnand %p5114_p5, %p5074_p13  ;;  %p5123_p1 = por %p5122_p0, %p5121_p12 }
  0x37   : > { %p5117_p9 = pneg %p5116_p7 }
  0x39   : > { %p5124_p2 = pnand %p5123_p1, %p5117_p9 }
  0x3b   : > { %5127 = shalt.err (!%p5124_p2)
}
  0x3c   : > { %4983 = dma.hbm_to_vmem [thread:$0]  (!%p5321_p11), %s6988_s3, 18432, %s5325_s6, [#allocation7], %s5232_s15, %s5232_s15, %s5233_s16  }
  0x3d   : > { %s5386_s29 = sadd.s32 1, %s5228_s21   ;;  %s29_s14 = sadd.s32 1, %s5224_s20 }
  0x3e   : > { %s26_s17 = ssub.s32 %s5228_s21, %s5386_s29  ;;  %p36_p13 = scmp.ne.s32.totalorder %s5224_s20, %s5220_s19 }
  0x3f   : > { %p27_p6 = scmp.eq.s32.totalorder %s26_s17, 0  ;;  %p37_p10 = scmp.eq.s32.totalorder %s5228_s21, 0 }
  0x40   : > { %p7062_p3 = scmp.eq.s32.totalorder %s5291_s22, 1  ;;  %p4994_p7 = scmp.lt.s32.totalorder %s5228_s21, 2 }
  0x41   : > { %s5402_s27 = scalar_select %p27_p6, %s5224_s20, %s29_s14  }
  0x42   : > { %p5396_p5 = por %p7062_p3, %p36_p13  ;;  %p38_p9 = por %p37_p10, %p36_p13 }
  0x43   : > { %s208_s30 = sand.u32 1, %s5224_s20   ;;  %s3795_s6 = sshll.u32 %s5228_s21, 12 }
  0x44   : > { %s7063_s23 = scalar_select %p5396_p5, 1, 0 }
  0x45   : > { %s3780_s7 = sshll.u32 %s208_s30, 8  ;;  %s5409_s10 = scalar_lea.hbm %s6985_s0, %s3795_s6 }
  0x46   : > { %s212_s11 = scalar_lea.vmem [#allocation3], %s3780_s7  ;;  %p5413_p11 = pnand %p4994_p7, %p38_p9 }
  0x47   : > { %s219_s28 = sshll.u32 %s212_s11, 4  ;;  %s5417_s13 = scalar_lea.sflag [#allocation4], %s208_s30  ;;  %s5411_s28 = int_to_ptr.vmem [resolvable:$true] %s219_s28 }
  0x48   : > { %s5128_s14 = scalar_lea.hbm %s5409_s10, 4096  ;;  %p5130_p0 = pneg %p5413_p11 }
  0x49   : > { %p5129_p12 = scmp.ne.s32.totalorder %s5409_s10, %s5128_s14  ;;  %s5133_s6 = scalar_lea.hbm %s6985_s0, 8192 }
  0x4a   : > { %p5134_p13 = scmp.lt.u32.totalorder %s5409_s10, %s6985_s0  ;;  %p5135_p6 = scmp.lt.u32.totalorder %s5133_s6, %s5128_s14 }
  0x4b   : > { %p5131_p1 = pnand %p5130_p0, %p5129_p12  ;;  %p5137_p3 = scmp.lt.u32.totalorder %s5128_s14, %s5409_s10 }
  0x4c   : > { %p5136_p10 = por %p5135_p6, %p5134_p13 }
  0x4d   : > { %p5132_p2 = pneg %p5131_p1 }
  0x4e   : > { %p5138_p7 = por %p5137_p3, %p5136_p10 }
  0x50   : > { %p5139_p9 = pnand %p5138_p7, %p5132_p2 }
  0x52   : > { %5142 = shalt.err (!%p5139_p9)
}
  0x53   : > { %s5143_s30 = scalar_lea.vmem %s5411_s28, 4096  ;;  %s5234_s11 = smov [#allocation3]  }
  0x54   : > { %p5144_p12 = scmp.ne.s32.totalorder %s5411_s28, %s5143_s30  ;;  %s5148_s17 = sshll.u32 %s5234_s11, 4  ;;  %s5149_s17 = int_to_ptr.vmem [resolvable:$false] %s5148_s17 }
  0x55   : > { %s5150_s7 = scalar_lea.vmem %s5149_s17, 8192  ;;  %p5151_p4 = scmp.lt.s32.totalorder %s5411_s28, %s5149_s17 }
  0x56   : > { %p5146_p1 = pnand %p5144_p12, %p5130_p0  ;;  %p5152_p13 = scmp.lt.s32.totalorder %s5150_s7, %s5143_s30 }
  0x58   : > { %p5147_p5 = pneg %p5146_p1  ;;  %p5153_p6 = por %p5152_p13, %p5151_p4 }
  0x5a   : > { %p5154_p10 = pnand %p5153_p6, %p5147_p5 }
  0x5c   : > { %5157 = shalt.err (!%p5154_p10)
}
  0x5d   : > { %4987 = dma.hbm_to_vmem [thread:$0]  (!%p5413_p11), %s5409_s10, 4096, %s5411_s28, %s5417_s13, %s5232_s15, %s5232_s15, %s5233_s16  }
  0x5e   : > { %231 = sbr.rel (%p5310_p8) target bundleno = 1535 (0x5ff), region = 40 }
  0x65   : > { %s5451_s14 = sand.u32 1, %s5220_s19   ;;  %p7065_p4 = scmp.ne.s32.totalorder %s7058_s24, 0 }
  0x66   : > { %s3784_s6 = sshll.u32 %s5451_s14, 8  ;;  %s234_s8 = scalar_lea.sflag [#allocation4], %s5451_s14 }
  0x67   : > { %s5457_s12 = scalar_lea.vmem [#allocation3], %s3784_s6 }
  0x68   : > { %5203 = dma.done.wait (%p7065_p4), %s234_s8, 4096  }
  0x69   : > { %5205 = vsyncadd (%p7065_p4), %s234_s8, 4294963200  ;;  %p7066_p5 = scmp.eq.s32.totalorder %s5291_s22, 0 }
  0x6b   : > { %5207 = dma.done.wait (%p7066_p5), [#allocation7], 36864   ;;  %p7067_p8 = pmov %p7066_p5 }
  0x6c   : > { %v7018_v0 = vmov 0.0|0.0   ;;  %v5236_v1 = vmov 0.0   ;;  %v669_v2 = vld [vmem:[#allocation6] sm:$0xff]  ;;  %v670_v3 = vld [vmem:[#allocation6 + $0x8] sm:$0xff]  ;;  %v671_v4 = vld [vmem:[#allocation6 + $0x10] sm:$0xff]  ;;  %s6817_s10 = scalar_lea.vmem [#allocation9], %s3784_s6 }
  0x6d   : > { %5209 = vsyncadd (%p7067_p8), [#allocation7], 4294930432  ;;  %4053 = vmatprep.subr.bf16.mxu0 %v7018_v0  ;;  %272 = vst [vmem:[#allocation2] sm:$0xff] %v5236_v1  ;;  %v4054_v5 = vpack.c.bf16 %v670_v3, %v669_v2  ;;  %v672_v6 = vld [vmem:[#allocation6 + $0x18] sm:$0xff]  ;;  %v673_v8 = vld [vmem:[#allocation6 + $0x20] sm:$0xff]  ;;  %s3796_s28 = sshll.u32 %s5291_s22, 12 }
  0x6e   : > { %273 = vst [vmem:[#allocation2 + $0x8] sm:$0xff] %v5236_v1  ;;  %274 = vst [vmem:[#allocation2 + $0x10] sm:$0x3] %v5236_v1  ;;  %v4057_v7 = vpack.c.bf16 %v672_v6, %v671_v4  ;;  %v674_v9 = vld [vmem:[#allocation6 + $0x28] sm:$0xff]  ;;  %v675_v11 = vld [vmem:[#allocation6 + $0x30] sm:$0xff]  ;;  %s3683_s13 = sshll.u32 %s6817_s10, 4  ;;  %s6936_s11 = scalar_lea.hbm %s6990_s5, %s3796_s28  ;;  %s6938_s13 = int_to_ptr.vmem [resolvable:$true] %s3683_s13 }
  0x6f   : > { %276 = vst [vmem:[#allocation2 + $0x198] sm:$0xff] %v5236_v1  ;;  %277 = vst [vmem:[#allocation2 + $0x1a0] sm:$0xff] %v5236_v1  ;;  %4055 = vmatpush1.bf16.msra.mxu0 %v4054_v5  ;;  %v4060_v10 = vpack.c.bf16 %v674_v9, %v673_v8  ;;  %v676_v12 = vld [vmem:[#allocation6 + $0x38] sm:$0xff]  ;;  %v677_v15 = vld [vmem:[#allocation6 + $0x40] sm:$0xff]  ;;  %s3670_s22 = scalar_lea.sflag [#allocation5], %s5451_s14  ;;  %s5158_s17 = scalar_lea.vmem %s6938_s13, 4096 }
  0x70   : > { %278 = vst [vmem:[#allocation2 + $0x1a8] sm:$0x3] %v5236_v1  ;;  %280 = vst [vmem:[#allocation2 + $0x18] sm:$0x1] %v5236_v1  ;;  %4056 = vmatprep.subr.bf16.mxu0 %v7018_v0  ;;  %v4063_v14 = vpack.c.bf16 %v676_v12, %v675_v11  ;;  %v678_v16 = vld [vmem:[#allocation6 + $0x48] sm:$0xff]  ;;  %v5514_v17 = vld [vmem:[%s5457_s12] sm:$0xff]  ;;  %p5159_p11 = scmp.ne.s32.totalorder %s6938_s13, %s5158_s17 }
  0x71   : > { %281 = vst [vmem:[#allocation2 + $0x30] sm:$0x1] %v5236_v1  ;;  %282 = vst [vmem:[#allocation2 + $0x48] sm:$0x1] %v5236_v1  ;;  %v5518_v18 = vld [vmem:[%s5457_s12 + $0x8] sm:$0xff]  ;;  %v5521_v19 = vld [vmem:[%s5457_s12 + $0x10] sm:$0xff]  ;;  %v4066_v21 = vpack.c.bf16 %v678_v16, %v677_v15 }
  0x72   : > { %283 = vst [vmem:[#allocation2 + $0x60] sm:$0x1] %v5236_v1  ;;  %284 = vst [vmem:[#allocation2 + $0x78] sm:$0x1] %v5236_v1  ;;  %v5526_v20 = vld [vmem:[%s5457_s12 + $0x18] sm:$0xff]  ;;  %v679_v22 = vld [vmem:[#allocation6 + $0x50] sm:$0xff] }
  0x73   : > { %285 = vst [vmem:[#allocation2 + $0x90] sm:$0x1] %v5236_v1  ;;  %286 = vst [vmem:[#allocation2 + $0xa8] sm:$0x1] %v5236_v1  ;;  %4058 = vmatpush1.bf16.msra.mxu0 %v4057_v7  ;;  %v5530_v23 = vld [vmem:[%s5457_s12 + $0x20] sm:$0xff]  ;;  %v680_v24 = vld [vmem:[#allocation6 + $0x58] sm:$0xff] }
  0x74   : > { %287 = vst [vmem:[#allocation2 + $0xc0] sm:$0x1] %v5236_v1  ;;  %288 = vst [vmem:[#allocation2 + $0xd8] sm:$0x1] %v5236_v1  ;;  %4059 = vmatprep.subr.bf16.mxu0 %v7018_v0  ;;  %v5535_v25 = vld [vmem:[%s5457_s12 + $0x28] sm:$0xff]  ;;  %v5538_v26 = vld [vmem:[%s5457_s12 + $0x30] sm:$0xff]  ;;  %v4069_v30 = vpack.c.bf16 %v680_v24, %v679_v22 }
  0x75   : > { %289 = vst [vmem:[#allocation2 + $0xf0] sm:$0x1] %v5236_v1  ;;  %290 = vst [vmem:[#allocation2 + $0x108] sm:$0x1] %v5236_v1  ;;  %v412_v13 = vld [vmem:[#allocation2 + $0x1] sm:$0xff]  ;;  %v5546_v28 = vld [vmem:[%s5457_s12 + $0x40] sm:$0xff] }
  0x76   : > { %291 = vst [vmem:[#allocation2 + $0x120] sm:$0x1] %v5236_v1  ;;  %292 = vst [vmem:[#allocation2 + $0x138] sm:$0x1] %v5236_v1  ;;  %884 = vmatprep.mubr.f32.mxu0 %v412_v13  ;;  %v5543_v27 = vld [vmem:[%s5457_s12 + $0x38] sm:$0xff]  ;;  %v5551_v29 = vld [vmem:[%s5457_s12 + $0x48] sm:$0xff] }
  0x77   : > { %293 = vst [vmem:[#allocation2 + $0x150] sm:$0x1] %v5236_v1  ;;  %294 = vst [vmem:[#allocation2 + $0x168] sm:$0x1] %v5236_v1  ;;  %4061 = vmatpush1.bf16.msra.mxu0 %v4060_v10  ;;  %v681_v31 = vld [vmem:[#allocation6 + $0x60] sm:$0xff]  ;;  %v5555_v32 = vld [vmem:[%s5457_s12 + $0x50] sm:$0xff] }
  0x78   : > { %295 = vst [vmem:[#allocation2 + $0x180] sm:$0x1] %v5236_v1  ;;  %298 = vst [vmem:[#allocation2 + $0x29] sm:$0x1] %v5236_v1  ;;  %4062 = vmatprep.subr.bf16.mxu0 %v7018_v0  ;;  %v682_v33 = vld [vmem:[#allocation6 + $0x68] sm:$0xff]  ;;  %v5560_v34 = vld [vmem:[%s5457_s12 + $0x58] sm:$0xff] }
  0x79   : > { %299 = vst [vmem:[#allocation2 + $0x41] sm:$0x1] %v5236_v1  ;;  %300 = vst [vmem:[#allocation2 + $0x59] sm:$0x1] %v5236_v1  ;;  %v5563_v35 = vld [vmem:[%s5457_s12 + $0x60] sm:$0xff]  ;;  %v5568_v36 = vld [vmem:[%s5457_s12 + $0x68] sm:$0xff]  ;;  %v4072_v37 = vpack.c.bf16 %v682_v33, %v681_v31 }
  0x7a   : > { %301 = vst [vmem:[#allocation2 + $0x71] sm:$0x1] %v5236_v1  ;;  %302 = vst [vmem:[#allocation2 + $0x89] sm:$0x1] %v5236_v1  ;;  %v5572_v38 = vld [vmem:[%s5457_s12 + $0x70] sm:$0xff]  ;;  %v684_v40 = vld [vmem:[#allocation6 + $0x78] sm:$0xff] }
  0x7b   : > { %303 = vst [vmem:[#allocation2 + $0xa1] sm:$0x1] %v5236_v1  ;;  %304 = vst [vmem:[#allocation2 + $0xb9] sm:$0x1] %v5236_v1  ;;  %4064 = vmatpush1.bf16.msra.mxu0 %v4063_v14  ;;  %v683_v39 = vld [vmem:[#allocation6 + $0x70] sm:$0xff]  ;;  %v5577_v41 = vld [vmem:[%s5457_s12 + $0x78] sm:$0xff] }
  0x7c   : > { %305 = vst [vmem:[#allocation2 + $0xd1] sm:$0x1] %v5236_v1  ;;  %306 = vst [vmem:[#allocation2 + $0xe9] sm:$0x1] %v5236_v1  ;;  %4065 = vmatprep.subr.bf16.mxu0 %v7018_v0  ;;  %v5581_v42 = vld [vmem:[%s5457_s12 + $0x80] sm:$0xff]  ;;  %v4075_v43 = vpack.c.bf16 %v684_v40, %v683_v39  ;;  %v5585_v44 = vld [vmem:[%s5457_s12 + $0x88] sm:$0xff] }
  0x7d   : > { %307 = vst [vmem:[#allocation2 + $0x101] sm:$0x1] %v5236_v1  ;;  %308 = vst [vmem:[#allocation2 + $0x119] sm:$0x1] %v5236_v1  ;;  %v685_v45 = vld [vmem:[#allocation6 + $0x80] sm:$0xff]  ;;  %v686_v46 = vld [vmem:[#allocation6 + $0x88] sm:$0xff] }
  0x7e   : > { %309 = vst [vmem:[#allocation2 + $0x131] sm:$0x1] %v5236_v1  ;;  %310 = vst [vmem:[#allocation2 + $0x149] sm:$0x1] %v5236_v1  ;;  %v5590_v47 = vld [vmem:[%s5457_s12 + $0x90] sm:$0xff]  ;;  %v5594_v48 = vld [vmem:[%s5457_s12 + $0x98] sm:$0xff]  ;;  %v4078_v50 = vpack.c.bf16 %v686_v46, %v685_v45 }
  0x7f   : > { %311 = vst [vmem:[#allocation2 + $0x161] sm:$0x1] %v5236_v1  ;;  %312 = vst [vmem:[#allocation2 + $0x179] sm:$0x1] %v5236_v1  ;;  %4067 = vmatpush1.bf16.msra.mxu0 %v4066_v21  ;;  %v5598_v49 = vld [vmem:[%s5457_s12 + $0xa0] sm:$0xff]  ;;  %v687_v51 = vld [vmem:[#allocation6 + $0x90] sm:$0xff] }
  0x80   : > { %313 = vst [vmem:[#allocation2 + $0x191] sm:$0x1] %v5236_v1  ;;  %279 = vst [vmem:[#allocation2] sm:$0x1] %v5236_v1  ;;  %4068 = vmatprep.subr.bf16.mxu0 %v7018_v0  ;;  %v5602_v52 = vld [vmem:[%s5457_s12 + $0xa8] sm:$0xff]  ;;  %v688_v53 = vld [vmem:[#allocation6 + $0x98] sm:$0xff] }
  0x81   : > { %296 = vst [vmem:[#allocation2 + $0x198] sm:$0x1] %v5236_v1  ;;  %297 = vst [vmem:[#allocation2 + $0x11] sm:$0x1] %v5236_v1  ;;  %v5607_v54 = vld [vmem:[%s5457_s12 + $0xb0] sm:$0xff]  ;;  %v5610_v55 = vld [vmem:[%s5457_s12 + $0xb8] sm:$0xff]  ;;  %v4081_v57 = vpack.c.bf16 %v688_v53, %v687_v51 }
  0x82   : > { %314 = vst [vmem:[#allocation2 + $0x1a9] sm:$0x1] %v5236_v1  ;;  %348 = vst [vmem:[#allocation2 + $0x19] sm:$0xff] %v5514_v17  ;;  %v5615_v56 = vld [vmem:[%s5457_s12 + $0xc0] sm:$0xff]  ;;  %v690_v59 = vld [vmem:[#allocation6 + $0xa8] sm:$0xff]  ;;  %p7171_p0 = scmp.ne.s32.totalorder %s7063_s23, 0 }
  0x83   : > { %349 = vst [vmem:[#allocation2 + $0x21] sm:$0xff] %v5518_v18  ;;  %350 = vst [vmem:[#allocation2 + $0x31] sm:$0xff] %v5521_v19  ;;  %4070 = vmatpush1.bf16.msra.mxu0 %v4069_v30  ;;  %v689_v58 = vld [vmem:[#allocation6 + $0xa0] sm:$0xff]  ;;  %v5620_v60 = vld [vmem:[%s5457_s12 + $0xc8] sm:$0xff]  ;;  %s5237_s7 = smov [#allocation9]  }
  0x84   : > { %351 = vst [vmem:[#allocation2 + $0x39] sm:$0xff] %v5526_v20  ;;  %352 = vst [vmem:[#allocation2 + $0x49] sm:$0xff] %v5530_v23  ;;  %4071 = vmatprep.subr.bf16.mxu0 %v7018_v0  ;;  %v4084_v61 = vpack.c.bf16 %v690_v59, %v689_v58  ;;  %v691_v62 = vld [vmem:[#allocation6 + $0xb0] sm:$0xff]  ;;  %v692_v63 = vld [vmem:[#allocation6 + $0xb8] sm:$0xff]  ;;  %p5160_p2 = pnand %p5159_p11, %p7171_p0  ;;  %s5162_s6 = sshll.u32 %s5237_s7, 4  ;;  %s5163_s6 = int_to_ptr.vmem [resolvable:$false] %s5162_s6 }
  0x85   : > { %353 = vst [vmem:[#allocation2 + $0x51] sm:$0xff] %v5535_v25  ;;  %354 = vst [vmem:[#allocation2 + $0x61] sm:$0xff] %v5538_v26  ;;  %v5625_v2 = vld [vmem:[%s5457_s12 + $0xd0] sm:$0xff]  ;;  %v4087_v3 = vpack.c.bf16 %v692_v63, %v691_v62  ;;  %v693_v4 = vld [vmem:[#allocation6 + $0xc0] sm:$0xff]  ;;  %s5164_s8 = scalar_lea.vmem %s5163_s6, 8192  ;;  %p5165_p7 = scmp.lt.s32.totalorder %s6938_s13, %s5163_s6 }
  0x86   : > { %355 = vst [vmem:[#allocation2 + $0x69] sm:$0xff] %v5543_v27  ;;  %356 = vst [vmem:[#allocation2 + $0x79] sm:$0xff] %v5546_v28  ;;  %v694_v5 = vld [vmem:[#allocation6 + $0xc8] sm:$0xff]  ;;  %v5630_v6 = vld [vmem:[%s5457_s12 + $0xd8] sm:$0xff]  ;;  %p5161_p3 = pneg %p5160_p2  ;;  %p5166_p9 = scmp.lt.s32.totalorder %s5164_s8, %s5158_s17 }
  0x87   : > { %357 = vst [vmem:[#allocation2 + $0x81] sm:$0xff] %v5551_v29  ;;  %358 = vst [vmem:[#allocation2 + $0x91] sm:$0xff] %v5555_v32  ;;  %4073 = vmatpush1.bf16.msra.mxu0 %v4072_v37  ;;  %v4090_v7 = vpack.c.bf16 %v694_v5, %v693_v4  ;;  %v695_v8 = vld [vmem:[#allocation6 + $0xd0] sm:$0xff]  ;;  %v696_v9 = vld [vmem:[#allocation6 + $0xd8] sm:$0xff] }
  0x88   : > { %359 = vst [vmem:[#allocation2 + $0x99] sm:$0xff] %v5560_v34  ;;  %360 = vst [vmem:[#allocation2 + $0xa9] sm:$0xff] %v5563_v35  ;;  %4074 = vmatprep.subr.bf16.mxu0 %v7018_v0  ;;  %v5635_v10 = vld [vmem:[%s5457_s12 + $0xe0] sm:$0xff]  ;;  %v4093_v11 = vpack.c.bf16 %v696_v9, %v695_v8  ;;  %v698_v13 = vld [vmem:[#allocation6 + $0xe8] sm:$0xff]  ;;  %p5167_p12 = por %p5166_p9, %p5165_p7 }
  0x89   : > { %361 = vst [vmem:[#allocation2 + $0xb1] sm:$0xff] %v5568_v36  ;;  %362 = vst [vmem:[#allocation2 + $0xc1] sm:$0xff] %v5572_v38  ;;  %v697_v12 = vld [vmem:[#allocation6 + $0xe0] sm:$0xff]  ;;  %v5640_v14 = vld [vmem:[%s5457_s12 + $0xe8] sm:$0xff] }
  0x8a   : > { %363 = vst [vmem:[#allocation2 + $0xc9] sm:$0xff] %v5577_v41  ;;  %364 = vst [vmem:[#allocation2 + $0xd9] sm:$0xff] %v5581_v42  ;;  %v4096_v15 = vpack.c.bf16 %v698_v13, %v697_v12  ;;  %v699_v16 = vld [vmem:[#allocation6 + $0xf0] sm:$0xff]  ;;  %v700_v21 = vld [vmem:[#allocation6 + $0xf8] sm:$0xff]  ;;  %p5168_p1 = pnand %p5167_p12, %p5161_p3 }
  0x8b   : > { %365 = vst [vmem:[#allocation2 + $0xe1] sm:$0xff] %v5585_v44  ;;  %366 = vst [vmem:[#allocation2 + $0xf1] sm:$0xff] %v5590_v47  ;;  %4076 = vmatpush1.bf16.msra.mxu0 %v4075_v43  ;;  %v4099_v22 = vpack.c.bf16 %v700_v21, %v699_v16  ;;  %v701_v24 = vld [vmem:[#allocation6 + $0x100] sm:$0xff]  ;;  %v702_v30 = vld [vmem:[#allocation6 + $0x108] sm:$0xff] }
  0x8c   : > { %367 = vst [vmem:[#allocation2 + $0xf9] sm:$0xff] %v5594_v48  ;;  %368 = vst [vmem:[#allocation2 + $0x109] sm:$0xff] %v5598_v49  ;;  %4077 = vmatprep.subr.bf16.mxu0 %v7018_v0  ;;  %v380_v31 = vld [vmem:[#allocation2] sm:$0xff]  ;;  %v4102_v33 = vpack.c.bf16 %v702_v30, %v701_v24  ;;  %v413_v37 = vld [vmem:[#allocation2 + $0x9] sm:$0xff] }
  0x8d   : > { %369 = vst [vmem:[#allocation2 + $0x111] sm:$0xff] %v5602_v52  ;;  %370 = vst [vmem:[#allocation2 + $0x121] sm:$0xff] %v5607_v54  ;;  %v703_v39 = vld [vmem:[#allocation6 + $0x110] sm:$0xff]  ;;  %v704_v40 = vld [vmem:[#allocation6 + $0x118] sm:$0xff] }
  0x8e   : > { %371 = vst [vmem:[#allocation2 + $0x129] sm:$0xff] %v5610_v55  ;;  %372 = vst [vmem:[#allocation2 + $0x139] sm:$0xff] %v5615_v56  ;;  %v4105_v43 = vpack.c.bf16 %v704_v40, %v703_v39  ;;  %v705_v45 = vld [vmem:[#allocation6 + $0x120] sm:$0xff]  ;;  %v706_v46 = vld [vmem:[#allocation6 + $0x128] sm:$0xff] }
  0x8f   : > { %4079 = vmatpush1.bf16.msra.mxu0 %v4078_v50  ;;  %373 = vst [vmem:[#allocation2 + $0x141] sm:$0xff] %v5620_v60  ;;  %374 = vst [vmem:[#allocation2 + $0x151] sm:$0xff] %v5625_v2  ;;  %v5649_v50 = vld [vmem:[#allocation2 + $0x18] sm:$0xff]  ;;  %v4108_v51 = vpack.c.bf16 %v706_v46, %v705_v45  ;;  %v707_v53 = vld [vmem:[#allocation6 + $0x130] sm:$0xff] }
  0x90   : > { %4080 = vmatprep.subr.bf16.mxu0 %v7018_v0  ;;  %375 = vst [vmem:[#allocation2 + $0x159] sm:$0xff] %v5630_v6  ;;  %376 = vst [vmem:[#allocation2 + $0x169] sm:$0xff] %v5635_v10  ;;  %v5654_v58 = vld [vmem:[#allocation2 + $0x20] sm:$0xff]  ;;  %v5661_v63 = vld [vmem:[#allocation2 + $0x32] sm:$0xff] }
  0x91   : > { %377 = vst [vmem:[#allocation2 + $0x171] sm:$0xff] %v5640_v14  ;;  %3925 = vmatprep.mubr.f32.mxu1 %v5661_v63  ;;  %v5667_v4 = vld [vmem:[#allocation2 + $0x38] sm:$0xff]  ;;  %v713_v5 = vld [vmem:[#allocation6 + $0x160] sm:$0xff]  ;;  %v5672_v8 = vld [vmem:[#allocation2 + $0x48] sm:$0xff] }
  0x92   : > { %v5677_v12 = vld [vmem:[#allocation2 + $0x50] sm:$0xff]  ;;  %v5682_v16 = vld [vmem:[#allocation2 + $0x60] sm:$0xff]  ;;  %v5687_v24 = vld [vmem:[#allocation2 + $0x68] sm:$0xff] }
  0x93   : > { %4082 = vmatpush1.bf16.msra.mxu0 %v4081_v57  ;;  %v708_v57 = vld [vmem:[#allocation6 + $0x138] sm:$0xff]  ;;  %v723_v39 = vld [vmem:[#allocation6 + $0x1b0] sm:$0xff]  ;;  %v725_v45 = vld [vmem:[#allocation6 + $0x1c0] sm:$0xff] }
  0x94   : > { %4083 = vmatprep.subr.bf16.mxu0 %v7018_v0  ;;  %v4111_v59 = vpack.c.bf16 %v708_v57, %v707_v53  ;;  %v5697_v40 = vld [vmem:[#allocation2 + $0x80] sm:$0xff]  ;;  %v5702_v46 = vld [vmem:[#allocation2 + $0x90] sm:$0xff]  ;;  %v5707_v57 = vld [vmem:[#allocation2 + $0x98] sm:$0xff] }
  0x95   : > { %v727_v53 = vld [vmem:[#allocation6 + $0x1d0] sm:$0xff] }
  0x97   : > { %4085 = vmatpush1.bf16.msra.mxu0 %v4084_v61  ;;  %v5659_v61 = vld [vmem:[#allocation2 + $0x30] sm:$0xff] }
  0x98   : > { %4086 = vmatprep.subr.bf16.mxu0 %v7018_v0 }
  0x9b   : > { %4088 = vmatpush1.bf16.msra.mxu0 %v4087_v3  ;;  %v712_v3 = vld [vmem:[#allocation6 + $0x158] sm:$0xff] }
  0x9c   : > { %4089 = vmatprep.subr.bf16.mxu0 %v7018_v0 }
  0x9f   : > { %4091 = vmatpush1.bf16.msra.mxu0 %v4090_v7  ;;  %v714_v7 = vld [vmem:[#allocation6 + $0x168] sm:$0xff] }
  0xa0   : > { %4092 = vmatprep.subr.bf16.mxu0 %v7018_v0  ;;  %v4120_v9 = vpack.c.bf16 %v714_v7, %v713_v5  ;;  %v5731_v5 = vld [vmem:[#allocation2 + $0xd8] sm:$0xff]  ;;  %v5739_v7 = vld [vmem:[#allocation2 + $0xf0] sm:$0xff] }
  0xa3   : > { %4094 = vmatpush1.bf16.msra.mxu0 %v4093_v11  ;;  %v715_v11 = vld [vmem:[#allocation6 + $0x170] sm:$0xff] }
  0xa4   : > { %4095 = vmatprep.subr.bf16.mxu0 %v7018_v0 }
  0xa7   : > { %4097 = vmatpush1.bf16.msra.mxu0 %v4096_v15  ;;  %v717_v15 = vld [vmem:[#allocation6 + $0x180] sm:$0xff] }
  0xa8   : > { %4098 = vmatprep.subr.bf16.mxu0 %v7018_v0 }
  0xab   : > { %4100 = vmatpush1.bf16.msra.mxu0 %v4099_v22  ;;  %v719_v22 = vld [vmem:[#allocation6 + $0x190] sm:$0xff] }
  0xac   : > { %4101 = vmatprep.subr.bf16.mxu0 %v7018_v0 }
  0xae   : > { %885 = vmatmul.mubr.f32.vlgmr.msra.gmra.mrb[0].mxu0 %v380_v31  ;;  %v721_v31 = vld [vmem:[#allocation6 + $0x1a0] sm:$0xff] }
  0xaf   : > { %4103 = vmatpush1.bf16.msra.mxu0 %v4102_v33  ;;  %889 = vmatprep.mubr.f32.mxu0 %v413_v37  ;;  %v5692_v33 = vld [vmem:[#allocation2 + $0x78] sm:$0xff] }
  0xb0   : > { %4104 = vmatprep.subr.bf16.mxu0 %v7018_v0 }
  0xb2   : > { %890 = vmatmul.mubr.f32.gmra.mrb[2].mxu0 %v5236_v1  ;;  %v709_v1 = vld [vmem:[#allocation6 + $0x140] sm:$0xff] }
  0xb3   : > { %894 = vmatprep.mubr.f32.mxu0 %v5514_v17  ;;  %4106 = vmatpush1.bf16.msra.mxu0 %v4105_v43  ;;  %v710_v17 = vld [vmem:[#allocation6 + $0x148] sm:$0xff] }
  0xb4   : > { %4107 = vmatprep.subr.bf16.mxu0 %v7018_v0  ;;  %v4114_v62 = vpack.c.bf16 %v710_v17, %v709_v1  ;;  %v729_v1 = vld [vmem:[#allocation6 + $0x1e0] sm:$0xff]  ;;  %v5712_v17 = vld [vmem:[#allocation2 + $0xa8] sm:$0xff] }
  0xb6   : > { %895 = vmatmul.mubr.f32.gmra.mrb[4].mxu0 %v5649_v50 }
  0xb7   : > { %899 = vmatprep.mubr.f32.mxu0 %v5518_v18  ;;  %4109 = vmatpush1.bf16.msra.mxu0 %v4108_v51  ;;  %v711_v18 = vld [vmem:[#allocation6 + $0x150] sm:$0xff] }
  0xb8   : > { %4110 = vmatprep.subr.bf16.mxu0 %v7018_v0 }
  0xba   : > { %900 = vmatmul.mubr.f32.gmra.mrb[6].mxu0 %v5654_v58 }
  0xbb   : > { %904 = vmatprep.mubr.f32.mxu0 %v5521_v19  ;;  %4112 = vmatpush1.bf16.msra.mxu0 %v4111_v59  ;;  %v4117_v19 = vpack.c.bf16 %v712_v3, %v711_v18  ;;  %v731_v18 = vld [vmem:[#allocation6 + $0x1f0] sm:$0xff]  ;;  %v5717_v3 = vld [vmem:[#allocation2 + $0xb0] sm:$0xff] }
  0xbc   : > { %4113 = vmatprep.subr.bf16.mxu0 %v7018_v0 }
  0xbe   : > { %905 = vmatmul.mubr.f32.gmra.mrb[8].mxu0 %v5659_v61 }
  0xbf   : > { %909 = vmatprep.mubr.f32.mxu0 %v5526_v20  ;;  %4115 = vmatpush1.bf16.msra.mxu0 %v4114_v62  ;;  %v716_v20 = vld [vmem:[#allocation6 + $0x178] sm:$0xff] }
  0xc0   : > { %4116 = vmatprep.subr.bf16.mxu0 %v7018_v0  ;;  %v4123_v13 = vpack.c.bf16 %v716_v20, %v715_v11  ;;  %v733_v11 = vld [vmem:[#allocation6 + $0x200] sm:$0xff]  ;;  %v444_v20 = vld [vmem:[#allocation2 + $0x2] sm:$0xff] }
  0xc2   : > { %910 = vmatmul.mubr.f32.gmra.mrb[10].mxu0 %v5667_v4 }
  0xc3   : > { %914 = vmatprep.mubr.f32.mxu0 %v5530_v23  ;;  %4118 = vmatpush1.bf16.msra.mxu0 %v4117_v19  ;;  %v718_v23 = vld [vmem:[#allocation6 + $0x188] sm:$0xff] }
  0xc4   : > { %4119 = vmatprep.subr.bf16.mxu0 %v7018_v0  ;;  %v4126_v21 = vpack.c.bf16 %v718_v23, %v717_v15  ;;  %v735_v15 = vld [vmem:[#allocation6 + $0x210] sm:$0xff]  ;;  %v736_v23 = vld [vmem:[#allocation6 + $0x218] sm:$0xff] }
  0xc6   : > { %915 = vmatmul.mubr.f32.gmra.mrb[12].mxu0 %v5672_v8 }
  0xc7   : > { %919 = vmatprep.mubr.f32.mxu0 %v5535_v25  ;;  %4121 = vmatpush1.bf16.msra.mxu0 %v4120_v9  ;;  %v720_v25 = vld [vmem:[#allocation6 + $0x198] sm:$0xff] }
  0xc8   : > { %4122 = vmatprep.subr.bf16.mxu0 %v7018_v0  ;;  %v4129_v30 = vpack.c.bf16 %v720_v25, %v719_v22  ;;  %v5782_v9 = vld [vmem:[%s5457_s12 + $0xf8] sm:$0xff]  ;;  %v738_v22 = vld [vmem:[#allocation6 + $0x228] sm:$0xff] }
  0xc9   : > { %379 = vst [vmem:[#allocation2 + $0x189] sm:$0xff] %v5782_v9  ;;  %v5798_v25 = vld [vmem:[#allocation2 + $0x1a] sm:$0xff] }
  0xca   : > { %920 = vmatmul.mubr.f32.gmra.mrb[14].mxu0 %v5677_v12 }
  0xcb   : > { %924 = vmatprep.mubr.f32.mxu0 %v5538_v26  ;;  %4124 = vmatpush1.bf16.msra.mxu0 %v4123_v13  ;;  %v722_v26 = vld [vmem:[#allocation6 + $0x1a8] sm:$0xff] }
  0xcc   : > { %4125 = vmatprep.subr.bf16.mxu0 %v7018_v0  ;;  %v4132_v37 = vpack.c.bf16 %v722_v26, %v721_v31  ;;  %v740_v31 = vld [vmem:[#allocation6 + $0x238] sm:$0xff] }
  0xce   : > { %925 = vmatmul.mubr.f32.gmra.mrb[16].mxu0 %v5682_v16 }
  0xcf   : > { %929 = vmatprep.mubr.f32.mxu0 %v5543_v27  ;;  %4127 = vmatpush1.bf16.msra.mxu0 %v4126_v21  ;;  %v724_v27 = vld [vmem:[#allocation6 + $0x1b8] sm:$0xff]  ;;  %v4153_v21 = vpack.c.bf16 %v736_v23, %v735_v15  ;;  %v755_v15 = vld [vmem:[#allocation6 + $0x2b0] sm:$0xff] }
  0xd0   : > { %4128 = vmatprep.subr.bf16.mxu0 %v7018_v0  ;;  %v4135_v43 = vpack.c.bf16 %v724_v27, %v723_v39  ;;  %v743_v27 = vld [vmem:[#allocation6 + $0x250] sm:$0xff] }
  0xd1   : > { %v5841_v23 = vld [vmem:[#allocation2 + $0x82] sm:$0xff] }
  0xd2   : > { %930 = vmatmul.mubr.f32.gmra.mrb[18].mxu0 %v5687_v24 }
  0xd3   : > { %934 = vmatprep.mubr.f32.mxu0 %v5546_v28  ;;  %4130 = vmatpush1.bf16.msra.mxu0 %v4129_v30  ;;  %v726_v28 = vld [vmem:[#allocation6 + $0x1c8] sm:$0xff]  ;;  %v739_v30 = vld [vmem:[#allocation6 + $0x230] sm:$0xff] }
  0xd4   : > { %4131 = vmatprep.subr.bf16.mxu0 %v7018_v0  ;;  %v4138_v51 = vpack.c.bf16 %v726_v28, %v725_v45  ;;  %v4159_v26 = vpack.c.bf16 %v740_v31, %v739_v30  ;;  %v745_v28 = vld [vmem:[#allocation6 + $0x260] sm:$0xff]  ;;  %v5851_v30 = vld [vmem:[#allocation2 + $0x9a] sm:$0xff] }
  0xd6   : > { %935 = vmatmul.mubr.f32.gmra.mrb[20].mxu0 %v5692_v33 }
  0xd7   : > { %939 = vmatprep.mubr.f32.mxu0 %v5551_v29  ;;  %4133 = vmatpush1.bf16.msra.mxu0 %v4132_v37  ;;  %v728_v29 = vld [vmem:[#allocation6 + $0x1d8] sm:$0xff]  ;;  %v741_v37 = vld [vmem:[#allocation6 + $0x240] sm:$0xff] }
  0xd8   : > { %4134 = vmatprep.subr.bf16.mxu0 %v7018_v0  ;;  %v4141_v59 = vpack.c.bf16 %v728_v29, %v727_v53  ;;  %v747_v29 = vld [vmem:[#allocation6 + $0x270] sm:$0xff] }
  0xda   : > { %940 = vmatmul.mubr.f32.gmra.mrb[22].mxu0 %v5697_v40 }
  0xdb   : > { %944 = vmatprep.mubr.f32.mxu0 %v5555_v32  ;;  %4136 = vmatpush1.bf16.msra.mxu0 %v4135_v43  ;;  %v730_v32 = vld [vmem:[#allocation6 + $0x1e8] sm:$0xff]  ;;  %v744_v43 = vld [vmem:[#allocation6 + $0x258] sm:$0xff] }
  0xdc   : > { %4137 = vmatprep.subr.bf16.mxu0 %v7018_v0  ;;  %v4144_v62 = vpack.c.bf16 %v730_v32, %v729_v1  ;;  %v4165_v45 = vpack.c.bf16 %v744_v43, %v743_v27  ;;  %v749_v32 = vld [vmem:[#allocation6 + $0x280] sm:$0xff] }
  0xdd   : > { %v5861_v27 = vld [vmem:[#allocation2 + $0xb2] sm:$0xff] }
  0xde   : > { %945 = vmatmul.mubr.f32.gmra.mrb[24].mxu0 %v5702_v46 }
  0xdf   : > { %949 = vmatprep.mubr.f32.mxu0 %v5560_v34  ;;  %4139 = vmatpush1.bf16.msra.mxu0 %v4138_v51  ;;  %v732_v34 = vld [vmem:[#allocation6 + $0x1f8] sm:$0xff]  ;;  %v746_v51 = vld [vmem:[#allocation6 + $0x268] sm:$0xff] }
  0xe0   : > { %4140 = vmatprep.subr.bf16.mxu0 %v7018_v0  ;;  %v4147_v19 = vpack.c.bf16 %v732_v34, %v731_v18  ;;  %v4168_v53 = vpack.c.bf16 %v746_v51, %v745_v28  ;;  %v751_v34 = vld [vmem:[#allocation6 + $0x290] sm:$0xff]  ;;  %v5883_v28 = vld [vmem:[#allocation2 + $0xf2] sm:$0xff] }
  0xe1   : > { %v798_v51 = vld [vmem:[#allocation6 + $0x408] sm:$0xff] }
  0xe2   : > { %950 = vmatmul.mubr.f32.gmra.mrb[26].mxu0 %v5707_v57 }
  0xe3   : > { %954 = vmatprep.mubr.f32.mxu0 %v5563_v35  ;;  %4142 = vmatpush1.bf16.msra.mxu0 %v4141_v59  ;;  %v5722_v35 = vld [vmem:[#allocation2 + $0xc0] sm:$0xff]  ;;  %v5821_v59 = vld [vmem:[#allocation2 + $0x52] sm:$0xff] }
  0xe4   : > { %4143 = vmatprep.subr.bf16.mxu0 %v7018_v0 }
  0xe6   : > { %955 = vmatmul.mubr.f32.gmra.mrb[28].mxu0 %v5712_v17 }
  0xe7   : > { %959 = vmatprep.mubr.f32.mxu0 %v5568_v36  ;;  %4145 = vmatpush1.bf16.msra.mxu0 %v4144_v62  ;;  %v5727_v36 = vld [vmem:[#allocation2 + $0xc8] sm:$0xff] }
  0xe8   : > { %4146 = vmatprep.subr.bf16.mxu0 %v7018_v0  ;;  %v5826_v62 = vld [vmem:[#allocation2 + $0x62] sm:$0xff] }
  0xea   : > { %960 = vmatmul.mubr.f32.gmra.mrb[30].mxu0 %v5717_v3 }
  0xeb   : > { %964 = vmatprep.mubr.f32.mxu0 %v5572_v38  ;;  %4148 = vmatpush1.bf16.msra.mxu0 %v4147_v19  ;;  %v5735_v38 = vld [vmem:[#allocation2 + $0xe0] sm:$0xff]  ;;  %v5831_v19 = vld [vmem:[#allocation2 + $0x6a] sm:$0xff] }
  0xec   : > { %4149 = vmatprep.subr.bf16.mxu0 %v7018_v0 }
  0xee   : > { %965 = vmatmul.mubr.f32.gmra.mrb[32].mxu0 %v5722_v35 }
  0xef   : > { %969 = vmatprep.mubr.f32.mxu0 %v5577_v41  ;;  %v5743_v41 = vld [vmem:[#allocation2 + $0xf8] sm:$0xff] }
  0xf2   : > { %970 = vmatmul.mubr.f32.gmra.mrb[34].mxu0 %v5727_v36 }
  0xf3   : > { %974 = vmatprep.mubr.f32.mxu0 %v5581_v42  ;;  %v5747_v42 = vld [vmem:[#allocation2 + $0x108] sm:$0xff] }
  0xf6   : > { %975 = vmatmul.mubr.f32.gmra.mrb[36].mxu0 %v5731_v5 }
  0xf7   : > { %979 = vmatprep.mubr.f32.mxu0 %v5585_v44  ;;  %v5751_v44 = vld [vmem:[#allocation2 + $0x110] sm:$0xff] }
  0xfa   : > { %980 = vmatmul.mubr.f32.gmra.mrb[38].mxu0 %v5735_v38 }
  0xfb   : > { %984 = vmatprep.mubr.f32.mxu0 %v5590_v47  ;;  %v5755_v47 = vld [vmem:[#allocation2 + $0x120] sm:$0xff] }
  0xfe   : > { %985 = vmatmul.mubr.f32.gmra.mrb[40].mxu0 %v5739_v7 }
  0xff   : > { %989 = vmatprep.mubr.f32.mxu0 %v5594_v48  ;;  %v5759_v48 = vld [vmem:[#allocation2 + $0x128] sm:$0xff] }
 0x102   : > { %990 = vmatmul.mubr.f32.gmra.mrb[42].mxu0 %v5743_v41 }
 0x103   : > { %994 = vmatprep.mubr.f32.mxu0 %v5598_v49  ;;  %v5763_v49 = vld [vmem:[#allocation2 + $0x138] sm:$0xff] }
 0x106   : > { %995 = vmatmul.mubr.f32.gmra.mrb[44].mxu0 %v5747_v42 }
 0x107   : > { %999 = vmatprep.mubr.f32.mxu0 %v5602_v52  ;;  %v5767_v52 = vld [vmem:[#allocation2 + $0x140] sm:$0xff] }
 0x10a   : > { %1000 = vmatmul.mubr.f32.gmra.mrb[46].mxu0 %v5751_v44 }
 0x10b   : > { %1004 = vmatprep.mubr.f32.mxu0 %v5607_v54  ;;  %v5771_v54 = vld [vmem:[#allocation2 + $0x150] sm:$0xff] }
 0x10e   : > { %1005 = vmatmul.mubr.f32.gmra.mrb[48].mxu0 %v5755_v47 }
 0x10f   : > { %1009 = vmatprep.mubr.f32.mxu0 %v5610_v55  ;;  %v5774_v55 = vld [vmem:[%s5457_s12 + $0xf0] sm:$0xff] }
 0x110   : > { %378 = vst [vmem:[#allocation2 + $0x181] sm:$0xff] %v5774_v55 }
 0x112   : > { %1010 = vmatmul.mubr.f32.gmra.mrb[50].mxu0 %v5759_v48 }
 0x113   : > { %1014 = vmatprep.mubr.f32.mxu0 %v5615_v56  ;;  %v5779_v56 = vld [vmem:[#allocation2 + $0x158] sm:$0xff] }
 0x116   : > { %1015 = vmatmul.mubr.f32.gmra.mrb[52].mxu0 %v5763_v49 }
 0x117   : > { %1019 = vmatprep.mubr.f32.mxu0 %v5620_v60  ;;  %v5787_v60 = vld [vmem:[#allocation2 + $0x168] sm:$0xff] }
 0x11a   : > { %1020 = vmatmul.mubr.f32.gmra.mrb[54].mxu0 %v5767_v52 }
 0x11b   : > { %1024 = vmatprep.mubr.f32.mxu0 %v5625_v2  ;;  %v5791_v2 = vld [vmem:[#allocation2 + $0x170] sm:$0xff] }
 0x11e   : > { %1025 = vmatmul.mubr.f32.gmra.mrb[56].mxu0 %v5771_v54 }
 0x11f   : > { %1029 = vmatprep.mubr.f32.mxu0 %v5630_v6  ;;  %v734_v6 = vld [vmem:[#allocation6 + $0x208] sm:$0xff] }
 0x120   : > { %v4150_v13 = vpack.c.bf16 %v734_v6, %v733_v11  ;;  %v753_v6 = vld [vmem:[#allocation6 + $0x2a0] sm:$0xff] }
 0x122   : > { %1030 = vmatmul.mubr.f32.gmra.mrb[58].mxu0 %v5779_v56 }
 0x123   : > { %1034 = vmatprep.mubr.f32.mxu0 %v5635_v10  ;;  %v445_v10 = vld [vmem:[#allocation2 + $0xa] sm:$0xff] }
 0x126   : > { %1035 = vmatmul.mubr.f32.gmra.mrb[60].mxu0 %v5787_v60 }
 0x127   : > { %1039 = vmatprep.mubr.f32.mxu0 %v5640_v14  ;;  %v737_v14 = vld [vmem:[#allocation6 + $0x220] sm:$0xff] }
 0x12a   : > { %1040 = vmatmul.mubr.f32.gmra.mrb[62].mxu0 %v5791_v2 }
 0x12b   : > { %1109 = vmatprep.mubr.f32.mxu0 %v5649_v50  ;;  %v4156_v50 = vpack.c.bf16 %v738_v22, %v737_v14  ;;  %v5846_v14 = vld [vmem:[#allocation2 + $0x92] sm:$0xff] }
 0x12e   : > { %1110 = vmatmul.mubr.f32.vlgmr.msra.gmra.mrb[0].mxu0 %v444_v20  ;;  %v5836_v20 = vld [vmem:[#allocation2 + $0x7a] sm:$0xff] }
 0x12f   : > { %4151 = vmatpush1.bf16.msra.mxu0 %v4150_v13  ;;  %1114 = vmatprep.mubr.f32.mxu0 %v5654_v58  ;;  %v5803_v58 = vld [vmem:[#allocation2 + $0x22] sm:$0xff] }
 0x130   : > { %4152 = vmatprep.subr.bf16.mxu0 %v7018_v0 }
 0x132   : > { %1115 = vmatmul.mubr.f32.gmra.mrb[2].mxu0 %v445_v10 }
 0x133   : > { %1119 = vmatprep.mubr.f32.mxu0 %v5659_v61  ;;  %4154 = vmatpush1.bf16.msra.mxu0 %v4153_v21  ;;  %v742_v61 = vld [vmem:[#allocation6 + $0x248] sm:$0xff]  ;;  %v757_v21 = vld [vmem:[#allocation6 + $0x2c0] sm:$0xff] }
 0x134   : > { %4155 = vmatprep.subr.bf16.mxu0 %v7018_v0  ;;  %v4162_v39 = vpack.c.bf16 %v742_v61, %v741_v37  ;;  %v5856_v37 = vld [vmem:[#allocation2 + $0xaa] sm:$0xff] }
 0x136   : > { %1120 = vmatmul.mubr.f32.gmra.mrb[4].mxu0 %v5798_v25 }
 0x137   : > { %1124 = vmatprep.mubr.f32.mxu0 %v5667_v4  ;;  %4157 = vmatpush1.bf16.msra.mxu0 %v4156_v50  ;;  %v5811_v4 = vld [vmem:[#allocation2 + $0x3a] sm:$0xff] }
 0x138   : > { %4158 = vmatprep.subr.bf16.mxu0 %v7018_v0  ;;  %v759_v50 = vld [vmem:[#allocation6 + $0x2d0] sm:$0xff] }
 0x13a   : > { %1125 = vmatmul.mubr.f32.gmra.mrb[6].mxu0 %v5803_v58 }
 0x13b   : > { %1129 = vmatprep.mubr.f32.mxu0 %v5672_v8  ;;  %4160 = vmatpush1.bf16.msra.mxu0 %v4159_v26  ;;  %v5816_v8 = vld [vmem:[#allocation2 + $0x4a] sm:$0xff] }
 0x13c   : > { %4161 = vmatprep.subr.bf16.mxu0 %v7018_v0  ;;  %v761_v26 = vld [vmem:[#allocation6 + $0x2e0] sm:$0xff] }
 0x13e   : > { %1130 = vmatmul.mubr.f32.gmra.mrb[8].mxu0 %v5661_v63 }
 0x13f   : > { %1134 = vmatprep.mubr.f32.mxu0 %v5677_v12  ;;  %4163 = vmatpush1.bf16.msra.mxu0 %v4162_v39  ;;  %v748_v12 = vld [vmem:[#allocation6 + $0x278] sm:$0xff]  ;;  %v763_v39 = vld [vmem:[#allocation6 + $0x2f0] sm:$0xff] }
 0x140   : > { %4164 = vmatprep.subr.bf16.mxu0 %v7018_v0  ;;  %v4171_v1 = vpack.c.bf16 %v748_v12, %v747_v29  ;;  %v800_v29 = vld [vmem:[#allocation6 + $0x418] sm:$0xff] }
 0x142   : > { %1135 = vmatmul.mubr.f32.gmra.mrb[10].mxu0 %v5811_v4 }
 0x143   : > { %1139 = vmatprep.mubr.f32.mxu0 %v5682_v16  ;;  %4166 = vmatpush1.bf16.msra.mxu0 %v4165_v45  ;;  %v750_v16 = vld [vmem:[#allocation6 + $0x288] sm:$0xff] }
 0x144   : > { %4167 = vmatprep.subr.bf16.mxu0 %v7018_v0  ;;  %v4174_v18 = vpack.c.bf16 %v750_v16, %v749_v32  ;;  %v5875_v45 = vld [vmem:[#allocation2 + $0xda] sm:$0xff] }
 0x145   : > { %v802_v32 = vld [vmem:[#allocation6 + $0x428] sm:$0xff] }
 0x146   : > { %1140 = vmatmul.mubr.f32.gmra.mrb[12].mxu0 %v5816_v8 }
 0x147   : > { %1144 = vmatprep.mubr.f32.mxu0 %v5687_v24  ;;  %4169 = vmatpush1.bf16.msra.mxu0 %v4168_v53  ;;  %v752_v24 = vld [vmem:[#allocation6 + $0x298] sm:$0xff] }
 0x148   : > { %4170 = vmatprep.subr.bf16.mxu0 %v7018_v0  ;;  %v4177_v11 = vpack.c.bf16 %v752_v24, %v751_v34  ;;  %v804_v34 = vld [vmem:[#allocation6 + $0x438] sm:$0xff] }
 0x14a   : > { %1145 = vmatmul.mubr.f32.gmra.mrb[14].mxu0 %v5821_v59 }
 0x14b   : > { %1149 = vmatprep.mubr.f32.mxu0 %v5692_v33  ;;  %4172 = vmatpush1.bf16.msra.mxu0 %v4171_v1  ;;  %v754_v33 = vld [vmem:[#allocation6 + $0x2a8] sm:$0xff]  ;;  %v801_v1 = vld [vmem:[#allocation6 + $0x420] sm:$0xff] }
 0x14c   : > { %4173 = vmatprep.subr.bf16.mxu0 %v7018_v0  ;;  %v4180_v13 = vpack.c.bf16 %v754_v33, %v753_v6  ;;  %v4253_v16 = vpack.c.bf16 %v802_v32, %v801_v1  ;;  %v806_v6 = vld [vmem:[#allocation6 + $0x448] sm:$0xff] }
 0x14d   : > { %v5950_v1 = vld [vmem:[#allocation2 + $0x31] sm:$0xff] }
 0x14e   : > { %1150 = vmatmul.mubr.f32.gmra.mrb[16].mxu0 %v5826_v62  ;;  %7070 = vst [vmem:[#allocation15_spill] sm:$0xff] %v5950_v1 }
 0x14f   : > { %1154 = vmatprep.mubr.f32.mxu0 %v5697_v40  ;;  %4175 = vmatpush1.bf16.msra.mxu0 %v4174_v18  ;;  %v756_v40 = vld [vmem:[#allocation6 + $0x2b8] sm:$0xff]  ;;  %v803_v18 = vld [vmem:[#allocation6 + $0x430] sm:$0xff] }
 0x150   : > { %4176 = vmatprep.subr.bf16.mxu0 %v7018_v0  ;;  %v4183_v10 = vpack.c.bf16 %v756_v40, %v755_v15  ;;  %v4257_v24 = vpack.c.bf16 %v804_v34, %v803_v18  ;;  %v808_v15 = vld [vmem:[#allocation6 + $0x458] sm:$0xff]  ;;  %v5921_v40 = vld [vmem:[#allocation2 + $0x180] sm:$0xff] }
 0x151   : > { %v5957_v18 = vld [vmem:[#allocation2 + $0x39] sm:$0xff] }
 0x152   : > { %1155 = vmatmul.mubr.f32.gmra.mrb[18].mxu0 %v5831_v19  ;;  %7071 = vst [vmem:[#allocation16_spill] sm:$0xff] %v5957_v18 }
 0x153   : > { %1159 = vmatprep.mubr.f32.mxu0 %v5702_v46  ;;  %4178 = vmatpush1.bf16.msra.mxu0 %v4177_v11  ;;  %v758_v46 = vld [vmem:[#allocation6 + $0x2c8] sm:$0xff]  ;;  %v805_v11 = vld [vmem:[#allocation6 + $0x440] sm:$0xff] }
 0x154   : > { %4179 = vmatprep.subr.bf16.mxu0 %v7018_v0  ;;  %v4186_v22 = vpack.c.bf16 %v758_v46, %v757_v21  ;;  %v4261_v33 = vpack.c.bf16 %v806_v6, %v805_v11  ;;  %v809_v21 = vld [vmem:[#allocation6 + $0x460] sm:$0xff]  ;;  %v810_v46 = vld [vmem:[#allocation6 + $0x468] sm:$0xff] }
 0x155   : > { %v5964_v11 = vld [vmem:[#allocation2 + $0x49] sm:$0xff] }
 0x156   : > { %1160 = vmatmul.mubr.f32.gmra.mrb[20].mxu0 %v5836_v20  ;;  %7072 = vst [vmem:[#allocation17_spill] sm:$0xff] %v5964_v11 }
 0x157   : > { %1164 = vmatprep.mubr.f32.mxu0 %v5707_v57  ;;  %4181 = vmatpush1.bf16.msra.mxu0 %v4180_v13  ;;  %v760_v57 = vld [vmem:[#allocation6 + $0x2d8] sm:$0xff]  ;;  %v807_v13 = vld [vmem:[#allocation6 + $0x450] sm:$0xff] }
 0x158   : > { %4182 = vmatprep.subr.bf16.mxu0 %v7018_v0  ;;  %v4189_v31 = vpack.c.bf16 %v760_v57, %v759_v50  ;;  %v5931_v50 = vld [vmem:[#allocation2 + $0x172] sm:$0xff]  ;;  %v811_v57 = vld [vmem:[#allocation6 + $0x470] sm:$0xff] }
 0x15a   : > { %1165 = vmatmul.mubr.f32.gmra.mrb[22].mxu0 %v5841_v23 }
 0x15b   : > { %1169 = vmatprep.mubr.f32.mxu0 %v5712_v17  ;;  %4184 = vmatpush1.bf16.msra.mxu0 %v4183_v10  ;;  %v762_v17 = vld [vmem:[#allocation6 + $0x2e8] sm:$0xff]  ;;  %v4265_v10 = vpack.c.bf16 %v808_v15, %v807_v13 }
 0x15c   : > { %4185 = vmatprep.subr.bf16.mxu0 %v7018_v0  ;;  %v4192_v61 = vpack.c.bf16 %v762_v17, %v761_v26  ;;  %v765_v26 = vld [vmem:[#allocation6 + $0x300] sm:$0xff]  ;;  %v766_v17 = vld [vmem:[#allocation6 + $0x308] sm:$0xff] }
 0x15d   : > { %v5971_v13 = vld [vmem:[#allocation2 + $0x51] sm:$0xff] }
 0x15e   : > { %1170 = vmatmul.mubr.f32.gmra.mrb[24].mxu0 %v5846_v14  ;;  %7073 = vst [vmem:[#allocation18_spill] sm:$0xff] %v5971_v13 }
 0x15f   : > { %1174 = vmatprep.mubr.f32.mxu0 %v5717_v3  ;;  %4187 = vmatpush1.bf16.msra.mxu0 %v4186_v22  ;;  %v764_v3 = vld [vmem:[#allocation6 + $0x2f8] sm:$0xff] }
 0x160   : > { %4188 = vmatprep.subr.bf16.mxu0 %v7018_v0  ;;  %v4195_v43 = vpack.c.bf16 %v764_v3, %v763_v39  ;;  %v5927_v22 = vld [vmem:[#allocation2 + $0x188] sm:$0xff]  ;;  %v4198_v39 = vpack.c.bf16 %v766_v17, %v765_v26  ;;  %v767_v3 = vld [vmem:[#allocation6 + $0x310] sm:$0xff] }
 0x161   : > { %v784_v26 = vld [vmem:[#allocation6 + $0x398] sm:$0xff]  ;;  %v5992_v17 = vld [vmem:[#allocation2 + $0x79] sm:$0xff] }
 0x162   : > { %1175 = vmatmul.mubr.f32.gmra.mrb[26].mxu0 %v5851_v30  ;;  %7076 = vst [vmem:[#allocation21_spill] sm:$0xff] %v5992_v17 }
 0x163   : > { %1179 = vmatprep.mubr.f32.mxu0 %v5722_v35  ;;  %4190 = vmatpush1.bf16.msra.mxu0 %v4189_v31  ;;  %v5866_v35 = vld [vmem:[#allocation2 + $0xc2] sm:$0xff] }
 0x164   : > { %4191 = vmatprep.subr.bf16.mxu0 %v7018_v0  ;;  %v812_v31 = vld [vmem:[#allocation6 + $0x478] sm:$0xff] }
 0x166   : > { %1180 = vmatmul.mubr.f32.gmra.mrb[28].mxu0 %v5856_v37 }
 0x167   : > { %1184 = vmatprep.mubr.f32.mxu0 %v5727_v36  ;;  %4193 = vmatpush1.bf16.msra.mxu0 %v4192_v61  ;;  %v5871_v36 = vld [vmem:[#allocation2 + $0xca] sm:$0xff]  ;;  %v4273_v61 = vpack.c.bf16 %v812_v31, %v811_v57 }
 0x168   : > { %4194 = vmatprep.subr.bf16.mxu0 %v7018_v0  ;;  %v5985_v57 = vld [vmem:[#allocation2 + $0x69] sm:$0xff] }
 0x169   : > { %7075 = vst [vmem:[#allocation20_spill] sm:$0xff] %v5985_v57 }
 0x16a   : > { %1185 = vmatmul.mubr.f32.gmra.mrb[30].mxu0 %v5861_v27 }
 0x16b   : > { %1189 = vmatprep.mubr.f32.mxu0 %v5731_v5  ;;  %4196 = vmatpush1.bf16.msra.mxu0 %v4195_v43  ;;  %v5879_v5 = vld [vmem:[#allocation2 + $0xe2] sm:$0xff] }
 0x16c   : > { %4197 = vmatprep.subr.bf16.mxu0 %v7018_v0  ;;  %v768_v43 = vld [vmem:[#allocation6 + $0x318] sm:$0xff] }
 0x16e   : > { %1190 = vmatmul.mubr.f32.gmra.mrb[32].mxu0 %v5866_v35 }
 0x16f   : > { %1194 = vmatprep.mubr.f32.mxu0 %v5735_v38  ;;  %v5887_v38 = vld [vmem:[#allocation2 + $0xfa] sm:$0xff] }
 0x172   : > { %1195 = vmatmul.mubr.f32.gmra.mrb[34].mxu0 %v5871_v36 }
 0x173   : > { %1199 = vmatprep.mubr.f32.mxu0 %v5739_v7  ;;  %v5891_v7 = vld [vmem:[#allocation2 + $0x10a] sm:$0xff] }
 0x176   : > { %1200 = vmatmul.mubr.f32.gmra.mrb[36].mxu0 %v5875_v45 }
 0x177   : > { %1204 = vmatprep.mubr.f32.mxu0 %v5743_v41  ;;  %v5895_v41 = vld [vmem:[#allocation2 + $0x112] sm:$0xff] }
 0x17a   : > { %1205 = vmatmul.mubr.f32.gmra.mrb[38].mxu0 %v5879_v5 }
 0x17b   : > { %1209 = vmatprep.mubr.f32.mxu0 %v5747_v42  ;;  %v5899_v42 = vld [vmem:[#allocation2 + $0x122] sm:$0xff] }
 0x17e   : > { %1210 = vmatmul.mubr.f32.gmra.mrb[40].mxu0 %v5883_v28 }
 0x17f   : > { %1214 = vmatprep.mubr.f32.mxu0 %v5751_v44  ;;  %v797_v44 = vld [vmem:[#allocation6 + $0x400] sm:$0xff] }
 0x180   : > { %v4245_v53 = vpack.c.bf16 %v798_v51, %v797_v44  ;;  %v5936_v44 = vld [vmem:[#allocation2 + $0x19] sm:$0xff]  ;;  %v4201_v51 = vpack.c.bf16 %v768_v43, %v767_v3  ;;  %v5999_v3 = vld [vmem:[#allocation2 + $0x81] sm:$0xff] }
 0x181   : > { %7068 = vst [vmem:[#allocation13_spill] sm:$0xff] %v5936_v44  ;;  %7077 = vst [vmem:[#allocation22_spill] sm:$0xff] %v5999_v3 }
 0x182   : > { %1215 = vmatmul.mubr.f32.gmra.mrb[42].mxu0 %v5887_v38  ;;  %4246 = vmatprep.subr.bf16.mxu1 %v4245_v53 }
 0x183   : > { %1219 = vmatprep.mubr.f32.mxu0 %v5755_v47  ;;  %v5903_v47 = vld [vmem:[#allocation2 + $0x12a] sm:$0xff]  ;;  %4248 = vmatpush3.bf16.msra.mxu1 %v4245_v53 }
 0x184   : > { %v769_v53 = vld [vmem:[#allocation6 + $0x320] sm:$0xff] }
 0x186   : > { %1220 = vmatmul.mubr.f32.gmra.mrb[44].mxu0 %v5891_v7 }
 0x187   : > { %1224 = vmatprep.mubr.f32.mxu0 %v5759_v48  ;;  %v799_v48 = vld [vmem:[#allocation6 + $0x410] sm:$0xff] }
 0x188   : > { %v4249_v12 = vpack.c.bf16 %v800_v29, %v799_v48  ;;  %v5943_v48 = vld [vmem:[#allocation2 + $0x21] sm:$0xff] }
 0x189   : > { %7069 = vst [vmem:[#allocation14_spill] sm:$0xff] %v5943_v48 }
 0x18a   : > { %1225 = vmatmul.mubr.f32.gmra.mrb[46].mxu0 %v5895_v41  ;;  %4250 = vmatprep.subr.bf16.mxu1 %v4249_v12 }
 0x18b   : > { %1229 = vmatprep.mubr.f32.mxu0 %v5763_v49  ;;  %v5907_v49 = vld [vmem:[#allocation2 + $0x13a] sm:$0xff]  ;;  %4252 = vmatpush3.bf16.msra.mxu1 %v4249_v12  ;;  %v772_v12 = vld [vmem:[#allocation6 + $0x338] sm:$0xff] }
 0x18c   : > { %4254 = vmatprep.subr.bf16.mxu1 %v4253_v16 }
 0x18e   : > { %1230 = vmatmul.mubr.f32.gmra.mrb[48].mxu0 %v5899_v42 }
 0x18f   : > { %1234 = vmatprep.mubr.f32.mxu0 %v5767_v52  ;;  %v5911_v52 = vld [vmem:[#allocation2 + $0x142] sm:$0xff]  ;;  %4256 = vmatpush3.bf16.msra.mxu1 %v4253_v16  ;;  %v774_v16 = vld [vmem:[#allocation6 + $0x348] sm:$0xff] }
 0x190   : > { %4258 = vmatprep.subr.bf16.mxu1 %v4257_v24 }
 0x192   : > { %1235 = vmatmul.mubr.f32.gmra.mrb[50].mxu0 %v5903_v47 }
 0x193   : > { %1239 = vmatprep.mubr.f32.mxu0 %v5771_v54  ;;  %v5915_v54 = vld [vmem:[#allocation2 + $0x152] sm:$0xff]  ;;  %4260 = vmatpush3.bf16.msra.mxu1 %v4257_v24  ;;  %v776_v24 = vld [vmem:[#allocation6 + $0x358] sm:$0xff] }
 0x194   : > { %4262 = vmatprep.subr.bf16.mxu1 %v4261_v33 }
 0x196   : > { %1240 = vmatmul.mubr.f32.gmra.mrb[52].mxu0 %v5907_v49 }
 0x197   : > { %1244 = vmatprep.mubr.f32.mxu0 %v5779_v56  ;;  %v5919_v56 = vld [vmem:[#allocation2 + $0x15a] sm:$0xff]  ;;  %4264 = vmatpush3.bf16.msra.mxu1 %v4261_v33 }
 0x198   : > { %4266 = vmatprep.subr.bf16.mxu1 %v4265_v10  ;;  %v778_v33 = vld [vmem:[#allocation6 + $0x368] sm:$0xff] }
 0x19a   : > { %1245 = vmatmul.mubr.f32.gmra.mrb[54].mxu0 %v5911_v52 }
 0x19b   : > { %1249 = vmatprep.mubr.f32.mxu0 %v5787_v60  ;;  %v5925_v60 = vld [vmem:[#allocation2 + $0x16a] sm:$0xff]  ;;  %4268 = vmatpush3.bf16.msra.mxu1 %v4265_v10 }
 0x19c   : > { %v780_v10 = vld [vmem:[#allocation6 + $0x378] sm:$0xff] }
 0x19e   : > { %1250 = vmatmul.mubr.f32.gmra.mrb[56].mxu0 %v5915_v54 }
 0x19f   : > { %1254 = vmatprep.mubr.f32.mxu0 %v5791_v2  ;;  %v4269_v2 = vpack.c.bf16 %v810_v46, %v809_v21  ;;  %v5978_v21 = vld [vmem:[#allocation2 + $0x61] sm:$0xff] }
 0x1a0   : > { %7074 = vst [vmem:[#allocation19_spill] sm:$0xff] %v5978_v21 }
 0x1a1   : > { %4270 = vmatprep.subr.bf16.mxu1 %v4269_v2 }
 0x1a2   : > { %1255 = vmatmul.mubr.f32.gmra.mrb[58].mxu0 %v5919_v56  ;;  %4272 = vmatpush3.bf16.msra.mxu1 %v4269_v2  ;;  %v782_v2 = vld [vmem:[#allocation6 + $0x388] sm:$0xff] }
 0x1a3   : > { %1259 = vmatprep.mubr.f32.mxu0 %v5921_v40  ;;  %4274 = vmatprep.subr.bf16.mxu1 %v4273_v61 }
 0x1a6   : > { %1260 = vmatmul.mubr.f32.gmra.mrb[60].mxu0 %v5925_v60  ;;  %4276 = vmatpush3.bf16.msra.mxu1 %v4273_v61 }
 0x1a7   : > { %1264 = vmatprep.mubr.f32.mxu0 %v5927_v22  ;;  %4277 = vmatprep.subr.bf16.mxu1 %v7018_v0 }
 0x1a9   : > { %3926 = vmatmul.mubr.f32.vlgmr.msra.gmra.mrb[0].mxu1 %v5811_v4 }
 0x1aa   : > { %1265 = vmatmul.mubr.f32.gmra.mrb[62].mxu0 %v5931_v50  ;;  %3928 = vmatprep.mubr.f32.mxu1 %v5816_v8 }
 0x1ab   : > { %1334 = vmatprep.mubr.f32.mxu0 %v5798_v25  ;;  %v770_v25 = vld [vmem:[#allocation6 + $0x328] sm:$0xff] }
 0x1ac   : > { %v4204_v29 = vpack.c.bf16 %v770_v25, %v769_v53  ;;  %v6006_v53 = vld [vmem:[#allocation2 + $0x91] sm:$0xff] }
 0x1ad   : > { %3929 = vmatmul.mubr.f32.gmra.mrb[2].mxu1 %v5821_v59  ;;  %7078 = vst [vmem:[#allocation23_spill] sm:$0xff] %v6006_v53 }
 0x1ae   : > { %1335 = vmatmul.mubr.f32.vlgmr.msra.gmra.mrb[0].mxu0 %v5936_v44  ;;  %3931 = vmatprep.mubr.f32.mxu1 %v5826_v62 }
 0x1af   : > { %4199 = vmatpush1.bf16.msra.mxu0 %v4198_v39  ;;  %1339 = vmatprep.mubr.f32.mxu0 %v5803_v58  ;;  %v771_v58 = vld [vmem:[#allocation6 + $0x330] sm:$0xff]  ;;  %v786_v39 = vld [vmem:[#allocation6 + $0x3a8] sm:$0xff] }
 0x1b0   : > { %4200 = vmatprep.subr.bf16.mxu0 %v7018_v0  ;;  %v4207_v32 = vpack.c.bf16 %v772_v12, %v771_v58  ;;  %v6013_v58 = vld [vmem:[#allocation2 + $0x99] sm:$0xff] }
 0x1b1   : > { %3932 = vmatmul.mubr.f32.gmra.mrb[4].mxu1 %v5831_v19  ;;  %7079 = vst [vmem:[#allocation24_spill] sm:$0xff] %v6013_v58 }
 0x1b2   : > { %1340 = vmatmul.mubr.f32.gmra.mrb[2].mxu0 %v5943_v48  ;;  %3934 = vmatprep.mubr.f32.mxu1 %v5836_v20 }
 0x1b3   : > { %1344 = vmatprep.mubr.f32.mxu0 %v5661_v63  ;;  %4202 = vmatpush1.bf16.msra.mxu0 %v4201_v51  ;;  %v773_v63 = vld [vmem:[#allocation6 + $0x340] sm:$0xff]  ;;  %v788_v51 = vld [vmem:[#allocation6 + $0x3b8] sm:$0xff] }
 0x1b4   : > { %4203 = vmatprep.subr.bf16.mxu0 %v7018_v0  ;;  %v4210_v34 = vpack.c.bf16 %v774_v16, %v773_v63  ;;  %v6020_v63 = vld [vmem:[#allocation2 + $0xa9] sm:$0xff] }
 0x1b5   : > { %3935 = vmatmul.mubr.f32.gmra.mrb[6].mxu1 %v5841_v23  ;;  %7080 = vst [vmem:[#allocation25_spill] sm:$0xff] %v6020_v63 }
 0x1b6   : > { %1345 = vmatmul.mubr.f32.gmra.mrb[4].mxu0 %v5950_v1  ;;  %3937 = vmatprep.mubr.f32.mxu1 %v5846_v14 }
 0x1b7   : > { %1349 = vmatprep.mubr.f32.mxu0 %v5811_v4  ;;  %4205 = vmatpush1.bf16.msra.mxu0 %v4204_v29  ;;  %v775_v4 = vld [vmem:[#allocation6 + $0x350] sm:$0xff]  ;;  %v790_v29 = vld [vmem:[#allocation6 + $0x3c8] sm:$0xff] }
 0x1b8   : > { %4206 = vmatprep.subr.bf16.mxu0 %v7018_v0  ;;  %v4213_v6 = vpack.c.bf16 %v776_v24, %v775_v4  ;;  %v6027_v4 = vld [vmem:[#allocation2 + $0xb1] sm:$0xff] }
 0x1b9   : > { %3938 = vmatmul.mubr.f32.gmra.mrb[8].mxu1 %v5851_v30  ;;  %7081 = vst [vmem:[#allocation26_spill] sm:$0xff] %v6027_v4 }
 0x1ba   : > { %1350 = vmatmul.mubr.f32.gmra.mrb[6].mxu0 %v5957_v18  ;;  %3940 = vmatprep.mubr.f32.mxu1 %v5856_v37 }
 0x1bb   : > { %1354 = vmatprep.mubr.f32.mxu0 %v5816_v8  ;;  %4208 = vmatpush1.bf16.msra.mxu0 %v4207_v32  ;;  %v777_v8 = vld [vmem:[#allocation6 + $0x360] sm:$0xff]  ;;  %v792_v32 = vld [vmem:[#allocation6 + $0x3d8] sm:$0xff] }
 0x1bc   : > { %4209 = vmatprep.subr.bf16.mxu0 %v7018_v0  ;;  %v4216_v15 = vpack.c.bf16 %v778_v33, %v777_v8  ;;  %v796_v8 = vld [vmem:[#allocation6 + $0x3f8] sm:$0xff] }
 0x1bd   : > { %3941 = vmatmul.mubr.f32.gmra.mrb[10].mxu1 %v5861_v27  ;;  %v571_v33 = vld [vmem:[#allocation2 + $0x18a] sm:$0xff] }
 0x1be   : > { %1355 = vmatmul.mubr.f32.gmra.mrb[8].mxu0 %v5964_v11  ;;  %3943 = vmatprep.mubr.f32.mxu1 %v5866_v35 }
 0x1bf   : > { %1359 = vmatprep.mubr.f32.mxu0 %v5821_v59  ;;  %4211 = vmatpush1.bf16.msra.mxu0 %v4210_v34  ;;  %v779_v59 = vld [vmem:[#allocation6 + $0x370] sm:$0xff]  ;;  %v794_v34 = vld [vmem:[#allocation6 + $0x3e8] sm:$0xff] }
 0x1c0   : > { %4212 = vmatprep.subr.bf16.mxu0 %v7018_v0  ;;  %v4219_v46 = vpack.c.bf16 %v780_v10, %v779_v59  ;;  %v6042_v10 = vld [vmem:[#allocation2 + $0xd9] sm:$0xff] }
 0x1c1   : > { %3944 = vmatmul.mubr.f32.gmra.mrb[12].mxu1 %v5871_v36  ;;  %7084 = vst [vmem:[#allocation29_spill] sm:$0xff] %v6042_v10 }
 0x1c2   : > { %1360 = vmatmul.mubr.f32.gmra.mrb[10].mxu0 %v5971_v13  ;;  %3946 = vmatprep.mubr.f32.mxu1 %v5875_v45 }
 0x1c3   : > { %1364 = vmatprep.mubr.f32.mxu0 %v5826_v62  ;;  %4214 = vmatpush1.bf16.msra.mxu0 %v4213_v6  ;;  %v781_v62 = vld [vmem:[#allocation6 + $0x380] sm:$0xff]  ;;  %v570_v6 = vld [vmem:[#allocation2 + $0x182] sm:$0xff] }
 0x1c4   : > { %4215 = vmatprep.subr.bf16.mxu0 %v7018_v0  ;;  %v4222_v31 = vpack.c.bf16 %v782_v2, %v781_v62  ;;  %v6058_v62 = vld [vmem:[#allocation2 + $0x109] sm:$0xff]  ;;  %v605_v2 = vld [vmem:[#allocation2 + $0x31] sm:$0xff] }
 0x1c5   : > { %3947 = vmatmul.mubr.f32.gmra.mrb[14].mxu1 %v5879_v5  ;;  %7088 = vst [vmem:[#allocation33_spill] sm:$0xff] %v6058_v62 }
 0x1c6   : > { %1365 = vmatmul.mubr.f32.gmra.mrb[12].mxu0 %v5978_v21  ;;  %3949 = vmatprep.mubr.f32.mxu1 %v5883_v28 }
 0x1c7   : > { %1369 = vmatprep.mubr.f32.mxu0 %v5831_v19  ;;  %4217 = vmatpush1.bf16.msra.mxu0 %v4216_v15  ;;  %v783_v19 = vld [vmem:[#allocation6 + $0x390] sm:$0xff] }
 0x1c8   : > { %4218 = vmatprep.subr.bf16.mxu0 %v7018_v0  ;;  %v4225_v61 = vpack.c.bf16 %v784_v26, %v783_v19  ;;  %v6033_v15 = vld [vmem:[#allocation2 + $0xc1] sm:$0xff] }
 0x1c9   : > { %3950 = vmatmul.mubr.f32.gmra.mrb[16].mxu1 %v5887_v38  ;;  %7082 = vst [vmem:[#allocation27_spill] sm:$0xff] %v6033_v15  ;;  %v2299_v19 = vld [vmem:[#allocation8 + $0x10] sm:$0xff] }
 0x1ca   : > { %1370 = vmatmul.mubr.f32.gmra.mrb[14].mxu0 %v5985_v57  ;;  %3952 = vmatprep.mubr.f32.mxu1 %v5891_v7 }
 0x1cb   : > { %1374 = vmatprep.mubr.f32.mxu0 %v5836_v20  ;;  %4220 = vmatpush1.bf16.msra.mxu0 %v4219_v46  ;;  %v785_v20 = vld [vmem:[#allocation6 + $0x3a0] sm:$0xff]  ;;  %v6046_v46 = vld [vmem:[#allocation2 + $0xe1] sm:$0xff] }
 0x1cc   : > { %4221 = vmatprep.subr.bf16.mxu0 %v7018_v0  ;;  %v4228_v43 = vpack.c.bf16 %v786_v39, %v785_v20  ;;  %7085 = vst [vmem:[#allocation30_spill] sm:$0xff] %v6046_v46  ;;  %v606_v20 = vld [vmem:[#allocation2 + $0x39] sm:$0xff] }
 0x1cd   : > { %3953 = vmatmul.mubr.f32.gmra.mrb[18].mxu1 %v5895_v41 }
 0x1ce   : > { %1375 = vmatmul.mubr.f32.gmra.mrb[16].mxu0 %v5992_v17  ;;  %3955 = vmatprep.mubr.f32.mxu1 %v5899_v42 }
 0x1cf   : > { %1379 = vmatprep.mubr.f32.mxu0 %v5841_v23  ;;  %4223 = vmatpush1.bf16.msra.mxu0 %v4222_v31  ;;  %v787_v23 = vld [vmem:[#allocation6 + $0x3b0] sm:$0xff]  ;;  %v2298_v31 = vld [vmem:[#allocation8 + $0x8] sm:$0xff] }
 0x1d0   : > { %4224 = vmatprep.subr.bf16.mxu0 %v7018_v0  ;;  %v4231_v25 = vpack.c.bf16 %v788_v51, %v787_v23  ;;  %v574_v23 = vld [vmem:[#allocation2 + $0x38] sm:$0xff]  ;;  %v607_v51 = vld [vmem:[#allocation2 + $0x49] sm:$0xff] }
 0x1d1   : > { %3956 = vmatmul.mubr.f32.gmra.mrb[20].mxu1 %v5903_v47 }
 0x1d2   : > { %1380 = vmatmul.mubr.f32.gmra.mrb[18].mxu0 %v5999_v3  ;;  %3958 = vmatprep.mubr.f32.mxu1 %v5907_v49 }
 0x1d3   : > { %1384 = vmatprep.mubr.f32.mxu0 %v5846_v14  ;;  %4226 = vmatpush1.bf16.msra.mxu0 %v4225_v61  ;;  %v789_v14 = vld [vmem:[#allocation6 + $0x3c0] sm:$0xff]  ;;  %v2300_v61 = vld [vmem:[#allocation8 + $0x18] sm:$0xff] }
 0x1d4   : > { %4227 = vmatprep.subr.bf16.mxu0 %v7018_v0  ;;  %v4234_v12 = vpack.c.bf16 %v790_v29, %v789_v14  ;;  %v4281_v39 = vpack.c.bf16 %v2300_v61, %v2299_v19  ;;  %v2304_v14 = vld [vmem:[#allocation8 + $0x38] sm:$0xff]  ;;  %v2425_v29 = vld [vmem:[#allocation8 + $0x400] sm:$0xff]  ;;  %v2311_v61 = vld [vmem:[#allocation8 + $0x70] sm:$0xff] }
 0x1d5   : > { %3959 = vmatmul.mubr.f32.gmra.mrb[22].mxu1 %v5911_v52  ;;  %v578_v19 = vld [vmem:[#allocation2 + $0x68] sm:$0xff] }
 0x1d6   : > { %1385 = vmatmul.mubr.f32.gmra.mrb[20].mxu0 %v6006_v53  ;;  %3961 = vmatprep.mubr.f32.mxu1 %v5915_v54 }
 0x1d7   : > { %1389 = vmatprep.mubr.f32.mxu0 %v5851_v30  ;;  %4229 = vmatpush1.bf16.msra.mxu0 %v4228_v43  ;;  %v791_v30 = vld [vmem:[#allocation6 + $0x3d0] sm:$0xff]  ;;  %v2302_v43 = vld [vmem:[#allocation8 + $0x28] sm:$0xff] }
 0x1d8   : > { %4230 = vmatprep.subr.bf16.mxu0 %v7018_v0  ;;  %v4237_v16 = vpack.c.bf16 %v792_v32, %v791_v30  ;;  %v2426_v30 = vld [vmem:[#allocation8 + $0x408] sm:$0xff] }
 0x1d9   : > { %3962 = vmatmul.mubr.f32.gmra.mrb[24].mxu1 %v5919_v56  ;;  %v608_v32 = vld [vmem:[#allocation2 + $0x51] sm:$0xff] }
 0x1da   : > { %1390 = vmatmul.mubr.f32.gmra.mrb[22].mxu0 %v6013_v58  ;;  %3964 = vmatprep.mubr.f32.mxu1 %v5925_v60 }
 0x1db   : > { %1394 = vmatprep.mubr.f32.mxu0 %v5856_v37  ;;  %4232 = vmatpush1.bf16.msra.mxu0 %v4231_v25  ;;  %v793_v37 = vld [vmem:[#allocation6 + $0x3e0] sm:$0xff]  ;;  %v2303_v25 = vld [vmem:[#allocation8 + $0x30] sm:$0xff] }
 0x1dc   : > { %4233 = vmatprep.subr.bf16.mxu0 %v7018_v0  ;;  %v4240_v24 = vpack.c.bf16 %v794_v34, %v793_v37  ;;  %v4287_v37 = vpack.c.bf16 %v2304_v14, %v2303_v25  ;;  %v2305_v34 = vld [vmem:[#allocation8 + $0x40] sm:$0xff] }
 0x1dd   : > { %3965 = vmatmul.mubr.f32.gmra.mrb[26].mxu1 %v5931_v50  ;;  %v613_v25 = vld [vmem:[#allocation2 + $0x91] sm:$0xff] }
 0x1de   : > { %1395 = vmatmul.mubr.f32.gmra.mrb[24].mxu0 %v6020_v63  ;;  %3967 = vmatprep.mubr.f32.mxu1 %v570_v6 }
 0x1df   : > { %1399 = vmatprep.mubr.f32.mxu0 %v5861_v27  ;;  %4235 = vmatpush1.bf16.msra.mxu0 %v4234_v12  ;;  %v795_v27 = vld [vmem:[#allocation6 + $0x3f0] sm:$0xff]  ;;  %v575_v12 = vld [vmem:[#allocation2 + $0x48] sm:$0xff] }
 0x1e0   : > { %4236 = vmatprep.subr.bf16.mxu0 %v7018_v0  ;;  %v4243_v59 = vpack.c.bf16 %v796_v8, %v795_v27  ;;  %v609_v27 = vld [vmem:[#allocation2 + $0x61] sm:$0xff] }
 0x1e1   : > { %3968 = vmatmul.mubr.f32.gmra.mrb[28].mxu1 %v571_v33 }
 0x1e2   : > { %1400 = vmatmul.mubr.f32.gmra.mrb[26].mxu0 %v6027_v4 }
 0x1e3   : > { %1404 = vmatprep.mubr.f32.mxu0 %v5866_v35  ;;  %4238 = vmatpush1.bf16.msra.mxu0 %v4237_v16  ;;  %v6038_v35 = vld [vmem:[#allocation2 + $0xc9] sm:$0xff]  ;;  %v6101_v16 = vpack.c.bf16 %v2426_v30, %v2425_v29  ;;  %v2315_v29 = vld [vmem:[#allocation8 + $0x90] sm:$0xff] }
 0x1e4   : > { %4239 = vmatprep.subr.bf16.mxu0 %v7018_v0  ;;  %7083 = vst [vmem:[#allocation28_spill] sm:$0xff] %v6038_v35  ;;  %v581_v30 = vld [vmem:[#allocation2 + $0x90] sm:$0xff] }
 0x1e5   : > { %7098 = vst [vmem:[#allocation43_spill] sm:$0xff] %v6101_v16 }
 0x1e6   : > { %1405 = vmatmul.mubr.f32.gmra.mrb[28].mxu0 %v6033_v15  ;;  %v2360_v15 = vld [vmem:[#allocation8 + $0x1f8] sm:$0xff] }
 0x1e7   : > { %1409 = vmatprep.mubr.f32.mxu0 %v5871_v36  ;;  %4241 = vmatpush1.bf16.msra.mxu0 %v4240_v24  ;;  %v6050_v36 = vld [vmem:[#allocation2 + $0xf1] sm:$0xff] }
 0x1e8   : > { %4242 = vmatprep.subr.bf16.mxu0 %v7018_v0  ;;  %7086 = vst [vmem:[#allocation31_spill] sm:$0xff] %v6050_v36  ;;  %v2306_v24 = vld [vmem:[#allocation8 + $0x48] sm:$0xff] }
 0x1e9   : > { %v4290_v8 = vpack.c.bf16 %v2306_v24, %v2305_v34  ;;  %v2317_v34 = vld [vmem:[#allocation8 + $0xa0] sm:$0xff]  ;;  %v2318_v24 = vld [vmem:[#allocation8 + $0xa8] sm:$0xff] }
 0x1ea   : > { %1410 = vmatmul.mubr.f32.gmra.mrb[30].mxu0 %v6038_v35  ;;  %v2358_v35 = vld [vmem:[#allocation8 + $0x1e8] sm:$0xff] }
 0x1eb   : > { %1414 = vmatprep.mubr.f32.mxu0 %v5875_v45  ;;  %4244 = vmatpush1.bf16.msra.mxu0 %v4243_v59  ;;  %v6054_v45 = vld [vmem:[#allocation2 + $0xf9] sm:$0xff]  ;;  %v2308_v59 = vld [vmem:[#allocation8 + $0x58] sm:$0xff] }
 0x1ec   : > { %7087 = vst [vmem:[#allocation32_spill] sm:$0xff] %v6054_v45  ;;  %4470 = vmatprep.subr.bf16.mxu0 %v6101_v16 }
 0x1ee   : > { %1415 = vmatmul.mubr.f32.gmra.mrb[32].mxu0 %v6042_v10  ;;  %v2357_v10 = vld [vmem:[#allocation8 + $0x1e0] sm:$0xff] }
 0x1ef   : > { %1419 = vmatprep.mubr.f32.mxu0 %v5879_v5  ;;  %v6062_v5 = vld [vmem:[#allocation2 + $0x111] sm:$0xff] }
 0x1f0   : > { %7089 = vst [vmem:[#allocation34_spill] sm:$0xff] %v6062_v5 }
 0x1f2   : > { %1420 = vmatmul.mubr.f32.gmra.mrb[34].mxu0 %v6046_v46  ;;  %v2356_v46 = vld [vmem:[#allocation8 + $0x1d8] sm:$0xff] }
 0x1f3   : > { %1424 = vmatprep.mubr.f32.mxu0 %v5883_v28  ;;  %v6066_v28 = vld [vmem:[#allocation2 + $0x121] sm:$0xff] }
 0x1f4   : > { %7090 = vst [vmem:[#allocation35_spill] sm:$0xff] %v6066_v28 }
 0x1f6   : > { %1425 = vmatmul.mubr.f32.gmra.mrb[36].mxu0 %v6050_v36  ;;  %v2355_v36 = vld [vmem:[#allocation8 + $0x1d0] sm:$0xff] }
 0x1f7   : > { %1429 = vmatprep.mubr.f32.mxu0 %v5887_v38  ;;  %v6070_v38 = vld [vmem:[#allocation2 + $0x129] sm:$0xff] }
 0x1f8   : > { %7091 = vst [vmem:[#allocation36_spill] sm:$0xff] %v6070_v38 }
 0x1fa   : > { %1430 = vmatmul.mubr.f32.gmra.mrb[38].mxu0 %v6054_v45  ;;  %v2354_v45 = vld [vmem:[#allocation8 + $0x1c8] sm:$0xff] }
 0x1fb   : > { %1434 = vmatprep.mubr.f32.mxu0 %v5891_v7  ;;  %v6074_v7 = vld [vmem:[#allocation2 + $0x139] sm:$0xff] }
 0x1fc   : > { %7092 = vst [vmem:[#allocation37_spill] sm:$0xff] %v6074_v7 }
 0x1fe   : > { %1435 = vmatmul.mubr.f32.gmra.mrb[40].mxu0 %v6058_v62  ;;  %v2353_v62 = vld [vmem:[#allocation8 + $0x1c0] sm:$0xff] }
 0x1ff   : > { %1439 = vmatprep.mubr.f32.mxu0 %v5895_v41  ;;  %v6078_v41 = vld [vmem:[#allocation2 + $0x141] sm:$0xff] }
 0x200   : > { %7093 = vst [vmem:[#allocation38_spill] sm:$0xff] %v6078_v41 }
 0x202   : > { %1440 = vmatmul.mubr.f32.gmra.mrb[42].mxu0 %v6062_v5  ;;  %v2352_v5 = vld [vmem:[#allocation8 + $0x1b8] sm:$0xff] }
 0x203   : > { %1444 = vmatprep.mubr.f32.mxu0 %v5899_v42  ;;  %v6082_v42 = vld [vmem:[#allocation2 + $0x151] sm:$0xff] }
 0x204   : > { %7094 = vst [vmem:[#allocation39_spill] sm:$0xff] %v6082_v42 }
 0x206   : > { %1445 = vmatmul.mubr.f32.gmra.mrb[44].mxu0 %v6066_v28  ;;  %v2351_v28 = vld [vmem:[#allocation8 + $0x1b0] sm:$0xff] }
 0x207   : > { %1449 = vmatprep.mubr.f32.mxu0 %v5903_v47  ;;  %v6086_v47 = vld [vmem:[#allocation2 + $0x159] sm:$0xff] }
 0x208   : > { %7095 = vst [vmem:[#allocation40_spill] sm:$0xff] %v6086_v47 }
 0x20a   : > { %1450 = vmatmul.mubr.f32.gmra.mrb[46].mxu0 %v6070_v38  ;;  %v2350_v38 = vld [vmem:[#allocation8 + $0x1a8] sm:$0xff] }
 0x20b   : > { %1454 = vmatprep.mubr.f32.mxu0 %v5907_v49  ;;  %v6090_v49 = vld [vmem:[#allocation2 + $0x169] sm:$0xff] }
 0x20c   : > { %7096 = vst [vmem:[#allocation41_spill] sm:$0xff] %v6090_v49 }
 0x20e   : > { %1455 = vmatmul.mubr.f32.gmra.mrb[48].mxu0 %v6074_v7  ;;  %v2348_v7 = vld [vmem:[#allocation8 + $0x198] sm:$0xff] }
 0x20f   : > { %1459 = vmatprep.mubr.f32.mxu0 %v5911_v52  ;;  %v6094_v52 = vld [vmem:[#allocation2 + $0x171] sm:$0xff] }
 0x210   : > { %7097 = vst [vmem:[#allocation42_spill] sm:$0xff] %v6094_v52 }
 0x212   : > { %1460 = vmatmul.mubr.f32.gmra.mrb[50].mxu0 %v6078_v41  ;;  %v2349_v41 = vld [vmem:[#allocation8 + $0x1a0] sm:$0xff] }
 0x213   : > { %1464 = vmatprep.mubr.f32.mxu0 %v5915_v54  ;;  %v667_v54 = vld [vmem:[#allocation2 + $0x19a] sm:$0xff] }
 0x214   : > { %3970 = vmatprep.mubr.f32.mxu1 %v667_v54  ;;  %v577_v54 = vld [vmem:[#allocation2 + $0x60] sm:$0xff] }
 0x216   : > { %1465 = vmatmul.mubr.f32.gmra.mrb[52].mxu0 %v6082_v42  ;;  %v2346_v42 = vld [vmem:[#allocation8 + $0x188] sm:$0xff] }
 0x217   : > { %1469 = vmatprep.mubr.f32.mxu0 %v5919_v56  ;;  %v668_v56 = vld [vmem:[#allocation2 + $0x1a2] sm:$0xff] }
 0x218   : > { %3971 = vmatmul.mubr.f32.gmra.mrb[30].mxu1 %v668_v56  ;;  %v610_v56 = vld [vmem:[#allocation2 + $0x69] sm:$0xff] }
 0x21a   : > { %1470 = vmatmul.mubr.f32.gmra.mrb[54].mxu0 %v6086_v47  ;;  %v2347_v47 = vld [vmem:[#allocation8 + $0x190] sm:$0xff] }
 0x21b   : > { %1474 = vmatprep.mubr.f32.mxu0 %v5925_v60  ;;  %v2297_v60 = vld [vmem:[#allocation8] sm:$0xff] }
 0x21c   : > { %v4278_v26 = vpack.c.bf16 %v2298_v31, %v2297_v60  ;;  %v2309_v60 = vld [vmem:[#allocation8 + $0x60] sm:$0xff]  ;;  %v2310_v31 = vld [vmem:[#allocation8 + $0x68] sm:$0xff] }
 0x21e   : > { %1475 = vmatmul.mubr.f32.gmra.mrb[56].mxu0 %v6090_v49  ;;  %4279 = vmatpush1.bf16.msra.mxu1 %v4278_v26  ;;  %v4296_v26 = vpack.c.bf16 %v2310_v31, %v2309_v60  ;;  %v2321_v60 = vld [vmem:[#allocation8 + $0xc0] sm:$0xff]  ;;  %v2322_v31 = vld [vmem:[#allocation8 + $0xc8] sm:$0xff]  ;;  %v2344_v49 = vld [vmem:[#allocation8 + $0x178] sm:$0xff] }
 0x21f   : > { %1479 = vmatprep.mubr.f32.mxu0 %v5931_v50  ;;  %v573_v50 = vld [vmem:[#allocation2 + $0x30] sm:$0xff]  ;;  %4280 = vmatprep.subr.bf16.mxu1 %v7018_v0 }
 0x222   : > { %1480 = vmatmul.mubr.f32.gmra.mrb[58].mxu0 %v6094_v52  ;;  %4282 = vmatpush1.bf16.msra.mxu1 %v4281_v39  ;;  %v579_v39 = vld [vmem:[#allocation2 + $0x78] sm:$0xff]  ;;  %v2345_v52 = vld [vmem:[#allocation8 + $0x180] sm:$0xff] }
 0x223   : > { %1484 = vmatprep.mubr.f32.mxu0 %v570_v6  ;;  %4283 = vmatprep.subr.bf16.mxu1 %v7018_v0  ;;  %v576_v6 = vld [vmem:[#allocation2 + $0x50] sm:$0xff] }
 0x226   : > { %1485 = vmatmul.mubr.f32.gmra.mrb[60].mxu0 %v5774_v55  ;;  %v2301_v55 = vld [vmem:[#allocation8 + $0x20] sm:$0xff] }
 0x227   : > { %1489 = vmatprep.mubr.f32.mxu0 %v571_v33  ;;  %v2307_v33 = vld [vmem:[#allocation8 + $0x50] sm:$0xff] }
 0x22a   : > { %1490 = vmatmul.mubr.f32.gmra.mrb[62].mxu0 %v5782_v9  ;;  %v4284_v9 = vpack.c.bf16 %v2302_v43, %v2301_v55  ;;  %v612_v55 = vld [vmem:[#allocation2 + $0x81] sm:$0xff] }
 0x22b   : > { %1559 = vmatprep.mubr.f32.mxu0 %v605_v2  ;;  %v4293_v2 = vpack.c.bf16 %v2308_v59, %v2307_v33  ;;  %v2319_v33 = vld [vmem:[#allocation8 + $0xb0] sm:$0xff]  ;;  %v2320_v59 = vld [vmem:[#allocation8 + $0xb8] sm:$0xff] }
 0x22c   : > { %4285 = vmatpush1.bf16.msra.mxu1 %v4284_v9  ;;  %v580_v9 = vld [vmem:[#allocation2 + $0x80] sm:$0xff] }
 0x22d   : > { %4286 = vmatprep.subr.bf16.mxu1 %v7018_v0 }
 0x22e   : > { %1560 = vmatmul.mubr.f32.vlgmr.msra.gmra.mrb[0].mxu0 %v573_v50  ;;  %v611_v50 = vld [vmem:[#allocation2 + $0x79] sm:$0xff] }
 0x22f   : > { %1564 = vmatprep.mubr.f32.mxu0 %v606_v20  ;;  %4472 = vmatpush3.bf16.msra.mxu0 %v6101_v16  ;;  %v2312_v20 = vld [vmem:[#allocation8 + $0x78] sm:$0xff] }
 0x230   : > { %4288 = vmatpush1.bf16.msra.mxu1 %v4287_v37  ;;  %v4299_v43 = vpack.c.bf16 %v2312_v20, %v2311_v61  ;;  %v2323_v61 = vld [vmem:[#allocation8 + $0xd0] sm:$0xff]  ;;  %v2324_v20 = vld [vmem:[#allocation8 + $0xd8] sm:$0xff] }
 0x231   : > { %4289 = vmatprep.subr.bf16.mxu1 %v7018_v0 }
 0x232   : > { %1565 = vmatmul.mubr.f32.gmra.mrb[2].mxu0 %v574_v23  ;;  %v2313_v23 = vld [vmem:[#allocation8 + $0x80] sm:$0xff] }
 0x233   : > { %1569 = vmatprep.mubr.f32.mxu0 %v607_v51  ;;  %v2314_v51 = vld [vmem:[#allocation8 + $0x88] sm:$0xff] }
 0x234   : > { %4291 = vmatpush1.bf16.msra.mxu1 %v4290_v8  ;;  %v4302_v14 = vpack.c.bf16 %v2314_v51, %v2313_v23  ;;  %v4308_v8 = vpack.c.bf16 %v2318_v24, %v2317_v34  ;;  %v586_v23 = vld [vmem:[#allocation2 + $0xc8] sm:$0xff]  ;;  %v619_v51 = vld [vmem:[#allocation2 + $0xd9] sm:$0xff]  ;;  %v624_v24 = vld [vmem:[#allocation2 + $0x111] sm:$0xff] }
 0x235   : > { %4292 = vmatprep.subr.bf16.mxu1 %v7018_v0  ;;  %v591_v34 = vld [vmem:[#allocation2 + $0x108] sm:$0xff] }
 0x236   : > { %1570 = vmatmul.mubr.f32.gmra.mrb[4].mxu0 %v575_v12  ;;  %v2316_v12 = vld [vmem:[#allocation8 + $0x98] sm:$0xff] }
 0x237   : > { %1574 = vmatprep.mubr.f32.mxu0 %v608_v32  ;;  %v614_v32 = vld [vmem:[#allocation2 + $0x99] sm:$0xff]  ;;  %v4305_v37 = vpack.c.bf16 %v2316_v12, %v2315_v29  ;;  %v621_v29 = vld [vmem:[#allocation2 + $0xf1] sm:$0xff] }
 0x238   : > { %4294 = vmatpush1.bf16.msra.mxu1 %v4293_v2  ;;  %v4311_v2 = vpack.c.bf16 %v2320_v59, %v2319_v33  ;;  %v589_v12 = vld [vmem:[#allocation2 + $0xf0] sm:$0xff]  ;;  %v2326_v33 = vld [vmem:[#allocation8 + $0xe8] sm:$0xff] }
 0x239   : > { %4295 = vmatprep.subr.bf16.mxu1 %v7018_v0 }
 0x23a   : > { %1575 = vmatmul.mubr.f32.gmra.mrb[6].mxu0 %v576_v6  ;;  %v582_v6 = vld [vmem:[#allocation2 + $0x98] sm:$0xff] }
 0x23b   : > { %1579 = vmatprep.mubr.f32.mxu0 %v609_v27  ;;  %v615_v27 = vld [vmem:[#allocation2 + $0xa9] sm:$0xff] }
 0x23c   : > { %4297 = vmatpush1.bf16.msra.mxu1 %v4296_v26  ;;  %v4314_v26 = vpack.c.bf16 %v2322_v31, %v2321_v60  ;;  %v2328_v60 = vld [vmem:[#allocation8 + $0xf8] sm:$0xff]  ;;  %v2427_v31 = vld [vmem:[#allocation8 + $0x410] sm:$0xff] }
 0x23d   : > { %4298 = vmatprep.subr.bf16.mxu1 %v7018_v0 }
 0x23e   : > { %1580 = vmatmul.mubr.f32.gmra.mrb[8].mxu0 %v577_v54  ;;  %v583_v54 = vld [vmem:[#allocation2 + $0xa8] sm:$0xff] }
 0x23f   : > { %1584 = vmatprep.mubr.f32.mxu0 %v610_v56  ;;  %v616_v56 = vld [vmem:[#allocation2 + $0xb1] sm:$0xff] }
 0x240   : > { %4300 = vmatpush1.bf16.msra.mxu1 %v4299_v43  ;;  %v4317_v43 = vpack.c.bf16 %v2324_v20, %v2323_v61  ;;  %v627_v20 = vld [vmem:[#allocation2 + $0x139] sm:$0xff] }
 0x241   : > { %4301 = vmatprep.subr.bf16.mxu1 %v7018_v0 }
 0x242   : > { %1585 = vmatmul.mubr.f32.gmra.mrb[10].mxu0 %v578_v19  ;;  %v584_v19 = vld [vmem:[#allocation2 + $0xb0] sm:$0xff] }
 0x243   : > { %1589 = vmatprep.mubr.f32.mxu0 %v611_v50  ;;  %v617_v50 = vld [vmem:[#allocation2 + $0xc1] sm:$0xff] }
 0x244   : > { %4303 = vmatpush1.bf16.msra.mxu1 %v4302_v14  ;;  %v588_v14 = vld [vmem:[#allocation2 + $0xe0] sm:$0xff] }
 0x245   : > { %4304 = vmatprep.subr.bf16.mxu1 %v7018_v0 }
 0x246   : > { %1590 = vmatmul.mubr.f32.gmra.mrb[12].mxu0 %v579_v39  ;;  %v585_v39 = vld [vmem:[#allocation2 + $0xc0] sm:$0xff] }
 0x247   : > { %1594 = vmatprep.mubr.f32.mxu0 %v612_v55  ;;  %v618_v55 = vld [vmem:[#allocation2 + $0xc9] sm:$0xff] }
 0x248   : > { %4306 = vmatpush1.bf16.msra.mxu1 %v4305_v37  ;;  %v623_v37 = vld [vmem:[#allocation2 + $0x109] sm:$0xff] }
 0x249   : > { %4307 = vmatprep.subr.bf16.mxu1 %v7018_v0 }
 0x24a   : > { %1595 = vmatmul.mubr.f32.gmra.mrb[14].mxu0 %v580_v9  ;;  %v587_v9 = vld [vmem:[#allocation2 + $0xd8] sm:$0xff] }
 0x24b   : > { %1599 = vmatprep.mubr.f32.mxu0 %v613_v25  ;;  %v620_v25 = vld [vmem:[#allocation2 + $0xe1] sm:$0xff] }
 0x24c   : > { %4309 = vmatpush1.bf16.msra.mxu1 %v4308_v8  ;;  %v2325_v8 = vld [vmem:[#allocation8 + $0xe0] sm:$0xff] }
 0x24d   : > { %4310 = vmatprep.subr.bf16.mxu1 %v7018_v0  ;;  %v4320_v59 = vpack.c.bf16 %v2326_v33, %v2325_v8  ;;  %v2433_v33 = vld [vmem:[#allocation8 + $0x440] sm:$0xff] }
 0x24e   : > { %1600 = vmatmul.mubr.f32.gmra.mrb[16].mxu0 %v581_v30  ;;  %v622_v30 = vld [vmem:[#allocation2 + $0xf9] sm:$0xff] }
 0x24f   : > { %1604 = vmatprep.mubr.f32.mxu0 %v614_v32  ;;  %v590_v32 = vld [vmem:[#allocation2 + $0xf8] sm:$0xff] }
 0x250   : > { %4312 = vmatpush1.bf16.msra.mxu1 %v4311_v2  ;;  %v2327_v2 = vld [vmem:[#allocation8 + $0xf0] sm:$0xff] }
 0x251   : > { %4313 = vmatprep.subr.bf16.mxu1 %v7018_v0 }
 0x252   : > { %1605 = vmatmul.mubr.f32.gmra.mrb[18].mxu0 %v582_v6  ;;  %v592_v6 = vld [vmem:[#allocation2 + $0x110] sm:$0xff] }
 0x253   : > { %1609 = vmatprep.mubr.f32.mxu0 %v615_v27  ;;  %v625_v27 = vld [vmem:[#allocation2 + $0x121] sm:$0xff] }
 0x254   : > { %4315 = vmatpush1.bf16.msra.mxu1 %v4314_v26  ;;  %v594_v26 = vld [vmem:[#allocation2 + $0x128] sm:$0xff] }
 0x255   : > { %4316 = vmatprep.subr.bf16.mxu1 %v7018_v0 }
 0x256   : > { %1610 = vmatmul.mubr.f32.gmra.mrb[20].mxu0 %v583_v54  ;;  %v593_v54 = vld [vmem:[#allocation2 + $0x120] sm:$0xff] }
 0x257   : > { %1614 = vmatprep.mubr.f32.mxu0 %v616_v56  ;;  %v626_v56 = vld [vmem:[#allocation2 + $0x129] sm:$0xff] }
 0x258   : > { %4318 = vmatpush1.bf16.msra.mxu1 %v4317_v43 }
 0x259   : > { %4319 = vmatprep.subr.bf16.mxu1 %v7018_v0 }
 0x25a   : > { %1615 = vmatmul.mubr.f32.gmra.mrb[22].mxu0 %v584_v19  ;;  %v2428_v19 = vld [vmem:[#allocation8 + $0x418] sm:$0xff] }
 0x25b   : > { %1619 = vmatprep.mubr.f32.mxu0 %v617_v50  ;;  %v4323_v50 = vpack.c.bf16 %v2328_v60, %v2327_v2  ;;  %v6118_v61 = vpack.c.bf16 %v2428_v19, %v2427_v31  ;;  %v630_v2 = vld [vmem:[#allocation2 + $0x159] sm:$0xff]  ;;  %v2329_v60 = vld [vmem:[#allocation8 + $0x100] sm:$0xff] }
 0x25c   : > { %4321 = vmatpush1.bf16.msra.mxu1 %v4320_v59  ;;  %v2434_v59 = vld [vmem:[#allocation8 + $0x448] sm:$0xff] }
 0x25d   : > { %4322 = vmatprep.subr.bf16.mxu1 %v7018_v0  ;;  %7099 = vst [vmem:[#allocation44_spill] sm:$0xff] %v6118_v61  ;;  %4474 = vmatprep.subr.bf16.mxu0 %v6118_v61  ;;  %v2330_v31 = vld [vmem:[#allocation8 + $0x108] sm:$0xff] }
 0x25e   : > { %1620 = vmatmul.mubr.f32.gmra.mrb[24].mxu0 %v585_v39  ;;  %v4326_v19 = vpack.c.bf16 %v2330_v31, %v2329_v60 }
 0x25f   : > { %1624 = vmatprep.mubr.f32.mxu0 %v618_v55  ;;  %v2041_v55 = vld [vmem:[#allocation2 + $0x1] sm:$0xff]  ;;  %4476 = vmatpush3.bf16.msra.mxu0 %v6118_v61 }
 0x260   : > { %4324 = vmatpush1.bf16.msra.mxu1 %v4323_v50  ;;  %2512 = vmatprep.mubr.f32.mxu1 %v2041_v55  ;;  %v2435_v50 = vld [vmem:[#allocation8 + $0x450] sm:$0xff] }
 0x261   : > { %4325 = vmatprep.subr.bf16.mxu1 %v7018_v0 }
 0x262   : > { %1625 = vmatmul.mubr.f32.gmra.mrb[26].mxu0 %v586_v23  ;;  %v2429_v23 = vld [vmem:[#allocation8 + $0x420] sm:$0xff] }
 0x263   : > { %1629 = vmatprep.mubr.f32.mxu0 %v619_v51  ;;  %v2430_v51 = vld [vmem:[#allocation8 + $0x428] sm:$0xff] }
 0x266   : > { %1630 = vmatmul.mubr.f32.gmra.mrb[28].mxu0 %v587_v9  ;;  %v2009_v9 = vld [vmem:[#allocation2] sm:$0xff] }
 0x267   : > { %1634 = vmatprep.mubr.f32.mxu0 %v620_v25  ;;  %v595_v25 = vld [vmem:[#allocation2 + $0x138] sm:$0xff]  ;;  %2513 = vmatmul.mubr.f32.vlgmr.msra.gmra.mrb[32].mxu1 %v2009_v9 }
 0x268   : > { %4327 = vmatpush1.bf16.msra.mxu1 %v4326_v19 }
 0x269   : > { %4328 = vmatprep.subr.bf16.mxu1 %v7018_v0 }
 0x26a   : > { %1635 = vmatmul.mubr.f32.gmra.mrb[30].mxu0 %v588_v14  ;;  %v6127_v14 = vpack.c.bf16 %v2430_v51, %v2429_v23  ;;  %v631_v23 = vld [vmem:[#allocation2 + $0x169] sm:$0xff] }
 0x26b   : > { %1639 = vmatprep.mubr.f32.mxu0 %v621_v29  ;;  %v628_v29 = vld [vmem:[#allocation2 + $0x141] sm:$0xff] }
 0x26c   : > { %7100 = vst [vmem:[#allocation45_spill] sm:$0xff] %v6127_v14  ;;  %4478 = vmatprep.subr.bf16.mxu0 %v6127_v14 }
 0x26d   : > { %4480 = vmatpush3.bf16.msra.mxu0 %v6127_v14 }
 0x26e   : > { %1640 = vmatmul.mubr.f32.gmra.mrb[32].mxu0 %v589_v12  ;;  %v2042_v12 = vld [vmem:[#allocation2 + $0x9] sm:$0xff] }
 0x26f   : > { %1644 = vmatprep.mubr.f32.mxu0 %v622_v30  ;;  %v2431_v30 = vld [vmem:[#allocation8 + $0x430] sm:$0xff]  ;;  %2517 = vmatprep.mubr.f32.mxu1 %v2042_v12  ;;  %v599_v12 = vld [vmem:[#allocation2 + $0x168] sm:$0xff] }
 0x272   : > { %1645 = vmatmul.mubr.f32.gmra.mrb[34].mxu0 %v590_v32  ;;  %v2432_v32 = vld [vmem:[#allocation8 + $0x438] sm:$0xff] }
 0x273   : > { %1649 = vmatprep.mubr.f32.mxu0 %v623_v37  ;;  %v596_v37 = vld [vmem:[#allocation2 + $0x140] sm:$0xff] }
 0x276   : > { %1650 = vmatmul.mubr.f32.gmra.mrb[36].mxu0 %v591_v34  ;;  %v6131_v34 = vpack.c.bf16 %v2432_v32, %v2431_v30  ;;  %v632_v32 = vld [vmem:[#allocation2 + $0x171] sm:$0xff] }
 0x277   : > { %1654 = vmatprep.mubr.f32.mxu0 %v624_v24  ;;  %v629_v24 = vld [vmem:[#allocation2 + $0x151] sm:$0xff] }
 0x278   : > { %7101 = vst [vmem:[#allocation46_spill] sm:$0xff] %v6131_v34  ;;  %4482 = vmatprep.subr.bf16.mxu0 %v6131_v34 }
 0x279   : > { %4484 = vmatpush3.bf16.msra.mxu0 %v6131_v34 }
 0x27a   : > { %1655 = vmatmul.mubr.f32.gmra.mrb[38].mxu0 %v592_v6  ;;  %v6133_v6 = vld [vmem:[#allocation2 + $0x8] sm:$0xff] }
 0x27b   : > { %1659 = vmatprep.mubr.f32.mxu0 %v625_v27  ;;  %2518 = vmatmul.mubr.f32.gmra.mrb[34].mxu1 %v6133_v6 }
 0x27c   : > { %v6121_v39 = vpop.f32.mrb[0].mxu1 }
 0x27d   : > { %v6124_v43 = vpop.f32.mrb[1].mxu1 }
 0x27e   : > { %1660 = vmatmul.mubr.f32.gmra.mrb[40].mxu0 %v593_v54  ;;  %v597_v54 = vld [vmem:[#allocation2 + $0x150] sm:$0xff] }
 0x27f   : > { %1664 = vmatprep.mubr.f32.mxu0 %v626_v56  ;;  %v6142_v56 = vpack.c.bf16 %v2434_v59, %v2433_v33  ;;  %v2439_v59 = vld [vmem:[#allocation8 + $0x470] sm:$0xff] }
 0x280   : > { %v6137_v27 = vpop.f32.mrb[2].mxu1 }
 0x281   : > { %v6139_v8 = vpop.f32.mrb[3].mxu1  ;;  %7102 = vst [vmem:[#allocation47_spill] sm:$0xff] %v6142_v56  ;;  %4486 = vmatprep.subr.bf16.mxu0 %v6142_v56 }
 0x282   : > { %1665 = vmatmul.mubr.f32.gmra.mrb[42].mxu0 %v594_v26  ;;  %v2436_v26 = vld [vmem:[#allocation8 + $0x458] sm:$0xff] }
 0x283   : > { %1669 = vmatprep.mubr.f32.mxu0 %v627_v20  ;;  %v598_v20 = vld [vmem:[#allocation2 + $0x158] sm:$0xff]  ;;  %v6145_v55 = vpack.c.bf16 %v2436_v26, %v2435_v50  ;;  %4488 = vmatpush3.bf16.msra.mxu0 %v6142_v56  ;;  %v6167_v50 = vld [vmem:[#allocation2 + $0x181] sm:$0xff]  ;;  %v2333_v26 = vld [vmem:[#allocation8 + $0x120] sm:$0xff] }
 0x284   : > { %v6150_v51 = vpop.f32.mrb[4].mxu1  ;;  %7106 = vst [vmem:[#allocation51_spill] sm:$0xff] %v6167_v50 }
 0x285   : > { %7103 = vst [vmem:[#allocation48_spill] sm:$0xff] %v6145_v55  ;;  %4490 = vmatprep.subr.bf16.mxu0 %v6145_v55  ;;  %v6152_v9 = vpop.f32.mrb[5].mxu1 }
 0x286   : > { %1670 = vmatmul.mubr.f32.gmra.mrb[44].mxu0 %v595_v25  ;;  %v2437_v25 = vld [vmem:[#allocation8 + $0x460] sm:$0xff] }
 0x287   : > { %1674 = vmatprep.mubr.f32.mxu0 %v628_v29  ;;  %v2438_v29 = vld [vmem:[#allocation8 + $0x468] sm:$0xff]  ;;  %4492 = vmatpush3.bf16.msra.mxu0 %v6145_v55 }
 0x288   : > { %v6154_v30 = vpack.c.bf16 %v2438_v29, %v2437_v25  ;;  %v6163_v31 = vpop.f32.mrb[6].mxu1  ;;  %v6172_v25 = vld [vmem:[#allocation2 + $0x189] sm:$0xff]  ;;  %v635_v29 = vld [vmem:[#allocation2 + $0x199] sm:$0xff] }
 0x289   : > { %v6165_v19 = vpop.f32.mrb[7].mxu1  ;;  %7107 = vst [vmem:[#allocation52_spill] sm:$0xff] %v6172_v25 }
 0x28a   : > { %1675 = vmatmul.mubr.f32.gmra.mrb[46].mxu0 %v596_v37  ;;  %7104 = vst [vmem:[#allocation49_spill] sm:$0xff] %v6154_v30  ;;  %v2331_v37 = vld [vmem:[#allocation8 + $0x110] sm:$0xff]  ;;  %4494 = vmatprep.subr.bf16.mxu0 %v6154_v30 }
 0x28b   : > { %1679 = vmatprep.mubr.f32.mxu0 %v629_v24  ;;  %v2332_v24 = vld [vmem:[#allocation8 + $0x118] sm:$0xff]  ;;  %4496 = vmatpush3.bf16.msra.mxu0 %v6154_v30 }
 0x28c   : > { %v4329_v33 = vpack.c.bf16 %v2332_v24, %v2331_v37  ;;  %v603_v37 = vld [vmem:[#allocation2 + $0x198] sm:$0xff]  ;;  %v636_v24 = vld [vmem:[#allocation2 + $0x1a1] sm:$0xff] }
 0x28e   : > { %1680 = vmatmul.mubr.f32.gmra.mrb[48].mxu0 %v597_v54  ;;  %v2440_v54 = vld [vmem:[#allocation8 + $0x478] sm:$0xff]  ;;  %4330 = vmatpush1.bf16.msra.mxu1 %v4329_v33  ;;  %v2335_v33 = vld [vmem:[#allocation8 + $0x130] sm:$0xff] }
 0x28f   : > { %1684 = vmatprep.mubr.f32.mxu0 %v630_v2  ;;  %v600_v2 = vld [vmem:[#allocation2 + $0x170] sm:$0xff]  ;;  %v6158_v60 = vpack.c.bf16 %v2440_v54, %v2439_v59  ;;  %4331 = vmatprep.subr.bf16.mxu1 %v7018_v0  ;;  %v2336_v59 = vld [vmem:[#allocation8 + $0x138] sm:$0xff] }
 0x291   : > { %7105 = vst [vmem:[#allocation50_spill] sm:$0xff] %v6158_v60  ;;  %4498 = vmatprep.subr.bf16.mxu0 %v6158_v60 }
 0x292   : > { %1685 = vmatmul.mubr.f32.gmra.mrb[50].mxu0 %v598_v20  ;;  %v2334_v20 = vld [vmem:[#allocation8 + $0x128] sm:$0xff] }
 0x293   : > { %1689 = vmatprep.mubr.f32.mxu0 %v631_v23  ;;  %4500 = vmatpush3.bf16.msra.mxu0 %v6158_v60  ;;  %v4332_v23 = vpack.c.bf16 %v2334_v20, %v2333_v26  ;;  %v2338_v26 = vld [vmem:[#allocation8 + $0x148] sm:$0xff] }
 0x295   : > { %4333 = vmatpush1.bf16.msra.mxu1 %v4332_v23 }
 0x296   : > { %1690 = vmatmul.mubr.f32.gmra.mrb[52].mxu0 %v599_v12  ;;  %4334 = vmatprep.subr.bf16.mxu1 %v7018_v0  ;;  %v6176_v12 = vpop.f32.mrb[8].mxu1 }
 0x297   : > { %1694 = vmatprep.mubr.f32.mxu0 %v632_v32  ;;  %v6179_v32 = vpop.f32.mrb[9].mxu1 }
 0x298   : > { %v6182_v54 = vpop.f32.mrb[10].mxu1 }
 0x29a   : > { %1695 = vmatmul.mubr.f32.gmra.mrb[54].mxu0 %v600_v2  ;;  %v6185_v2 = vpop.f32.mrb[11].mxu1 }
 0x29b   : > { %1699 = vmatprep.mubr.f32.mxu0 %v6167_v50  ;;  %v6188_v23 = vpop.f32.mrb[12].mxu1  ;;  %v2342_v50 = vld [vmem:[#allocation8 + $0x168] sm:$0xff] }
 0x29e   : > { %1700 = vmatmul.mubr.f32.gmra.mrb[56].mxu0 %v5921_v40  ;;  %v4335_v40 = vpack.c.bf16 %v2336_v59, %v2335_v33 }
 0x29f   : > { %1704 = vmatprep.mubr.f32.mxu0 %v6172_v25  ;;  %v2343_v25 = vld [vmem:[#allocation8 + $0x170] sm:$0xff] }
 0x2a0   : > { %4336 = vmatpush1.bf16.msra.mxu1 %v4335_v40  ;;  %v2341_v40 = vld [vmem:[#allocation8 + $0x160] sm:$0xff] }
 0x2a1   : > { %4337 = vmatprep.subr.bf16.mxu1 %v7018_v0 }
 0x2a2   : > { %1705 = vmatmul.mubr.f32.gmra.mrb[58].mxu0 %v5927_v22  ;;  %v2337_v22 = vld [vmem:[#allocation8 + $0x140] sm:$0xff] }
 0x2a3   : > { %1709 = vmatprep.mubr.f32.mxu0 %v635_v29  ;;  %v4338_v20 = vpack.c.bf16 %v2338_v26, %v2337_v22  ;;  %v6190_v29 = vpop.f32.mrb[13].mxu1  ;;  %v4344_v22 = vpack.c.bf16 %v2342_v50, %v2341_v40  ;;  %v4350_v50 = vpack.c.bf16 %v2346_v42, %v2345_v52  ;;  %v4356_v42 = vpack.c.bf16 %v2350_v38, %v2349_v41 }
 0x2a4   : > { %v6193_v59 = vpop.f32.mrb[14].mxu1  ;;  %v4362_v38 = vpack.c.bf16 %v2354_v45, %v2353_v62  ;;  %v4368_v45 = vpack.c.bf16 %v2358_v35, %v2357_v10  ;;  %v6240_v62 = vld [vmem:[%s6987_s2] ss:$0 sm:$0xff] }
 0x2a5   : > { %4339 = vmatpush1.bf16.msra.mxu1 %v4338_v20 }
 0x2a6   : > { %1710 = vmatmul.mubr.f32.gmra.mrb[60].mxu0 %v603_v37  ;;  %4340 = vmatprep.subr.bf16.mxu1 %v7018_v0  ;;  %v2339_v37 = vld [vmem:[#allocation8 + $0x150] sm:$0xff] }
 0x2a7   : > { %1714 = vmatprep.mubr.f32.mxu0 %v636_v24  ;;  %v2340_v24 = vld [vmem:[#allocation8 + $0x158] sm:$0xff] }
 0x2a8   : > { %v4341_v33 = vpack.c.bf16 %v2340_v24, %v2339_v37  ;;  %v4347_v37 = vpack.c.bf16 %v2344_v49, %v2343_v25  ;;  %v4353_v49 = vpack.c.bf16 %v2348_v7, %v2347_v47  ;;  %v4359_v7 = vpack.c.bf16 %v2352_v5, %v2351_v28 }
 0x2a9   : > { %v4365_v5 = vpack.c.bf16 %v2356_v46, %v2355_v36 }
 0x2aa   : > { %1715 = vmatmul.mubr.f32.gmra.mrb[62].mxu0 %v6133_v6  ;;  %4342 = vmatpush1.bf16.msra.mxu1 %v4341_v33  ;;  %v6195_v6 = vpop.f32.mrb[15].mxu1 }
 0x2ab   : > { %4343 = vmatprep.subr.bf16.mxu1 %v7018_v0  ;;  %v6198_v26 = vpop.f32.mrb[16].mxu1 }
 0x2ac   : > { %v6200_v20 = vpop.f32.mrb[17].mxu1 }
 0x2ad   : > { %v6203_v24 = vpop.f32.mrb[18].mxu1 }
 0x2ae   : > { %4345 = vmatpush1.bf16.msra.mxu1 %v4344_v22  ;;  %v6205_v33 = vpop.f32.mrb[19].mxu1 }
 0x2af   : > { %4346 = vmatprep.subr.bf16.mxu1 %v7018_v0  ;;  %v6208_v40 = vpop.f32.mrb[20].mxu1 }
 0x2b0   : > { %v6210_v22 = vpop.f32.mrb[21].mxu1 }
 0x2b1   : > { %v6213_v25 = vpop.f32.mrb[22].mxu1 }
 0x2b2   : > { %4348 = vmatpush1.bf16.msra.mxu1 %v4347_v37  ;;  %v6215_v37 = vpop.f32.mrb[23].mxu1 }
 0x2b3   : > { %4349 = vmatprep.subr.bf16.mxu1 %v7018_v0  ;;  %v6218_v52 = vpop.f32.mrb[24].mxu1 }
 0x2b6   : > { %4351 = vmatpush1.bf16.msra.mxu1 %v4350_v50  ;;  %v6220_v50 = vpop.f32.mrb[25].mxu1 }
 0x2b7   : > { %4352 = vmatprep.subr.bf16.mxu1 %v7018_v0  ;;  %v6223_v47 = vpop.f32.mrb[26].mxu1 }
 0x2ba   : > { %4354 = vmatpush1.bf16.msra.mxu1 %v4353_v49  ;;  %v6225_v49 = vpop.f32.mrb[27].mxu1 }
 0x2bb   : > { %4355 = vmatprep.subr.bf16.mxu1 %v7018_v0  ;;  %v6228_v41 = vpop.f32.mrb[28].mxu1 }
 0x2be   : > { %4357 = vmatpush1.bf16.msra.mxu1 %v4356_v42  ;;  %v6230_v42 = vpop.f32.mrb[29].mxu1 }
 0x2bf   : > { %4358 = vmatprep.subr.bf16.mxu1 %v7018_v0 }
 0x2c2   : > { %4360 = vmatpush1.bf16.msra.mxu1 %v4359_v7 }
 0x2c3   : > { %4361 = vmatprep.subr.bf16.mxu1 %v7018_v0 }
 0x2c6   : > { %4363 = vmatpush1.bf16.msra.mxu1 %v4362_v38 }
 0x2c7   : > { %4364 = vmatprep.subr.bf16.mxu1 %v7018_v0 }
 0x2ca   : > { %4366 = vmatpush1.bf16.msra.mxu1 %v4365_v5  ;;  %v2359_v5 = vld [vmem:[#allocation8 + $0x1f0] sm:$0xff] }
 0x2cb   : > { %4367 = vmatprep.subr.bf16.mxu1 %v7018_v0  ;;  %v4371_v4 = vpack.c.bf16 %v2360_v15, %v2359_v5 }
 0x2ce   : > { %4369 = vmatpush1.bf16.msra.mxu1 %v4368_v45 }
 0x2cf   : > { %4370 = vmatprep.subr.bf16.mxu1 %v7018_v0 }
 0x2d2   : > { %4372 = vmatpush1.bf16.msra.mxu1 %v4371_v4 }
 0x2d3   : > { %4373 = vmatprep.subr.bf16.mxu1 %v7018_v0 }
 0x2eb   : > { %v6233_v28 = vpop.f32.mrb[30].mxu1 }
 0x2ec   : > { %v6235_v7 = vpop.f32.mrb[31].mxu1 }
 0x301   : > { %v1561_v38 = vpop.f32.mrb[0].mxu0 }
 0x302   : > { %v4517_v46 = vadd.f32 %v6240_v62, %v1561_v38  ;;  %v1563_v36 = vpop.f32.mrb[1].mxu0 }
 0x304   : > { %v1787_v63 = vadd.f32 %v4517_v46, %v6124_v43 }
 0x305   : > { %v1566_v58 = vpop.f32.mrb[2].mxu0 }
 0x306   : > { %v1945_v35 = vmax.f32 %v1787_v63, 0.0  ;;  %v4518_v10 = vadd.f32 %v6240_v62, %v1566_v58  ;;  %v1568_v53 = vpop.f32.mrb[3].mxu0 }
 0x308   : > { %1977 = vst [vmem:[#allocation2 + $0x19] sm:$0xff] %v1945_v35  ;;  %v1792_v45 = vadd.f32 %v4518_v10, %v6121_v39  ;;  %2522 = vmatprep.mubr.f32.mxu1 %v1945_v35 }
 0x309   : > { %v1571_v3 = vpop.f32.mrb[4].mxu0 }
 0x30a   : > { %v1946_v38 = vmax.f32 %v1792_v45, 0.0  ;;  %v4519_v36 = vadd.f32 %v6240_v62, %v1571_v3  ;;  %v1573_v17 = vpop.f32.mrb[5].mxu0 }
 0x30c   : > { %1978 = vst [vmem:[#allocation2 + $0x21] sm:$0xff] %v1946_v38  ;;  %v1797_v15 = vadd.f32 %v4519_v36, %v6139_v8 }
 0x30d   : > { %v1576_v43 = vpop.f32.mrb[6].mxu0 }
 0x30e   : > { %v1947_v4 = vmax.f32 %v1797_v15, 0.0  ;;  %v4520_v63 = vadd.f32 %v6240_v62, %v1576_v43  ;;  %v1578_v58 = vpop.f32.mrb[7].mxu0 }
 0x30f   : > { %v6251_v53 = vld [vmem:[#allocation2 + $0x18] sm:$0xff] }
 0x310   : > { %1979 = vst [vmem:[#allocation2 + $0x31] sm:$0xff] %v1947_v4  ;;  %v1802_v46 = vadd.f32 %v4520_v63, %v6137_v27  ;;  %2523 = vmatmul.mubr.f32.gmra.mrb[36].mxu1 %v6251_v53 }
 0x311   : > { %v1581_v39 = vpop.f32.mrb[8].mxu0  ;;  %2527 = vmatprep.mubr.f32.mxu1 %v1946_v38 }
 0x312   : > { %v1948_v5 = vmax.f32 %v1802_v46, 0.0  ;;  %v4521_v17 = vadd.f32 %v6240_v62, %v1581_v39  ;;  %v1583_v3 = vpop.f32.mrb[9].mxu0 }
 0x313   : > { %v6256_v35 = vld [vmem:[#allocation2 + $0x20] sm:$0xff] }
 0x314   : > { %1980 = vst [vmem:[#allocation2 + $0x39] sm:$0xff] %v1948_v5  ;;  %v1807_v8 = vadd.f32 %v4521_v17, %v6152_v9  ;;  %2528 = vmatmul.mubr.f32.gmra.mrb[38].mxu1 %v6256_v35 }
 0x315   : > { %v1586_v10 = vpop.f32.mrb[10].mxu0  ;;  %2532 = vmatprep.mubr.f32.mxu1 %v1947_v4 }
 0x316   : > { %v1949_v45 = vmax.f32 %v1807_v8, 0.0  ;;  %v4522_v27 = vadd.f32 %v6240_v62, %v1586_v10  ;;  %v1588_v36 = vpop.f32.mrb[11].mxu0 }
 0x317   : > { %v6261_v15 = vld [vmem:[#allocation2 + $0x30] sm:$0xff] }
 0x318   : > { %1981 = vst [vmem:[#allocation2 + $0x49] sm:$0xff] %v1949_v45  ;;  %v1812_v38 = vadd.f32 %v4522_v27, %v6150_v51  ;;  %2533 = vmatmul.mubr.f32.gmra.mrb[40].mxu1 %v6261_v15 }
 0x319   : > { %v1591_v43 = vpop.f32.mrb[12].mxu0  ;;  %2537 = vmatprep.mubr.f32.mxu1 %v1948_v5 }
 0x31a   : > { %v1950_v63 = vmax.f32 %v1812_v38, 0.0  ;;  %v4523_v9 = vadd.f32 %v6240_v62, %v1591_v43  ;;  %v1593_v58 = vpop.f32.mrb[13].mxu0 }
 0x31b   : > { %v6266_v46 = vld [vmem:[#allocation2 + $0x32] sm:$0xff]  ;;  %v6270_v39 = vld [vmem:[#allocation2 + $0x3a] sm:$0xff] }
 0x31c   : > { %v6268_v4 = vld [vmem:[#allocation2 + $0x38] sm:$0xff]  ;;  %1982 = vst [vmem:[#allocation2 + $0x51] sm:$0xff] %v1950_v63  ;;  %v1817_v17 = vadd.f32 %v4523_v9, %v6165_v19  ;;  %4005 = vmatprep.mubr.f32.mxu0 %v6266_v46 }
 0x31d   : > { %2538 = vmatmul.mubr.f32.gmra.mrb[42].mxu1 %v6268_v4  ;;  %v1596_v51 = vpop.f32.mrb[14].mxu0  ;;  %4006 = vmatmul.mubr.f32.vlgmr.msra.gmra.mrb[64].mxu0 %v6270_v39 }
 0x31e   : > { %2542 = vmatprep.mubr.f32.mxu1 %v1949_v45  ;;  %v1951_v5 = vmax.f32 %v1817_v17, 0.0  ;;  %v4524_v3 = vadd.f32 %v6240_v62, %v1596_v51  ;;  %v1598_v8 = vpop.f32.mrb[15].mxu0 }
 0x31f   : > { %v6277_v10 = vld [vmem:[#allocation2 + $0x48] sm:$0xff] }
 0x320   : > { %1983 = vst [vmem:[#allocation2 + $0x61] sm:$0xff] %v1951_v5  ;;  %v1822_v27 = vadd.f32 %v4524_v3, %v6163_v31 }
 0x321   : > { %2543 = vmatmul.mubr.f32.gmra.mrb[44].mxu1 %v6277_v10  ;;  %v1601_v19 = vpop.f32.mrb[16].mxu0 }
 0x322   : > { %2547 = vmatprep.mubr.f32.mxu1 %v1950_v63  ;;  %v1952_v36 = vmax.f32 %v1822_v27, 0.0  ;;  %v4525_v38 = vadd.f32 %v6240_v62, %v1601_v19  ;;  %v1603_v43 = vpop.f32.mrb[17].mxu0 }
 0x323   : > { %v6282_v9 = vld [vmem:[#allocation2 + $0x4a] sm:$0xff]  ;;  %v6286_v58 = vld [vmem:[#allocation2 + $0x52] sm:$0xff] }
 0x324   : > { %v6284_v45 = vld [vmem:[#allocation2 + $0x50] sm:$0xff]  ;;  %1984 = vst [vmem:[#allocation2 + $0x69] sm:$0xff] %v1952_v36  ;;  %v1827_v17 = vadd.f32 %v4525_v38, %v6179_v32  ;;  %4008 = vmatprep.mubr.f32.mxu0 %v6282_v9 }
 0x325   : > { %2548 = vmatmul.mubr.f32.gmra.mrb[46].mxu1 %v6284_v45  ;;  %v1606_v31 = vpop.f32.mrb[18].mxu0  ;;  %4009 = vmatmul.mubr.f32.gmra.mrb[66].mxu0 %v6286_v58 }
 0x326   : > { %2552 = vmatprep.mubr.f32.mxu1 %v1951_v5  ;;  %v1953_v63 = vmax.f32 %v1827_v17, 0.0  ;;  %v4526_v51 = vadd.f32 %v6240_v62, %v1606_v31  ;;  %v1608_v3 = vpop.f32.mrb[19].mxu0 }
 0x327   : > { %v6293_v8 = vld [vmem:[#allocation2 + $0x60] sm:$0xff] }
 0x328   : > { %1985 = vst [vmem:[#allocation2 + $0x79] sm:$0xff] %v1953_v63  ;;  %v1832_v27 = vadd.f32 %v4526_v51, %v6176_v12 }
 0x329   : > { %2553 = vmatmul.mubr.f32.gmra.mrb[48].mxu1 %v6293_v8  ;;  %v1611_v32 = vpop.f32.mrb[20].mxu0 }
 0x32a   : > { %2557 = vmatprep.mubr.f32.mxu1 %v1952_v36  ;;  %v1954_v19 = vmax.f32 %v1832_v27, 0.0  ;;  %v4527_v38 = vadd.f32 %v6240_v62, %v1611_v32  ;;  %v1613_v43 = vpop.f32.mrb[21].mxu0 }
 0x32b   : > { %v6298_v0 = vld [vmem:[#allocation2 + $0x62] sm:$0xff]  ;;  %v6302_v17 = vld [vmem:[#allocation2 + $0x6a] sm:$0xff] }
 0x32c   : > { %v6300_v5 = vld [vmem:[#allocation2 + $0x68] sm:$0xff]  ;;  %1986 = vst [vmem:[#allocation2 + $0x81] sm:$0xff] %v1954_v19  ;;  %v1837_v31 = vadd.f32 %v4527_v38, %v6185_v2  ;;  %4011 = vmatprep.mubr.f32.mxu0 %v6298_v0 }
 0x32d   : > { %2558 = vmatmul.mubr.f32.gmra.mrb[50].mxu1 %v6300_v5  ;;  %v1616_v12 = vpop.f32.mrb[22].mxu0  ;;  %4012 = vmatmul.mubr.f32.gmra.mrb[68].mxu0 %v6302_v17 }
 0x32e   : > { %2562 = vmatprep.mubr.f32.mxu1 %v1953_v63  ;;  %v1955_v36 = vmax.f32 %v1837_v31, 0.0  ;;  %v4528_v51 = vadd.f32 %v6240_v62, %v1616_v12  ;;  %v1618_v3 = vpop.f32.mrb[23].mxu0 }
 0x32f   : > { %v6309_v27 = vld [vmem:[#allocation2 + $0x78] sm:$0xff] }
 0x330   : > { %1987 = vst [vmem:[#allocation2 + $0x91] sm:$0xff] %v1955_v36  ;;  %v1842_v32 = vadd.f32 %v4528_v51, %v6182_v54 }
 0x331   : > { %2563 = vmatmul.mubr.f32.gmra.mrb[52].mxu1 %v6309_v27  ;;  %v1621_v2 = vpop.f32.mrb[24].mxu0 }
 0x332   : > { %2567 = vmatprep.mubr.f32.mxu1 %v1954_v19  ;;  %v1956_v38 = vmax.f32 %v1842_v32, 0.0  ;;  %v4529_v43 = vadd.f32 %v6240_v62, %v1621_v2  ;;  %v1623_v57 = vpop.f32.mrb[25].mxu0 }
 0x333   : > { %v6314_v21 = vld [vmem:[#allocation2 + $0x7a] sm:$0xff]  ;;  %v6318_v31 = vld [vmem:[#allocation2 + $0x82] sm:$0xff] }
 0x334   : > { %v6316_v63 = vld [vmem:[#allocation2 + $0x80] sm:$0xff]  ;;  %1988 = vst [vmem:[#allocation2 + $0x99] sm:$0xff] %v1956_v38  ;;  %v1847_v12 = vadd.f32 %v4529_v43, %v6190_v29  ;;  %4014 = vmatprep.mubr.f32.mxu0 %v6314_v21 }
 0x335   : > { %2568 = vmatmul.mubr.f32.gmra.mrb[54].mxu1 %v6316_v63  ;;  %v1626_v54 = vpop.f32.mrb[26].mxu0  ;;  %4015 = vmatmul.mubr.f32.gmra.mrb[70].mxu0 %v6318_v31 }
 0x336   : > { %2572 = vmatprep.mubr.f32.mxu1 %v1955_v36  ;;  %v1957_v19 = vmax.f32 %v1847_v12, 0.0  ;;  %v4530_v57 = vadd.f32 %v6240_v62, %v1626_v54  ;;  %v1628_v51 = vpop.f32.mrb[27].mxu0 }
 0x337   : > { %v6325_v3 = vld [vmem:[#allocation2 + $0x90] sm:$0xff] }
 0x338   : > { %1989 = vst [vmem:[#allocation2 + $0xa9] sm:$0xff] %v1957_v19  ;;  %v1852_v32 = vadd.f32 %v4530_v57, %v6188_v23 }
 0x339   : > { %2573 = vmatmul.mubr.f32.gmra.mrb[56].mxu1 %v6325_v3  ;;  %v1631_v29 = vpop.f32.mrb[28].mxu0 }
 0x33a   : > { %2577 = vmatprep.mubr.f32.mxu1 %v1956_v38  ;;  %v1958_v2 = vmax.f32 %v1852_v32, 0.0  ;;  %v4531_v43 = vadd.f32 %v6240_v62, %v1631_v29  ;;  %v1633_v13 = vpop.f32.mrb[29].mxu0 }
 0x33b   : > { %v6330_v11 = vld [vmem:[#allocation2 + $0x92] sm:$0xff]  ;;  %v6334_v12 = vld [vmem:[#allocation2 + $0x9a] sm:$0xff] }
 0x33c   : > { %v6332_v36 = vld [vmem:[#allocation2 + $0x98] sm:$0xff]  ;;  %1990 = vst [vmem:[#allocation2 + $0xb1] sm:$0xff] %v1958_v2  ;;  %v1857_v54 = vadd.f32 %v4531_v43, %v6195_v6  ;;  %4017 = vmatprep.mubr.f32.mxu0 %v6330_v11 }
 0x33d   : > { %2578 = vmatmul.mubr.f32.gmra.mrb[58].mxu1 %v6332_v36  ;;  %v1636_v23 = vpop.f32.mrb[30].mxu0  ;;  %4018 = vmatmul.mubr.f32.gmra.mrb[72].mxu0 %v6334_v12 }
 0x33e   : > { %2582 = vmatprep.mubr.f32.mxu1 %v1957_v19  ;;  %v1959_v38 = vmax.f32 %v1857_v54, 0.0  ;;  %v4532_v13 = vadd.f32 %v6240_v62, %v1636_v23  ;;  %v1638_v57 = vpop.f32.mrb[31].mxu0 }
 0x33f   : > { %v6341_v51 = vld [vmem:[#allocation2 + $0xa8] sm:$0xff] }
 0x340   : > { %1991 = vst [vmem:[#allocation2 + $0xc1] sm:$0xff] %v1959_v38  ;;  %v1862_v32 = vadd.f32 %v4532_v13, %v6193_v59 }
 0x341   : > { %2583 = vmatmul.mubr.f32.gmra.mrb[60].mxu1 %v6341_v51  ;;  %v1641_v6 = vpop.f32.mrb[32].mxu0 }
 0x342   : > { %2587 = vmatprep.mubr.f32.mxu1 %v1958_v2  ;;  %v1960_v29 = vmax.f32 %v1862_v32, 0.0  ;;  %v4533_v43 = vadd.f32 %v6240_v62, %v1641_v6  ;;  %v1643_v18 = vpop.f32.mrb[33].mxu0 }
 0x343   : > { %v6346_v1 = vld [vmem:[#allocation2 + $0xaa] sm:$0xff]  ;;  %v6350_v54 = vld [vmem:[#allocation2 + $0xb2] sm:$0xff] }
 0x344   : > { %v6348_v19 = vld [vmem:[#allocation2 + $0xb0] sm:$0xff]  ;;  %1992 = vst [vmem:[#allocation2 + $0xc9] sm:$0xff] %v1960_v29  ;;  %v1867_v23 = vadd.f32 %v4533_v43, %v6200_v20  ;;  %4020 = vmatprep.mubr.f32.mxu0 %v6346_v1 }
 0x345   : > { %2588 = vmatmul.mubr.f32.gmra.mrb[62].mxu1 %v6348_v19  ;;  %v1646_v59 = vpop.f32.mrb[34].mxu0  ;;  %4021 = vmatmul.mubr.f32.gmra.mrb[74].mxu0 %v6350_v54 }
 0x346   : > { %2592 = vmatprep.mubr.f32.mxu1 %v1959_v38  ;;  %v1961_v2 = vmax.f32 %v1867_v23, 0.0  ;;  %v4534_v18 = vadd.f32 %v6240_v62, %v1646_v59  ;;  %v1648_v13 = vpop.f32.mrb[35].mxu0 }
 0x347   : > { %v6357_v57 = vld [vmem:[#allocation2 + $0xc0] sm:$0xff] }
 0x348   : > { %1993 = vst [vmem:[#allocation2 + $0xd9] sm:$0xff] %v1961_v2  ;;  %v1872_v32 = vadd.f32 %v4534_v18, %v6198_v26 }
 0x349   : > { %2593 = vmatmul.mubr.f32.gmra.mrb[64].mxu1 %v6357_v57  ;;  %v1651_v20 = vpop.f32.mrb[36].mxu0 }
 0x34a   : > { %2597 = vmatprep.mubr.f32.mxu1 %v1960_v29  ;;  %v1962_v6 = vmax.f32 %v1872_v32, 0.0  ;;  %v4535_v43 = vadd.f32 %v6240_v62, %v1651_v20  ;;  %v1653_v48 = vpop.f32.mrb[37].mxu0 }
 0x34b   : > { %v6362_v44 = vld [vmem:[#allocation2 + $0xc2] sm:$0xff]  ;;  %v6366_v23 = vld [vmem:[#allocation2 + $0xca] sm:$0xff] }
 0x34c   : > { %v6364_v38 = vld [vmem:[#allocation2 + $0xc8] sm:$0xff]  ;;  %1994 = vst [vmem:[#allocation2 + $0xe1] sm:$0xff] %v1962_v6  ;;  %v1877_v59 = vadd.f32 %v4535_v43, %v6205_v33  ;;  %4023 = vmatprep.mubr.f32.mxu0 %v6362_v44 }
 0x34d   : > { %2598 = vmatmul.mubr.f32.gmra.mrb[66].mxu1 %v6364_v38  ;;  %v1656_v26 = vpop.f32.mrb[38].mxu0  ;;  %4024 = vmatmul.mubr.f32.gmra.mrb[76].mxu0 %v6366_v23 }
 0x34e   : > { %2602 = vmatprep.mubr.f32.mxu1 %v1961_v2  ;;  %v1963_v29 = vmax.f32 %v1877_v59, 0.0  ;;  %v4536_v48 = vadd.f32 %v6240_v62, %v1656_v26  ;;  %v1658_v18 = vpop.f32.mrb[39].mxu0 }
 0x34f   : > { %v6373_v13 = vld [vmem:[#allocation2 + $0xd8] sm:$0xff] }
 0x350   : > { %1995 = vst [vmem:[#allocation2 + $0xf1] sm:$0xff] %v1963_v29  ;;  %v1882_v32 = vadd.f32 %v4536_v48, %v6203_v24 }
 0x351   : > { %2603 = vmatmul.mubr.f32.gmra.mrb[68].mxu1 %v6373_v13  ;;  %v1661_v33 = vpop.f32.mrb[40].mxu0 }
 0x352   : > { %2607 = vmatprep.mubr.f32.mxu1 %v1962_v6  ;;  %v1964_v20 = vmax.f32 %v1882_v32, 0.0  ;;  %v4537_v43 = vadd.f32 %v6240_v62, %v1661_v33  ;;  %v1663_v60 = vpop.f32.mrb[41].mxu0 }
 0x353   : > { %v6378_v30 = vld [vmem:[#allocation2 + $0xda] sm:$0xff]  ;;  %v6382_v59 = vld [vmem:[#allocation2 + $0xe2] sm:$0xff] }
 0x354   : > { %v6380_v2 = vld [vmem:[#allocation2 + $0xe0] sm:$0xff]  ;;  %1996 = vst [vmem:[#allocation2 + $0xf9] sm:$0xff] %v1964_v20  ;;  %v1887_v26 = vadd.f32 %v4537_v43, %v6210_v22  ;;  %4026 = vmatprep.mubr.f32.mxu0 %v6378_v30 }
 0x355   : > { %2608 = vmatmul.mubr.f32.gmra.mrb[70].mxu1 %v6380_v2  ;;  %v1666_v24 = vpop.f32.mrb[42].mxu0  ;;  %4027 = vmatmul.mubr.f32.gmra.mrb[78].mxu0 %v6382_v59 }
 0x356   : > { %2612 = vmatprep.mubr.f32.mxu1 %v1963_v29  ;;  %v1965_v6 = vmax.f32 %v1887_v26, 0.0  ;;  %v4538_v60 = vadd.f32 %v6240_v62, %v1666_v24  ;;  %v1668_v48 = vpop.f32.mrb[43].mxu0 }
 0x357   : > { %v6389_v18 = vld [vmem:[#allocation2 + $0xf0] sm:$0xff] }
 0x358   : > { %1997 = vst [vmem:[#allocation2 + $0x109] sm:$0xff] %v1965_v6  ;;  %v1892_v32 = vadd.f32 %v4538_v60, %v6208_v40 }
 0x359   : > { %2613 = vmatmul.mubr.f32.gmra.mrb[72].mxu1 %v6389_v18  ;;  %v1671_v22 = vpop.f32.mrb[44].mxu0 }
 0x35a   : > { %2617 = vmatprep.mubr.f32.mxu1 %v1964_v20  ;;  %v1966_v33 = vmax.f32 %v1892_v32, 0.0  ;;  %v4539_v43 = vadd.f32 %v6240_v62, %v1671_v22  ;;  %v1673_v55 = vpop.f32.mrb[45].mxu0 }
 0x35b   : > { %v6394_v56 = vld [vmem:[#allocation2 + $0xf2] sm:$0xff]  ;;  %v6398_v26 = vld [vmem:[#allocation2 + $0xfa] sm:$0xff] }
 0x35c   : > { %v6396_v29 = vld [vmem:[#allocation2 + $0xf8] sm:$0xff]  ;;  %1998 = vst [vmem:[#allocation2 + $0x111] sm:$0xff] %v1966_v33  ;;  %v1897_v24 = vadd.f32 %v4539_v43, %v6215_v37  ;;  %4029 = vmatprep.mubr.f32.mxu0 %v6394_v56 }
 0x35d   : > { %2618 = vmatmul.mubr.f32.gmra.mrb[74].mxu1 %v6396_v29  ;;  %v1676_v40 = vpop.f32.mrb[46].mxu0  ;;  %4030 = vmatmul.mubr.f32.gmra.mrb[80].mxu0 %v6398_v26 }
 0x35e   : > { %2622 = vmatprep.mubr.f32.mxu1 %v1965_v6  ;;  %v1967_v20 = vmax.f32 %v1897_v24, 0.0  ;;  %v4540_v55 = vadd.f32 %v6240_v62, %v1676_v40  ;;  %v1678_v60 = vpop.f32.mrb[47].mxu0 }
 0x35f   : > { %v6405_v48 = vld [vmem:[#allocation2 + $0x108] sm:$0xff] }
 0x360   : > { %1999 = vst [vmem:[#allocation2 + $0x121] sm:$0xff] %v1967_v20  ;;  %v1902_v32 = vadd.f32 %v4540_v55, %v6213_v25 }
 0x361   : > { %2623 = vmatmul.mubr.f32.gmra.mrb[76].mxu1 %v6405_v48  ;;  %v1681_v37 = vpop.f32.mrb[48].mxu0 }
 0x362   : > { %2627 = vmatprep.mubr.f32.mxu1 %v1966_v33  ;;  %v1968_v22 = vmax.f32 %v1902_v32, 0.0  ;;  %v4541_v43 = vadd.f32 %v6240_v62, %v1681_v37  ;;  %v1683_v34 = vpop.f32.mrb[49].mxu0 }
 0x363   : > { %v6410_v14 = vld [vmem:[#allocation2 + $0x10a] sm:$0xff]  ;;  %v6414_v24 = vld [vmem:[#allocation2 + $0x112] sm:$0xff] }
 0x364   : > { %v6412_v6 = vld [vmem:[#allocation2 + $0x110] sm:$0xff]  ;;  %2000 = vst [vmem:[#allocation2 + $0x129] sm:$0xff] %v1968_v22  ;;  %v1907_v40 = vadd.f32 %v4541_v43, %v6220_v50  ;;  %4032 = vmatprep.mubr.f32.mxu0 %v6410_v14 }
 0x365   : > { %2628 = vmatmul.mubr.f32.gmra.mrb[78].mxu1 %v6412_v6  ;;  %v1686_v25 = vpop.f32.mrb[50].mxu0  ;;  %4033 = vmatmul.mubr.f32.gmra.mrb[82].mxu0 %v6414_v24 }
 0x366   : > { %2632 = vmatprep.mubr.f32.mxu1 %v1967_v20  ;;  %v6420_v33 = vmax.f32 %v1907_v40, 0.0  ;;  %v4542_v34 = vadd.f32 %v6240_v62, %v1686_v25  ;;  %v1688_v55 = vpop.f32.mrb[51].mxu0 }
 0x367   : > { %v6423_v60 = vld [vmem:[#allocation2 + $0x120] sm:$0xff] }
 0x368   : > { %7108 = vst [vmem:[#allocation53_spill] sm:$0xff] %v6420_v33  ;;  %2001 = vst [vmem:[#allocation2 + $0x139] sm:$0xff] %v6420_v33  ;;  %v1912_v32 = vadd.f32 %v4542_v34, %v6218_v52 }
 0x369   : > { %2633 = vmatmul.mubr.f32.gmra.mrb[80].mxu1 %v6423_v60  ;;  %v1691_v50 = vpop.f32.mrb[52].mxu0 }
 0x36a   : > { %2637 = vmatprep.mubr.f32.mxu1 %v1968_v22  ;;  %v6428_v37 = vmax.f32 %v1912_v32, 0.0  ;;  %v4543_v43 = vadd.f32 %v6240_v62, %v1691_v50  ;;  %v1693_v20 = vpop.f32.mrb[53].mxu0 }
 0x36b   : > { %v6431_v40 = vld [vmem:[#allocation2 + $0x122] sm:$0xff]  ;;  %v6435_v25 = vld [vmem:[#allocation2 + $0x12a] sm:$0xff] }
 0x36c   : > { %7109 = vst [vmem:[#allocation54_spill] sm:$0xff] %v6428_v37  ;;  %v6433_v61 = vld [vmem:[#allocation2 + $0x128] sm:$0xff]  ;;  %2002 = vst [vmem:[#allocation2 + $0x141] sm:$0xff] %v6428_v37  ;;  %v1917_v55 = vadd.f32 %v4543_v43, %v6225_v49  ;;  %4035 = vmatprep.mubr.f32.mxu0 %v6431_v40 }
 0x36d   : > { %2638 = vmatmul.mubr.f32.gmra.mrb[82].mxu1 %v6433_v61  ;;  %v1696_v52 = vpop.f32.mrb[54].mxu0  ;;  %4036 = vmatmul.mubr.f32.gmra.mrb[84].mxu0 %v6435_v25 }
 0x36e   : > { %2642 = vmatprep.mubr.f32.mxu1 %v6420_v33  ;;  %v6443_v22 = vmax.f32 %v1917_v55, 0.0  ;;  %v4544_v34 = vadd.f32 %v6240_v62, %v1696_v52  ;;  %v1698_v32 = vpop.f32.mrb[55].mxu0 }
 0x36f   : > { %v6446_v50 = vld [vmem:[#allocation2 + $0x138] sm:$0xff] }
 0x370   : > { %7110 = vst [vmem:[#allocation55_spill] sm:$0xff] %v6443_v22  ;;  %2003 = vst [vmem:[#allocation2 + $0x151] sm:$0xff] %v6443_v22  ;;  %v1922_v49 = vadd.f32 %v4544_v34, %v6223_v47 }
 0x371   : > { %2643 = vmatmul.mubr.f32.gmra.mrb[84].mxu1 %v6446_v50  ;;  %v1701_v43 = vpop.f32.mrb[56].mxu0 }
 0x372   : > { %2647 = vmatprep.mubr.f32.mxu1 %v6428_v37  ;;  %v6452_v20 = vmax.f32 %v1922_v49, 0.0  ;;  %v4545_v33 = vadd.f32 %v6240_v62, %v1701_v43  ;;  %v1703_v55 = vpop.f32.mrb[57].mxu0 }
 0x373   : > { %v6455_v16 = vld [vmem:[#allocation2 + $0x13a] sm:$0xff]  ;;  %v6459_v32 = vld [vmem:[#allocation2 + $0x142] sm:$0xff] }
 0x374   : > { %7111 = vst [vmem:[#allocation56_spill] sm:$0xff] %v6452_v20  ;;  %7112 = vst [vmem:[#allocation57_spill] sm:$0xff] %v6455_v16  ;;  %v6457_v52 = vld [vmem:[#allocation2 + $0x140] sm:$0xff]  ;;  %v1927_v47 = vadd.f32 %v4545_v33, %v6230_v42  ;;  %4038 = vmatprep.mubr.f32.mxu0 %v6455_v16 }
 0x375   : > { %7113 = vst [vmem:[#allocation58_spill] sm:$0xff] %v6459_v32  ;;  %2004 = vst [vmem:[#allocation2 + $0x159] sm:$0xff] %v6452_v20  ;;  %2648 = vmatmul.mubr.f32.gmra.mrb[86].mxu1 %v6457_v52  ;;  %v1706_v34 = vpop.f32.mrb[58].mxu0  ;;  %4039 = vmatmul.mubr.f32.gmra.mrb[86].mxu0 %v6459_v32 }
 0x376   : > { %2652 = vmatprep.mubr.f32.mxu1 %v6443_v22  ;;  %v6467_v49 = vmax.f32 %v1927_v47, 0.0  ;;  %v4546_v43 = vadd.f32 %v6240_v62, %v1706_v34  ;;  %v1708_v55 = vpop.f32.mrb[59].mxu0 }
 0x377   : > { %v6470_v37 = vld [vmem:[#allocation2 + $0x150] sm:$0xff] }
 0x378   : > { %7114 = vst [vmem:[#allocation59_spill] sm:$0xff] %v6467_v49  ;;  %2005 = vst [vmem:[#allocation2 + $0x169] sm:$0xff] %v6467_v49  ;;  %v1932_v42 = vadd.f32 %v4546_v43, %v6228_v41 }
 0x379   : > { %2653 = vmatmul.mubr.f32.gmra.mrb[88].mxu1 %v6470_v37  ;;  %v1711_v33 = vpop.f32.mrb[60].mxu0 }
 0x37a   : > { %2657 = vmatprep.mubr.f32.mxu1 %v6452_v20  ;;  %v6476_v16 = vmax.f32 %v1932_v42, 0.0  ;;  %v4547_v22 = vadd.f32 %v6240_v62, %v1711_v33  ;;  %v1713_v47 = vpop.f32.mrb[61].mxu0 }
 0x37b   : > { %v2362_v47 = vld [vmem:[#allocation8 + $0x208] sm:$0xff] }
 0x37c   : > { %7115 = vst [vmem:[#allocation60_spill] sm:$0xff] %v6476_v16  ;;  %v6479_v32 = vld [vmem:[#allocation2 + $0x158] sm:$0xff]  ;;  %2006 = vst [vmem:[#allocation2 + $0x171] sm:$0xff] %v6476_v16  ;;  %v6483_v34 = vadd.f32 %v4547_v22, %v6235_v7  ;;  %v2361_v22 = vld [vmem:[#allocation8 + $0x200] sm:$0xff] }
 0x37d   : > { %2658 = vmatmul.mubr.f32.gmra.mrb[90].mxu1 %v6479_v32  ;;  %v1716_v41 = vpop.f32.mrb[62].mxu0 }
 0x37e   : > { %7116 = vst [vmem:[#allocation61_spill] sm:$0xff] %v6483_v34  ;;  %2662 = vmatprep.mubr.f32.mxu1 %v6467_v49  ;;  %v7053_v43 = vmax.f32 %v6483_v34, 0.0  ;;  %v4548_v55 = vadd.f32 %v6240_v62, %v1716_v41  ;;  %v1718_v42 = vpop.f32.mrb[63].mxu0  ;;  %v2073_v62 = vld [vmem:[#allocation2 + $0x2] sm:$0xff]  ;;  %v7118_v34 = vmov 0.0|0.0  }
 0x37f   : > { %v6489_v20 = vld [vmem:[#allocation2 + $0x168] sm:$0xff]  ;;  %v2363_v41 = vld [vmem:[#allocation8 + $0x210] sm:$0xff] }
 0x380   : > { %7117 = vst [vmem:[#allocation62_spill] sm:$0xff] %v6489_v20  ;;  %2007 = vst [vmem:[#allocation2 + $0x181] sm:$0xff] %v7053_v43  ;;  %v6494_v33 = vadd.f32 %v4548_v55, %v6233_v28  ;;  %v4374_v28 = vpack.c.bf16 %v2362_v47, %v2361_v22  ;;  %v2364_v55 = vld [vmem:[#allocation8 + $0x218] sm:$0xff]  ;;  %v6509_v47 = vld [vmem:[#allocation2 + $0x1a] sm:$0xff] }
 0x381   : > { %2663 = vmatmul.mubr.f32.gmra.mrb[92].mxu1 %v6489_v20  ;;  %v2074_v42 = vld [vmem:[#allocation2 + $0xa] sm:$0xff]  ;;  %v4377_v43 = vpack.c.bf16 %v2364_v55, %v2363_v41  ;;  %v2366_v20 = vld [vmem:[#allocation8 + $0x228] sm:$0xff]  ;;  %v6514_v41 = vld [vmem:[#allocation2 + $0x22] sm:$0xff] }
 0x382   : > { %2667 = vmatprep.mubr.f32.mxu1 %v6476_v16  ;;  %v7057_v7 = vmax.f32 %v6494_v33, 0.0  ;;  %v2365_v16 = vld [vmem:[#allocation8 + $0x220] sm:$0xff]  ;;  %v2368_v22 = vld [vmem:[#allocation8 + $0x238] sm:$0xff]  ;;  %v2375_v55 = vld [vmem:[#allocation8 + $0x270] sm:$0xff] }
 0x383   : > { %v6499_v49 = vld [vmem:[#allocation2 + $0x170] sm:$0xff] }
 0x384   : > { %2008 = vst [vmem:[#allocation2 + $0x189] sm:$0xff] %v7057_v7  ;;  %v4380_v7 = vpack.c.bf16 %v2366_v20, %v2365_v16  ;;  %v2372_v20 = vld [vmem:[#allocation8 + $0x258] sm:$0xff] }
 0x385   : > { %2668 = vmatmul.mubr.f32.gmra.mrb[94].mxu1 %v6499_v49 }
 0x386   : > { %2737 = vmatprep.mubr.f32.mxu1 %v6251_v53  ;;  %v2367_v53 = vld [vmem:[#allocation8 + $0x230] sm:$0xff] }
 0x389   : > { %2738 = vmatmul.mubr.f32.vlgmr.msra.gmra.mrb[32].mxu1 %v2073_v62  ;;  %v2369_v62 = vld [vmem:[#allocation8 + $0x240] sm:$0xff] }
 0x38a   : > { %2742 = vmatprep.mubr.f32.mxu1 %v6256_v35  ;;  %4375 = vmatpush1.bf16.msra.mxu1 %v4374_v28  ;;  %v4383_v35 = vpack.c.bf16 %v2368_v22, %v2367_v53  ;;  %v2370_v28 = vld [vmem:[#allocation8 + $0x248] sm:$0xff]  ;;  %v2380_v22 = vld [vmem:[#allocation8 + $0x298] sm:$0xff] }
 0x38b   : > { %4376 = vmatprep.subr.bf16.mxu1 %v7118_v34  ;;  %v4386_v16 = vpack.c.bf16 %v2370_v28, %v2369_v62  ;;  %v2378_v53 = vld [vmem:[#allocation8 + $0x288] sm:$0xff]  ;;  %v2384_v62 = vld [vmem:[#allocation8 + $0x2b8] sm:$0xff] }
 0x38c   : > { %v2386_v28 = vld [vmem:[#allocation8 + $0x2c8] sm:$0xff] }
 0x38d   : > { %2743 = vmatmul.mubr.f32.gmra.mrb[34].mxu1 %v2074_v42  ;;  %v2376_v42 = vld [vmem:[#allocation8 + $0x278] sm:$0xff] }
 0x38e   : > { %2747 = vmatprep.mubr.f32.mxu1 %v6261_v15  ;;  %4378 = vmatpush1.bf16.msra.mxu1 %v4377_v43  ;;  %v2371_v15 = vld [vmem:[#allocation8 + $0x250] sm:$0xff]  ;;  %v2373_v43 = vld [vmem:[#allocation8 + $0x260] sm:$0xff] }
 0x38f   : > { %4379 = vmatprep.subr.bf16.mxu1 %v7118_v34 }
 0x391   : > { %2748 = vmatmul.mubr.f32.gmra.mrb[36].mxu1 %v6509_v47 }
 0x392   : > { %2752 = vmatprep.mubr.f32.mxu1 %v6268_v4  ;;  %4381 = vmatpush1.bf16.msra.mxu1 %v4380_v7  ;;  %v4389_v4 = vpack.c.bf16 %v2372_v20, %v2371_v15  ;;  %v2374_v7 = vld [vmem:[#allocation8 + $0x268] sm:$0xff]  ;;  %v2392_v20 = vld [vmem:[#allocation8 + $0x2f8] sm:$0xff] }
 0x393   : > { %4382 = vmatprep.subr.bf16.mxu1 %v7118_v34  ;;  %v2390_v15 = vld [vmem:[#allocation8 + $0x2e8] sm:$0xff] }
 0x395   : > { %2753 = vmatmul.mubr.f32.gmra.mrb[38].mxu1 %v6514_v41 }
 0x396   : > { %2757 = vmatprep.mubr.f32.mxu1 %v6277_v10  ;;  %4384 = vmatpush1.bf16.msra.mxu1 %v4383_v35  ;;  %v4392_v10 = vpack.c.bf16 %v2374_v7, %v2373_v43  ;;  %v2382_v35 = vld [vmem:[#allocation8 + $0x2a8] sm:$0xff] }
 0x397   : > { %4385 = vmatprep.subr.bf16.mxu1 %v7118_v34 }
 0x399   : > { %2758 = vmatmul.mubr.f32.gmra.mrb[40].mxu1 %v6266_v46  ;;  %v4395_v46 = vpack.c.bf16 %v2376_v42, %v2375_v55  ;;  %v2398_v55 = vld [vmem:[#allocation8 + $0x328] sm:$0xff]  ;;  %v2138_v42 = vld [vmem:[#allocation2 + $0x21] sm:$0xff] }
 0x39a   : > { %2762 = vmatprep.mubr.f32.mxu1 %v6284_v45  ;;  %4387 = vmatpush1.bf16.msra.mxu1 %v4386_v16  ;;  %v2377_v45 = vld [vmem:[#allocation8 + $0x280] sm:$0xff]  ;;  %v2388_v16 = vld [vmem:[#allocation8 + $0x2d8] sm:$0xff] }
 0x39b   : > { %4388 = vmatprep.subr.bf16.mxu1 %v7118_v34 }
 0x39d   : > { %2763 = vmatmul.mubr.f32.gmra.mrb[42].mxu1 %v6270_v39  ;;  %v4398_v39 = vpack.c.bf16 %v2378_v53, %v2377_v45  ;;  %v2399_v45 = vld [vmem:[#allocation8 + $0x330] sm:$0xff]  ;;  %v2400_v53 = vld [vmem:[#allocation8 + $0x338] sm:$0xff] }
 0x39e   : > { %2767 = vmatprep.mubr.f32.mxu1 %v6293_v8  ;;  %4390 = vmatpush1.bf16.msra.mxu1 %v4389_v4  ;;  %v2379_v8 = vld [vmem:[#allocation8 + $0x290] sm:$0xff] }
 0x39f   : > { %4391 = vmatprep.subr.bf16.mxu1 %v7118_v34 }
 0x3a1   : > { %2768 = vmatmul.mubr.f32.gmra.mrb[44].mxu1 %v6282_v9  ;;  %v4401_v9 = vpack.c.bf16 %v2380_v22, %v2379_v8 }
 0x3a2   : > { %2772 = vmatprep.mubr.f32.mxu1 %v6300_v5  ;;  %4393 = vmatpush1.bf16.msra.mxu1 %v4392_v10  ;;  %v2381_v5 = vld [vmem:[#allocation8 + $0x2a0] sm:$0xff] }
 0x3a3   : > { %4394 = vmatprep.subr.bf16.mxu1 %v7118_v34  ;;  %v2397_v10 = vld [vmem:[#allocation8 + $0x320] sm:$0xff] }
 0x3a5   : > { %2773 = vmatmul.mubr.f32.gmra.mrb[46].mxu1 %v6286_v58  ;;  %v4404_v58 = vpack.c.bf16 %v2382_v35, %v2381_v5  ;;  %v2401_v5 = vld [vmem:[#allocation8 + $0x340] sm:$0xff]  ;;  %v2402_v35 = vld [vmem:[#allocation8 + $0x348] sm:$0xff] }
 0x3a6   : > { %2777 = vmatprep.mubr.f32.mxu1 %v6309_v27  ;;  %4396 = vmatpush1.bf16.msra.mxu1 %v4395_v46  ;;  %v2383_v27 = vld [vmem:[#allocation8 + $0x2b0] sm:$0xff]  ;;  %v4428_v46 = vpack.c.bf16 %v2398_v55, %v2397_v10  ;;  %v6650_v10 = vld [vmem:[#allocation2 + $0x69] sm:$0xff] }
 0x3a7   : > { %4397 = vmatprep.subr.bf16.mxu1 %v7118_v34  ;;  %v2177_v55 = vld [vmem:[#allocation2 + $0x7a] sm:$0xff] }
 0x3a9   : > { %2778 = vmatmul.mubr.f32.gmra.mrb[48].mxu1 %v6298_v0  ;;  %v4407_v0 = vpack.c.bf16 %v2384_v62, %v2383_v27  ;;  %v2173_v27 = vld [vmem:[#allocation2 + $0x4a] sm:$0xff]  ;;  %v4434_v62 = vpack.c.bf16 %v2402_v35, %v2401_v5 }
 0x3aa   : > { %2782 = vmatprep.mubr.f32.mxu1 %v6316_v63  ;;  %4399 = vmatpush1.bf16.msra.mxu1 %v4398_v39  ;;  %v2385_v63 = vld [vmem:[#allocation8 + $0x2c0] sm:$0xff] }
 0x3ab   : > { %4400 = vmatprep.subr.bf16.mxu1 %v7118_v34  ;;  %v6618_v39 = vld [vmem:[#allocation2 + $0x31] sm:$0xff] }
 0x3ac   : > { %v2413_v35 = vld [vmem:[#allocation8 + $0x3a0] sm:$0xff] }
 0x3ad   : > { %2783 = vmatmul.mubr.f32.gmra.mrb[50].mxu1 %v6302_v17  ;;  %v4410_v17 = vpack.c.bf16 %v2386_v28, %v2385_v63  ;;  %v2404_v63 = vld [vmem:[#allocation8 + $0x358] sm:$0xff] }
 0x3ae   : > { %2787 = vmatprep.mubr.f32.mxu1 %v6325_v3  ;;  %4402 = vmatpush1.bf16.msra.mxu1 %v4401_v9  ;;  %v2387_v3 = vld [vmem:[#allocation8 + $0x2d0] sm:$0xff]  ;;  %v4431_v9 = vpack.c.bf16 %v2400_v53, %v2399_v45  ;;  %v6630_v28 = vld [vmem:[#allocation2 + $0x49] sm:$0xff] }
 0x3af   : > { %4403 = vmatprep.subr.bf16.mxu1 %v7118_v34  ;;  %v6654_v45 = vld [vmem:[#allocation2 + $0x79] sm:$0xff] }
 0x3b1   : > { %2788 = vmatmul.mubr.f32.gmra.mrb[52].mxu1 %v6314_v21  ;;  %v4413_v21 = vpack.c.bf16 %v2388_v16, %v2387_v3  ;;  %v2174_v3 = vld [vmem:[#allocation2 + $0x52] sm:$0xff] }
 0x3b2   : > { %2792 = vmatprep.mubr.f32.mxu1 %v6332_v36  ;;  %4405 = vmatpush1.bf16.msra.mxu1 %v4404_v58  ;;  %v2389_v36 = vld [vmem:[#allocation8 + $0x2e0] sm:$0xff]  ;;  %v6626_v58 = vld [vmem:[#allocation2 + $0x39] sm:$0xff] }
 0x3b3   : > { %4406 = vmatprep.subr.bf16.mxu1 %v7118_v34 }
 0x3b5   : > { %2793 = vmatmul.mubr.f32.gmra.mrb[54].mxu1 %v6318_v31  ;;  %v4416_v31 = vpack.c.bf16 %v2390_v15, %v2389_v36  ;;  %v2405_v36 = vld [vmem:[#allocation8 + $0x360] sm:$0xff]  ;;  %v2406_v15 = vld [vmem:[#allocation8 + $0x368] sm:$0xff] }
 0x3b6   : > { %2797 = vmatprep.mubr.f32.mxu1 %v6341_v51  ;;  %4408 = vmatpush1.bf16.msra.mxu1 %v4407_v0  ;;  %v2391_v51 = vld [vmem:[#allocation8 + $0x2f0] sm:$0xff] }
 0x3b7   : > { %4409 = vmatprep.subr.bf16.mxu1 %v7118_v34  ;;  %v2403_v0 = vld [vmem:[#allocation8 + $0x350] sm:$0xff] }
 0x3b9   : > { %2798 = vmatmul.mubr.f32.gmra.mrb[56].mxu1 %v6330_v11  ;;  %v4419_v11 = vpack.c.bf16 %v2392_v20, %v2391_v51  ;;  %v2175_v51 = vld [vmem:[#allocation2 + $0x62] sm:$0xff]  ;;  %v4440_v20 = vpack.c.bf16 %v2406_v15, %v2405_v36  ;;  %v6666_v36 = vld [vmem:[#allocation2 + $0x91] sm:$0xff] }
 0x3ba   : > { %2802 = vmatprep.mubr.f32.mxu1 %v6348_v19  ;;  %4411 = vmatpush1.bf16.msra.mxu1 %v4410_v17  ;;  %v7121_v19 = vld [vmem:[#allocation62_spill] sm:$0xff] }
 0x3bb   : > { %4412 = vmatprep.subr.bf16.mxu1 %v7118_v34 }
 0x3bd   : > { %2803 = vmatmul.mubr.f32.gmra.mrb[58].mxu1 %v6334_v12 }
 0x3be   : > { %2807 = vmatprep.mubr.f32.mxu1 %v6357_v57  ;;  %4414 = vmatpush1.bf16.msra.mxu1 %v4413_v21  ;;  %v4437_v21 = vpack.c.bf16 %v2404_v63, %v2403_v0  ;;  %v2179_v0 = vld [vmem:[#allocation2 + $0x92] sm:$0xff] }
 0x3bf   : > { %4415 = vmatprep.subr.bf16.mxu1 %v7118_v34 }
 0x3c1   : > { %2808 = vmatmul.mubr.f32.gmra.mrb[60].mxu1 %v6346_v1  ;;  %v7119_v1 = vld [vmem:[#allocation57_spill] sm:$0xff] }
 0x3c2   : > { %2812 = vmatprep.mubr.f32.mxu1 %v6364_v38  ;;  %4417 = vmatpush1.bf16.msra.mxu1 %v4416_v31  ;;  %v6638_v31 = vld [vmem:[#allocation2 + $0x51] sm:$0xff] }
 0x3c3   : > { %4418 = vmatprep.subr.bf16.mxu1 %v7118_v34 }
 0x3c5   : > { %2813 = vmatmul.mubr.f32.gmra.mrb[62].mxu1 %v6350_v54  ;;  %v6583_v54 = vld [vmem:[#allocation2 + $0x152] sm:$0xff] }
 0x3c6   : > { %2817 = vmatprep.mubr.f32.mxu1 %v6373_v13  ;;  %4420 = vmatpush1.bf16.msra.mxu1 %v4419_v11  ;;  %v6594_v13 = vld [vmem:[#allocation2 + $0x180] sm:$0xff] }
 0x3c7   : > { %4421 = vmatprep.subr.bf16.mxu1 %v7118_v34  ;;  %v2407_v11 = vld [vmem:[#allocation8 + $0x370] sm:$0xff] }
 0x3c9   : > { %2818 = vmatmul.mubr.f32.gmra.mrb[64].mxu1 %v6362_v44 }
 0x3ca   : > { %2822 = vmatprep.mubr.f32.mxu1 %v6380_v2  ;;  %v6597_v2 = vld [vmem:[#allocation2 + $0x16a] sm:$0xff] }
 0x3cd   : > { %2823 = vmatmul.mubr.f32.gmra.mrb[66].mxu1 %v6366_v23  ;;  %v6591_v23 = vld [vmem:[#allocation2 + $0x15a] sm:$0xff] }
 0x3ce   : > { %2827 = vmatprep.mubr.f32.mxu1 %v6389_v18 }
 0x3d1   : > { %2828 = vmatmul.mubr.f32.gmra.mrb[68].mxu1 %v6378_v30 }
 0x3d2   : > { %2832 = vmatprep.mubr.f32.mxu1 %v6396_v29  ;;  %v6602_v29 = vld [vmem:[#allocation2 + $0x188] sm:$0xff] }
 0x3d5   : > { %2833 = vmatmul.mubr.f32.gmra.mrb[70].mxu1 %v6382_v59 }
 0x3d6   : > { %2837 = vmatprep.mubr.f32.mxu1 %v6405_v48 }
 0x3d9   : > { %2838 = vmatmul.mubr.f32.gmra.mrb[72].mxu1 %v6394_v56 }
 0x3da   : > { %2842 = vmatprep.mubr.f32.mxu1 %v6412_v6  ;;  %v2393_v6 = vld [vmem:[#allocation8 + $0x300] sm:$0xff] }
 0x3dd   : > { %2843 = vmatmul.mubr.f32.gmra.mrb[74].mxu1 %v6398_v26 }
 0x3de   : > { %2847 = vmatprep.mubr.f32.mxu1 %v6423_v60  ;;  %v2394_v60 = vld [vmem:[#allocation8 + $0x308] sm:$0xff] }
 0x3e1   : > { %2848 = vmatmul.mubr.f32.gmra.mrb[76].mxu1 %v6410_v14 }
 0x3e2   : > { %2852 = vmatprep.mubr.f32.mxu1 %v6433_v61  ;;  %v7120_v61 = vld [vmem:[#allocation58_spill] sm:$0xff] }
 0x3e5   : > { %2853 = vmatmul.mubr.f32.gmra.mrb[78].mxu1 %v6414_v24 }
 0x3e6   : > { %2857 = vmatprep.mubr.f32.mxu1 %v6446_v50  ;;  %v4422_v50 = vpack.c.bf16 %v2394_v60, %v2393_v6  ;;  %v6642_v6 = vld [vmem:[#allocation2 + $0x61] sm:$0xff] }
 0x3e9   : > { %2858 = vmatmul.mubr.f32.gmra.mrb[80].mxu1 %v6431_v40 }
 0x3ea   : > { %2862 = vmatprep.mubr.f32.mxu1 %v6457_v52  ;;  %v2395_v52 = vld [vmem:[#allocation8 + $0x310] sm:$0xff] }
 0x3ed   : > { %2863 = vmatmul.mubr.f32.gmra.mrb[82].mxu1 %v6435_v25 }
 0x3ee   : > { %2867 = vmatprep.mubr.f32.mxu1 %v6470_v37  ;;  %v6607_v37 = vld [vmem:[#allocation2 + $0x172] sm:$0xff] }
 0x3f0   : > { %v6575_v44 = vpop.f32.mrb[64].mxu0 }
 0x3f1   : > { %2868 = vmatmul.mubr.f32.gmra.mrb[84].mxu1 %v7119_v1  ;;  %v6578_v12 = vpop.f32.mrb[65].mxu0 }
 0x3f2   : > { %2872 = vmatprep.mubr.f32.mxu1 %v6479_v32  ;;  %v2396_v32 = vld [vmem:[#allocation8 + $0x318] sm:$0xff] }
 0x3f3   : > { %v4425_v7 = vpack.c.bf16 %v2396_v32, %v2395_v52 }
 0x3f5   : > { %2873 = vmatmul.mubr.f32.gmra.mrb[86].mxu1 %v7120_v61 }
 0x3f6   : > { %2877 = vmatprep.mubr.f32.mxu1 %v7121_v19  ;;  %v2408_v19 = vld [vmem:[#allocation8 + $0x378] sm:$0xff] }
 0x3f7   : > { %v4443_v32 = vpack.c.bf16 %v2408_v19, %v2407_v11  ;;  %v2417_v19 = vld [vmem:[#allocation8 + $0x3c0] sm:$0xff] }
 0x3f8   : > { %v6585_v57 = vpop.f32.mrb[66].mxu0 }
 0x3f9   : > { %2878 = vmatmul.mubr.f32.gmra.mrb[88].mxu1 %v6583_v54  ;;  %v6588_v38 = vpop.f32.mrb[67].mxu0 }
 0x3fa   : > { %2882 = vmatprep.mubr.f32.mxu1 %v6499_v49  ;;  %v2137_v49 = vld [vmem:[#allocation2 + $0x19] sm:$0xff] }
 0x3fd   : > { %2883 = vmatmul.mubr.f32.gmra.mrb[90].mxu1 %v6591_v23 }
 0x3fe   : > { %2887 = vmatprep.mubr.f32.mxu1 %v6594_v13 }
 0x400   : > { %v6599_v18 = vpop.f32.mrb[68].mxu0 }
 0x401   : > { %2888 = vmatmul.mubr.f32.gmra.mrb[92].mxu1 %v6597_v2  ;;  %v6604_v48 = vpop.f32.mrb[69].mxu0 }
 0x402   : > { %2892 = vmatprep.mubr.f32.mxu1 %v6602_v29 }
 0x405   : > { %2893 = vmatmul.mubr.f32.gmra.mrb[94].mxu1 %v6607_v37 }
 0x406   : > { %2962 = vmatprep.mubr.f32.mxu1 %v6509_v47  ;;  %v2171_v47 = vld [vmem:[#allocation2 + $0x32] sm:$0xff] }
 0x408   : > { %v6611_v4 = vpop.f32.mrb[70].mxu0 }
 0x409   : > { %2963 = vmatmul.mubr.f32.vlgmr.msra.gmra.mrb[32].mxu1 %v2137_v49  ;;  %v6613_v43 = vpop.f32.mrb[71].mxu0  ;;  %v2409_v49 = vld [vmem:[#allocation8 + $0x380] sm:$0xff] }
 0x40a   : > { %2967 = vmatprep.mubr.f32.mxu1 %v6514_v41  ;;  %4423 = vmatpush1.bf16.msra.mxu1 %v4422_v50  ;;  %v2172_v41 = vld [vmem:[#allocation2 + $0x3a] sm:$0xff]  ;;  %v2176_v50 = vld [vmem:[#allocation2 + $0x6a] sm:$0xff] }
 0x40b   : > { %4424 = vmatprep.subr.bf16.mxu1 %v7118_v34 }
 0x40d   : > { %2968 = vmatmul.mubr.f32.gmra.mrb[34].mxu1 %v2138_v42 }
 0x40e   : > { %2972 = vmatprep.mubr.f32.mxu1 %v2171_v47  ;;  %4426 = vmatpush1.bf16.msra.mxu1 %v4425_v7  ;;  %v2410_v7 = vld [vmem:[#allocation8 + $0x388] sm:$0xff]  ;;  %v2411_v47 = vld [vmem:[#allocation8 + $0x390] sm:$0xff] }
 0x40f   : > { %4427 = vmatprep.subr.bf16.mxu1 %v7118_v34  ;;  %v4446_v42 = vpack.c.bf16 %v2410_v7, %v2409_v49  ;;  %v2181_v49 = vld [vmem:[#allocation2 + $0xaa] sm:$0xff] }
 0x410   : > { %v6620_v8 = vpop.f32.mrb[72].mxu0 }
 0x411   : > { %2973 = vmatmul.mubr.f32.gmra.mrb[36].mxu1 %v6618_v39  ;;  %v6623_v22 = vpop.f32.mrb[73].mxu0 }
 0x412   : > { %2977 = vmatprep.mubr.f32.mxu1 %v2172_v41  ;;  %4429 = vmatpush1.bf16.msra.mxu1 %v4428_v46  ;;  %v2412_v46 = vld [vmem:[#allocation8 + $0x398] sm:$0xff] }
 0x413   : > { %4430 = vmatprep.subr.bf16.mxu1 %v7118_v34  ;;  %v2178_v41 = vld [vmem:[#allocation2 + $0x82] sm:$0xff]  ;;  %v4449_v5 = vpack.c.bf16 %v2412_v46, %v2411_v47 }
 0x414   : > { %v6678_v47 = vld [vmem:[#allocation2 + $0xa9] sm:$0xff] }
 0x415   : > { %2978 = vmatmul.mubr.f32.gmra.mrb[38].mxu1 %v6626_v58 }
 0x416   : > { %2982 = vmatprep.mubr.f32.mxu1 %v2173_v27  ;;  %4432 = vmatpush1.bf16.msra.mxu1 %v4431_v9  ;;  %v2414_v27 = vld [vmem:[#allocation8 + $0x3a8] sm:$0xff] }
 0x417   : > { %4433 = vmatprep.subr.bf16.mxu1 %v7118_v34  ;;  %v4452_v63 = vpack.c.bf16 %v2414_v27, %v2413_v35  ;;  %v2421_v27 = vld [vmem:[#allocation8 + $0x3e0] sm:$0xff] }
 0x418   : > { %v6632_v17 = vpop.f32.mrb[74].mxu0 }
 0x419   : > { %2983 = vmatmul.mubr.f32.gmra.mrb[40].mxu1 %v6630_v28  ;;  %v6635_v16 = vpop.f32.mrb[75].mxu0 }
 0x41a   : > { %2987 = vmatprep.mubr.f32.mxu1 %v2174_v3  ;;  %4435 = vmatpush1.bf16.msra.mxu1 %v4434_v62  ;;  %v6662_v62 = vld [vmem:[#allocation2 + $0x81] sm:$0xff] }
 0x41b   : > { %4436 = vmatprep.subr.bf16.mxu1 %v7118_v34  ;;  %v2415_v3 = vld [vmem:[#allocation8 + $0x3b0] sm:$0xff] }
 0x41d   : > { %2988 = vmatmul.mubr.f32.gmra.mrb[42].mxu1 %v6638_v31 }
 0x41e   : > { %2992 = vmatprep.mubr.f32.mxu1 %v2175_v51  ;;  %4438 = vmatpush1.bf16.msra.mxu1 %v4437_v21  ;;  %v2416_v21 = vld [vmem:[#allocation8 + $0x3b8] sm:$0xff]  ;;  %v2180_v51 = vld [vmem:[#allocation2 + $0x9a] sm:$0xff] }
 0x41f   : > { %4439 = vmatprep.subr.bf16.mxu1 %v7118_v34  ;;  %v4455_v11 = vpack.c.bf16 %v2416_v21, %v2415_v3  ;;  %v2183_v3 = vld [vmem:[#allocation2 + $0xc2] sm:$0xff] }
 0x420   : > { %v6644_v60 = vpop.f32.mrb[76].mxu0 }
 0x421   : > { %2993 = vmatmul.mubr.f32.gmra.mrb[44].mxu1 %v6642_v6  ;;  %v6647_v52 = vpop.f32.mrb[77].mxu0 }
 0x422   : > { %2997 = vmatprep.mubr.f32.mxu1 %v2176_v50  ;;  %4441 = vmatpush1.bf16.msra.mxu1 %v4440_v20  ;;  %v2418_v50 = vld [vmem:[#allocation8 + $0x3c8] sm:$0xff] }
 0x423   : > { %4442 = vmatprep.subr.bf16.mxu1 %v7118_v34  ;;  %v4458_v7 = vpack.c.bf16 %v2418_v50, %v2417_v19  ;;  %v6690_v19 = vld [vmem:[#allocation2 + $0xc1] sm:$0xff] }
 0x425   : > { %2998 = vmatmul.mubr.f32.gmra.mrb[46].mxu1 %v6650_v10 }
 0x426   : > { %3002 = vmatprep.mubr.f32.mxu1 %v2177_v55  ;;  %4444 = vmatpush1.bf16.msra.mxu1 %v4443_v32  ;;  %v6674_v32 = vld [vmem:[#allocation2 + $0x99] sm:$0xff] }
 0x427   : > { %4445 = vmatprep.subr.bf16.mxu1 %v7118_v34  ;;  %v2419_v55 = vld [vmem:[#allocation8 + $0x3d0] sm:$0xff] }
 0x428   : > { %v6656_v53 = vpop.f32.mrb[78].mxu0 }
 0x429   : > { %3003 = vmatmul.mubr.f32.gmra.mrb[48].mxu1 %v6654_v45  ;;  %v6659_v9 = vpop.f32.mrb[79].mxu0 }
 0x42a   : > { %3007 = vmatprep.mubr.f32.mxu1 %v2178_v41  ;;  %4447 = vmatpush1.bf16.msra.mxu1 %v4446_v42  ;;  %v2420_v42 = vld [vmem:[#allocation8 + $0x3d8] sm:$0xff]  ;;  %v2182_v41 = vld [vmem:[#allocation2 + $0xb2] sm:$0xff] }
 0x42b   : > { %4448 = vmatprep.subr.bf16.mxu1 %v7118_v34  ;;  %v4461_v35 = vpack.c.bf16 %v2420_v42, %v2419_v55  ;;  %v6698_v42 = vld [vmem:[#allocation2 + $0xc9] sm:$0xff] }
 0x42d   : > { %3008 = vmatmul.mubr.f32.gmra.mrb[50].mxu1 %v6662_v62 }
 0x42e   : > { %3012 = vmatprep.mubr.f32.mxu1 %v2179_v0  ;;  %4450 = vmatpush1.bf16.msra.mxu1 %v4449_v5  ;;  %v2422_v0 = vld [vmem:[#allocation8 + $0x3e8] sm:$0xff] }
 0x42f   : > { %4451 = vmatprep.subr.bf16.mxu1 %v7118_v34  ;;  %v4464_v21 = vpack.c.bf16 %v2422_v0, %v2421_v27 }
 0x430   : > { %v6668_v15 = vpop.f32.mrb[80].mxu0 }
 0x431   : > { %3013 = vmatmul.mubr.f32.gmra.mrb[52].mxu1 %v6666_v36  ;;  %v6671_v20 = vpop.f32.mrb[81].mxu0 }
 0x432   : > { %3017 = vmatprep.mubr.f32.mxu1 %v2180_v51  ;;  %4453 = vmatpush1.bf16.msra.mxu1 %v4452_v63  ;;  %v6686_v63 = vld [vmem:[#allocation2 + $0xb1] sm:$0xff]  ;;  %v2423_v51 = vld [vmem:[#allocation8 + $0x3f0] sm:$0xff] }
 0x433   : > { %4454 = vmatprep.subr.bf16.mxu1 %v7118_v34 }
 0x435   : > { %3018 = vmatmul.mubr.f32.gmra.mrb[54].mxu1 %v6674_v32 }
 0x436   : > { %3022 = vmatprep.mubr.f32.mxu1 %v2181_v49  ;;  %4456 = vmatpush1.bf16.msra.mxu1 %v4455_v11  ;;  %v2424_v11 = vld [vmem:[#allocation8 + $0x3f8] sm:$0xff] }
 0x437   : > { %4457 = vmatprep.subr.bf16.mxu1 %v7118_v34  ;;  %v2184_v49 = vld [vmem:[#allocation2 + $0xca] sm:$0xff]  ;;  %v4467_v55 = vpack.c.bf16 %v2424_v11, %v2423_v51  ;;  %v6750_v11 = vld [vmem:[#allocation2 + $0x182] sm:$0xff] }
 0x438   : > { %v6680_v46 = vpop.f32.mrb[82].mxu0  ;;  %v7126_v51 = vld [vmem:[#allocation56_spill] sm:$0xff] }
 0x439   : > { %3023 = vmatmul.mubr.f32.gmra.mrb[56].mxu1 %v6678_v47  ;;  %v6683_v5 = vpop.f32.mrb[83].mxu0 }
 0x43a   : > { %3027 = vmatprep.mubr.f32.mxu1 %v2182_v41  ;;  %4459 = vmatpush1.bf16.msra.mxu1 %v4458_v7  ;;  %v7122_v41 = vld [vmem:[#allocation43_spill] sm:$0xff] }
 0x43b   : > { %4460 = vmatprep.subr.bf16.mxu1 %v7118_v34 }
 0x43d   : > { %3028 = vmatmul.mubr.f32.gmra.mrb[58].mxu1 %v6686_v63 }
 0x43e   : > { %3032 = vmatprep.mubr.f32.mxu1 %v2183_v3  ;;  %4462 = vmatpush1.bf16.msra.mxu1 %v4461_v35  ;;  %v6703_v35 = vld [vmem:[#allocation2 + $0xd9] sm:$0xff] }
 0x43f   : > { %4463 = vmatprep.subr.bf16.mxu1 %v7118_v34  ;;  %v6719_v3 = vld [vmem:[#allocation2 + $0xf9] sm:$0xff] }
 0x440   : > { %v6692_v50 = vpop.f32.mrb[84].mxu0 }
 0x441   : > { %3033 = vmatmul.mubr.f32.gmra.mrb[60].mxu1 %v6690_v19  ;;  %v6695_v7 = vpop.f32.mrb[85].mxu0 }
 0x442   : > { %3037 = vmatprep.mubr.f32.mxu1 %v2184_v49  ;;  %4465 = vmatpush1.bf16.msra.mxu1 %v4464_v21  ;;  %v6723_v21 = vld [vmem:[#allocation2 + $0x109] sm:$0xff] }
 0x443   : > { %4466 = vmatprep.subr.bf16.mxu1 %v7118_v34  ;;  %v6711_v34 = vld [vmem:[#allocation2 + $0xe1] sm:$0xff] }
 0x445   : > { %3038 = vmatmul.mubr.f32.gmra.mrb[62].mxu1 %v6698_v42 }
 0x446   : > { %3042 = vmatprep.mubr.f32.mxu1 %v6378_v30  ;;  %4468 = vmatpush1.bf16.msra.mxu1 %v4467_v55  ;;  %v6715_v30 = vld [vmem:[#allocation2 + $0xf1] sm:$0xff] }
 0x447   : > { %4501 = vmatprep.subr.bf16.mxu1 %v7122_v41  ;;  %v6755_v55 = vld [vmem:[#allocation2 + $0x18a] sm:$0xff] }
 0x448   : > { %v6705_v27 = vpop.f32.mrb[86].mxu0 }
 0x449   : > { %3043 = vmatmul.mubr.f32.gmra.mrb[64].mxu1 %v6703_v35  ;;  %v6708_v0 = vpop.f32.mrb[87].mxu0 }
 0x44a   : > { %3047 = vmatprep.mubr.f32.mxu1 %v6382_v59  ;;  %v6727_v59 = vld [vmem:[#allocation2 + $0x111] sm:$0xff] }
 0x44d   : > { %3048 = vmatmul.mubr.f32.gmra.mrb[66].mxu1 %v6711_v34 }
 0x44e   : > { %3052 = vmatprep.mubr.f32.mxu1 %v6394_v56  ;;  %v6731_v56 = vld [vmem:[#allocation2 + $0x121] sm:$0xff] }
 0x451   : > { %3053 = vmatmul.mubr.f32.gmra.mrb[68].mxu1 %v6715_v30 }
 0x452   : > { %3057 = vmatprep.mubr.f32.mxu1 %v6398_v26  ;;  %v6735_v26 = vld [vmem:[#allocation2 + $0x129] sm:$0xff] }
 0x455   : > { %3058 = vmatmul.mubr.f32.gmra.mrb[70].mxu1 %v6719_v3 }
 0x456   : > { %3062 = vmatprep.mubr.f32.mxu1 %v6410_v14  ;;  %v7123_v14 = vld [vmem:[#allocation53_spill] sm:$0xff] }
 0x459   : > { %3063 = vmatmul.mubr.f32.gmra.mrb[72].mxu1 %v6723_v21 }
 0x45a   : > { %3067 = vmatprep.mubr.f32.mxu1 %v6414_v24  ;;  %v7124_v24 = vld [vmem:[#allocation54_spill] sm:$0xff] }
 0x45d   : > { %3068 = vmatmul.mubr.f32.gmra.mrb[74].mxu1 %v6727_v59 }
 0x45e   : > { %3072 = vmatprep.mubr.f32.mxu1 %v6431_v40  ;;  %v7125_v40 = vld [vmem:[#allocation55_spill] sm:$0xff] }
 0x461   : > { %3073 = vmatmul.mubr.f32.gmra.mrb[76].mxu1 %v6731_v56 }
 0x462   : > { %3077 = vmatprep.mubr.f32.mxu1 %v6435_v25  ;;  %v7127_v25 = vld [vmem:[#allocation59_spill] sm:$0xff] }
 0x465   : > { %3078 = vmatmul.mubr.f32.gmra.mrb[78].mxu1 %v6735_v26 }
 0x466   : > { %3082 = vmatprep.mubr.f32.mxu1 %v7119_v1  ;;  %v7128_v1 = vld [vmem:[#allocation60_spill] sm:$0xff] }
 0x469   : > { %3083 = vmatmul.mubr.f32.gmra.mrb[80].mxu1 %v7123_v14  ;;  %v7131_v14 = vmax.f32 %v6494_v33, 0.0  ;;  %v2203_v33 = vld [vmem:[#allocation2 + $0x48] sm:$0xff] }
 0x46a   : > { %3087 = vmatprep.mubr.f32.mxu1 %v7120_v61  ;;  %v7129_v61 = vld [vmem:[#allocation61_spill] sm:$0xff] }
 0x46b   : > { %v7130_v49 = vmax.f32 %v7129_v61, 0.0  ;;  %v7137_v61 = vld [vmem:[#allocation49_spill] sm:$0xff] }
 0x46d   : > { %3088 = vmatmul.mubr.f32.gmra.mrb[82].mxu1 %v7124_v24  ;;  %v2201_v24 = vld [vmem:[#allocation2 + $0x30] sm:$0xff] }
 0x46e   : > { %3092 = vmatprep.mubr.f32.mxu1 %v6583_v54 }
 0x471   : > { %3093 = vmatmul.mubr.f32.gmra.mrb[84].mxu1 %v7125_v40  ;;  %v7132_v40 = vld [vmem:[#allocation44_spill] sm:$0xff] }
 0x472   : > { %3097 = vmatprep.mubr.f32.mxu1 %v6591_v23 }
 0x475   : > { %3098 = vmatmul.mubr.f32.gmra.mrb[86].mxu1 %v7126_v51  ;;  %v2202_v51 = vld [vmem:[#allocation2 + $0x38] sm:$0xff] }
 0x476   : > { %3102 = vmatprep.mubr.f32.mxu1 %v6597_v2 }
 0x479   : > { %3103 = vmatmul.mubr.f32.gmra.mrb[88].mxu1 %v7127_v25  ;;  %v7133_v25 = vld [vmem:[#allocation45_spill] sm:$0xff] }
 0x47a   : > { %3107 = vmatprep.mubr.f32.mxu1 %v6607_v37 }
 0x47d   : > { %3108 = vmatmul.mubr.f32.gmra.mrb[90].mxu1 %v7128_v1  ;;  %v7136_v1 = vld [vmem:[#allocation48_spill] sm:$0xff] }
 0x47e   : > { %3112 = vmatprep.mubr.f32.mxu1 %v6750_v11 }
 0x481   : > { %3113 = vmatmul.mubr.f32.gmra.mrb[92].mxu1 %v7130_v49  ;;  %v7138_v49 = vld [vmem:[#allocation50_spill] sm:$0xff] }
 0x482   : > { %3117 = vmatprep.mubr.f32.mxu1 %v6755_v55 }
 0x485   : > { %3118 = vmatmul.mubr.f32.gmra.mrb[94].mxu1 %v7131_v14  ;;  %v2209_v14 = vld [vmem:[#allocation2 + $0x90] sm:$0xff] }
 0x486   : > { %3187 = vmatprep.mubr.f32.mxu1 %v6618_v39  ;;  %v7134_v39 = vld [vmem:[#allocation46_spill] sm:$0xff] }
 0x489   : > { %3188 = vmatmul.mubr.f32.vlgmr.msra.gmra.mrb[32].mxu1 %v2201_v24  ;;  %v2211_v24 = vld [vmem:[#allocation2 + $0xa8] sm:$0xff] }
 0x48a   : > { %3192 = vmatprep.mubr.f32.mxu1 %v6626_v58  ;;  %4509 = vmatpush3.bf16.msra.mxu1 %v7122_v41  ;;  %v2204_v58 = vld [vmem:[#allocation2 + $0x50] sm:$0xff]  ;;  %v7135_v41 = vld [vmem:[#allocation47_spill] sm:$0xff] }
 0x48b   : > { %4502 = vmatprep.subr.bf16.mxu1 %v7132_v40 }
 0x48d   : > { %3193 = vmatmul.mubr.f32.gmra.mrb[34].mxu1 %v2202_v51  ;;  %v2255_v51 = vld [vmem:[#allocation2 + $0x139] sm:$0xff] }
 0x48e   : > { %3197 = vmatprep.mubr.f32.mxu1 %v6630_v28  ;;  %4510 = vmatpush3.bf16.msra.mxu1 %v7132_v40  ;;  %v2205_v28 = vld [vmem:[#allocation2 + $0x60] sm:$0xff] }
 0x48f   : > { %4503 = vmatprep.subr.bf16.mxu1 %v7133_v25  ;;  %v2213_v40 = vld [vmem:[#allocation2 + $0xc0] sm:$0xff] }
 0x491   : > { %3198 = vmatmul.mubr.f32.gmra.mrb[36].mxu1 %v2203_v33  ;;  %v2257_v33 = vld [vmem:[#allocation2 + $0x151] sm:$0xff] }
 0x492   : > { %3202 = vmatprep.mubr.f32.mxu1 %v6638_v31  ;;  %4511 = vmatpush3.bf16.msra.mxu1 %v7133_v25  ;;  %v2206_v31 = vld [vmem:[#allocation2 + $0x68] sm:$0xff] }
 0x493   : > { %4504 = vmatprep.subr.bf16.mxu1 %v7134_v39  ;;  %v2256_v25 = vld [vmem:[#allocation2 + $0x141] sm:$0xff] }
 0x495   : > { %3203 = vmatmul.mubr.f32.gmra.mrb[38].mxu1 %v2204_v58  ;;  %v2259_v58 = vld [vmem:[#allocation2 + $0x169] sm:$0xff] }
 0x496   : > { %3207 = vmatprep.mubr.f32.mxu1 %v6642_v6  ;;  %4512 = vmatpush3.bf16.msra.mxu1 %v7134_v39  ;;  %v2207_v6 = vld [vmem:[#allocation2 + $0x78] sm:$0xff] }
 0x497   : > { %4505 = vmatprep.subr.bf16.mxu1 %v7135_v41  ;;  %v2258_v39 = vld [vmem:[#allocation2 + $0x159] sm:$0xff] }
 0x499   : > { %3208 = vmatmul.mubr.f32.gmra.mrb[40].mxu1 %v2205_v28  ;;  %v2228_v28 = vld [vmem:[#allocation2 + $0x170] sm:$0xff] }
 0x49a   : > { %3212 = vmatprep.mubr.f32.mxu1 %v6650_v10  ;;  %4513 = vmatpush3.bf16.msra.mxu1 %v7135_v41  ;;  %v2208_v10 = vld [vmem:[#allocation2 + $0x80] sm:$0xff]  ;;  %v2260_v41 = vld [vmem:[#allocation2 + $0x171] sm:$0xff] }
 0x49b   : > { %4506 = vmatprep.subr.bf16.mxu1 %v7136_v1 }
 0x49d   : > { %3213 = vmatmul.mubr.f32.gmra.mrb[42].mxu1 %v2206_v31  ;;  %v2262_v31 = vld [vmem:[#allocation2 + $0x189] sm:$0xff] }
 0x49e   : > { %3217 = vmatprep.mubr.f32.mxu1 %v6654_v45  ;;  %4514 = vmatpush3.bf16.msra.mxu1 %v7136_v1  ;;  %v2210_v45 = vld [vmem:[#allocation2 + $0x98] sm:$0xff]  ;;  %v2261_v1 = vld [vmem:[#allocation2 + $0x181] sm:$0xff] }
 0x49f   : > { %4507 = vmatprep.subr.bf16.mxu1 %v7137_v61 }
 0x4a1   : > { %3218 = vmatmul.mubr.f32.gmra.mrb[44].mxu1 %v2207_v6  ;;  %v2231_v6 = vld [vmem:[#allocation2 + $0x198] sm:$0xff] }
 0x4a2   : > { %3222 = vmatprep.mubr.f32.mxu1 %v6662_v62  ;;  %4515 = vmatpush3.bf16.msra.mxu1 %v7137_v61  ;;  %v2212_v62 = vld [vmem:[#allocation2 + $0xb0] sm:$0xff]  ;;  %v2263_v61 = vld [vmem:[#allocation2 + $0x199] sm:$0xff] }
 0x4a3   : > { %4508 = vmatprep.subr.bf16.mxu1 %v7138_v49 }
 0x4a5   : > { %3223 = vmatmul.mubr.f32.gmra.mrb[46].mxu1 %v2208_v10  ;;  %v5071_v10 = vld [vmem:[#allocation2 + $0x8] sm:$0xff] }
 0x4a6   : > { %3227 = vmatprep.mubr.f32.mxu1 %v6666_v36  ;;  %4516 = vmatpush3.bf16.msra.mxu1 %v7138_v49  ;;  %v2214_v36 = vld [vmem:[#allocation2 + $0xc8] sm:$0xff] }
 0x4a7   : > { %v2264_v49 = vld [vmem:[#allocation2 + $0x1a1] sm:$0xff] }
 0x4a9   : > { %3228 = vmatmul.mubr.f32.gmra.mrb[48].mxu1 %v2209_v14  ;;  %v6808_v14 = vld [vmem:[%s6989_s4] ss:$0 sm:$0xff] }
 0x4aa   : > { %3232 = vmatprep.mubr.f32.mxu1 %v6674_v32  ;;  %v2215_v32 = vld [vmem:[#allocation2 + $0xd8] sm:$0xff] }
 0x4ad   : > { %3233 = vmatmul.mubr.f32.gmra.mrb[50].mxu1 %v2210_v45 }
 0x4ae   : > { %3237 = vmatprep.mubr.f32.mxu1 %v6678_v47  ;;  %v2216_v47 = vld [vmem:[#allocation2 + $0xe0] sm:$0xff] }
 0x4b1   : > { %3238 = vmatmul.mubr.f32.gmra.mrb[52].mxu1 %v2211_v24 }
 0x4b2   : > { %3242 = vmatprep.mubr.f32.mxu1 %v6686_v63  ;;  %v2217_v63 = vld [vmem:[#allocation2 + $0xf0] sm:$0xff] }
 0x4b5   : > { %3243 = vmatmul.mubr.f32.gmra.mrb[54].mxu1 %v2212_v62  ;;  %v7139_v62 = vld [vmem:[#allocation13_spill] sm:$0xff] }
 0x4b6   : > { %3247 = vmatprep.mubr.f32.mxu1 %v6690_v19  ;;  %v2218_v19 = vld [vmem:[#allocation2 + $0xf8] sm:$0xff] }
 0x4b9   : > { %3248 = vmatmul.mubr.f32.gmra.mrb[56].mxu1 %v2213_v40 }
 0x4ba   : > { %3252 = vmatprep.mubr.f32.mxu1 %v6698_v42  ;;  %v2219_v42 = vld [vmem:[#allocation2 + $0x108] sm:$0xff] }
 0x4bd   : > { %3253 = vmatmul.mubr.f32.gmra.mrb[58].mxu1 %v2214_v36 }
 0x4be   : > { %3257 = vmatprep.mubr.f32.mxu1 %v6703_v35  ;;  %v2220_v35 = vld [vmem:[#allocation2 + $0x110] sm:$0xff] }
 0x4c1   : > { %3258 = vmatmul.mubr.f32.gmra.mrb[60].mxu1 %v2215_v32 }
 0x4c2   : > { %3262 = vmatprep.mubr.f32.mxu1 %v6711_v34  ;;  %v2221_v34 = vld [vmem:[#allocation2 + $0x120] sm:$0xff] }
 0x4c5   : > { %3263 = vmatmul.mubr.f32.gmra.mrb[62].mxu1 %v2216_v47 }
 0x4c6   : > { %3267 = vmatprep.mubr.f32.mxu1 %v6715_v30  ;;  %v2222_v30 = vld [vmem:[#allocation2 + $0x128] sm:$0xff] }
 0x4c9   : > { %3268 = vmatmul.mubr.f32.gmra.mrb[64].mxu1 %v2217_v63 }
 0x4ca   : > { %3272 = vmatprep.mubr.f32.mxu1 %v6719_v3  ;;  %v2223_v3 = vld [vmem:[#allocation2 + $0x138] sm:$0xff] }
 0x4cd   : > { %3273 = vmatmul.mubr.f32.gmra.mrb[66].mxu1 %v2218_v19  ;;  %v7140_v19 = vld [vmem:[#allocation14_spill] sm:$0xff] }
 0x4ce   : > { %3277 = vmatprep.mubr.f32.mxu1 %v6723_v21  ;;  %v2224_v21 = vld [vmem:[#allocation2 + $0x140] sm:$0xff] }
 0x4d1   : > { %3278 = vmatmul.mubr.f32.gmra.mrb[68].mxu1 %v2219_v42 }
 0x4d2   : > { %3282 = vmatprep.mubr.f32.mxu1 %v6727_v59  ;;  %v2225_v59 = vld [vmem:[#allocation2 + $0x150] sm:$0xff] }
 0x4d5   : > { %3283 = vmatmul.mubr.f32.gmra.mrb[70].mxu1 %v2220_v35 }
 0x4d6   : > { %3287 = vmatprep.mubr.f32.mxu1 %v6731_v56  ;;  %v2226_v56 = vld [vmem:[#allocation2 + $0x158] sm:$0xff] }
 0x4d9   : > { %3288 = vmatmul.mubr.f32.gmra.mrb[72].mxu1 %v2221_v34 }
 0x4da   : > { %3292 = vmatprep.mubr.f32.mxu1 %v6735_v26  ;;  %v2227_v26 = vld [vmem:[#allocation2 + $0x168] sm:$0xff] }
 0x4dd   : > { %3293 = vmatmul.mubr.f32.gmra.mrb[74].mxu1 %v2222_v30 }
 0x4de   : > { %3297 = vmatprep.mubr.f32.mxu1 %v2255_v51 }
 0x4e1   : > { %3298 = vmatmul.mubr.f32.gmra.mrb[76].mxu1 %v2223_v3  ;;  %v7141_v3 = vld [vmem:[#allocation15_spill] sm:$0xff] }
 0x4e2   : > { %3302 = vmatprep.mubr.f32.mxu1 %v2256_v25 }
 0x4e5   : > { %3303 = vmatmul.mubr.f32.gmra.mrb[78].mxu1 %v2224_v21 }
 0x4e6   : > { %3307 = vmatprep.mubr.f32.mxu1 %v2257_v33 }
 0x4e9   : > { %3308 = vmatmul.mubr.f32.gmra.mrb[80].mxu1 %v2225_v59 }
 0x4ea   : > { %3312 = vmatprep.mubr.f32.mxu1 %v2258_v39 }
 0x4ed   : > { %3313 = vmatmul.mubr.f32.gmra.mrb[82].mxu1 %v2226_v56 }
 0x4ee   : > { %3317 = vmatprep.mubr.f32.mxu1 %v2259_v58  ;;  %v7142_v58 = vld [vmem:[#allocation16_spill] sm:$0xff] }
 0x4f1   : > { %3318 = vmatmul.mubr.f32.gmra.mrb[84].mxu1 %v2227_v26 }
 0x4f2   : > { %3322 = vmatprep.mubr.f32.mxu1 %v2260_v41 }
 0x4f5   : > { %3323 = vmatmul.mubr.f32.gmra.mrb[86].mxu1 %v2228_v28 }
 0x4f6   : > { %3327 = vmatprep.mubr.f32.mxu1 %v2261_v1 }
 0x4f9   : > { %3328 = vmatmul.mubr.f32.gmra.mrb[88].mxu1 %v6594_v13  ;;  %v2295_v13 = vld [vmem:[#allocation2 + $0x19a] sm:$0xff] }
 0x4fa   : > { %3332 = vmatprep.mubr.f32.mxu1 %v2262_v31 }
 0x4fd   : > { %3333 = vmatmul.mubr.f32.gmra.mrb[90].mxu1 %v6602_v29  ;;  %v2296_v29 = vld [vmem:[#allocation2 + $0x1a2] sm:$0xff] }
 0x4fe   : > { %3337 = vmatprep.mubr.f32.mxu1 %v2263_v61  ;;  %v7143_v61 = vld [vmem:[#allocation17_spill] sm:$0xff] }
 0x501   : > { %3338 = vmatmul.mubr.f32.gmra.mrb[92].mxu1 %v2231_v6 }
 0x502   : > { %3342 = vmatprep.mubr.f32.mxu1 %v2264_v49 }
 0x505   : > { %3343 = vmatmul.mubr.f32.gmra.mrb[94].mxu1 %v5071_v10 }
 0x506   : > { %4041 = vmatprep.mubr.f32.mxu1 %v6583_v54 }
 0x509   : > { %4042 = vmatmul.mubr.f32.vlgmr.msra.gmra.mrb[96].mxu1 %v6591_v23 }
 0x50a   : > { %4044 = vmatprep.mubr.f32.mxu1 %v6597_v2 }
 0x50d   : > { %4045 = vmatmul.mubr.f32.gmra.mrb[98].mxu1 %v6607_v37 }
 0x50e   : > { %4047 = vmatprep.mubr.f32.mxu1 %v6750_v11 }
 0x511   : > { %4048 = vmatmul.mubr.f32.gmra.mrb[100].mxu1 %v6755_v55 }
 0x512   : > { %4050 = vmatprep.mubr.f32.mxu1 %v2295_v13 }
 0x515   : > { %4051 = vmatmul.mubr.f32.gmra.mrb[102].mxu1 %v2296_v29 }
 0x55c   : > { %v3189_v54 = vpop.f32.mrb[32].mxu1 }
 0x55d   : > { %v4549_v23 = vadd.f32 %v6808_v14, %v3189_v54  ;;  %v3191_v2 = vpop.f32.mrb[33].mxu1  ;;  %v7144_v54 = vld [vmem:[#allocation18_spill] sm:$0xff] }
 0x55f   : > { %v3415_v37 = vadd.f32 %v4549_v23, %v6578_v12 }
 0x560   : > { %v3194_v45 = vpop.f32.mrb[34].mxu1 }
 0x561   : > { %v3573_v11 = vmax.f32 %v3415_v37, 0.0  ;;  %v4550_v24 = vadd.f32 %v6808_v14, %v3194_v45  ;;  %v3196_v55 = vpop.f32.mrb[35].mxu1 }
 0x563   : > { %v3605_v40 = vadd.f32 %v7139_v62, %v3573_v11  ;;  %v3420_v36 = vadd.f32 %v4550_v24, %v6575_v44  ;;  %v7145_v24 = vld [vmem:[#allocation19_spill] sm:$0xff] }
 0x564   : > { %v3199_v32 = vpop.f32.mrb[36].mxu1 }
 0x565   : > { %3637 = vst [vmem:[%s6817_s10] sm:$0xff] %v3605_v40  ;;  %v3574_v47 = vmax.f32 %v3420_v36, 0.0  ;;  %v4551_v12 = vadd.f32 %v6808_v14, %v3199_v32  ;;  %v3201_v63 = vpop.f32.mrb[37].mxu1 }
 0x567   : > { %v3606_v42 = vadd.f32 %v7140_v19, %v3574_v47  ;;  %v3425_v35 = vadd.f32 %v4551_v12, %v6588_v38  ;;  %v7146_v47 = vld [vmem:[#allocation20_spill] sm:$0xff] }
 0x568   : > { %v3204_v34 = vpop.f32.mrb[38].mxu1 }
 0x569   : > { %3638 = vst [vmem:[%s6817_s10 + $0x8] sm:$0xff] %v3606_v42  ;;  %v3575_v44 = vmax.f32 %v3425_v35, 0.0  ;;  %v4552_v30 = vadd.f32 %v6808_v14, %v3204_v34  ;;  %v3206_v51 = vpop.f32.mrb[39].mxu1  ;;  %v7147_v34 = vld [vmem:[#allocation21_spill] sm:$0xff] }
 0x56b   : > { %v3607_v25 = vadd.f32 %v7141_v3, %v3575_v44  ;;  %v3430_v21 = vadd.f32 %v4552_v30, %v6585_v57 }
 0x56c   : > { %v3209_v33 = vpop.f32.mrb[40].mxu1 }
 0x56d   : > { %3639 = vst [vmem:[%s6817_s10 + $0x10] sm:$0xff] %v3607_v25  ;;  %v3576_v59 = vmax.f32 %v3430_v21, 0.0  ;;  %v4553_v39 = vadd.f32 %v6808_v14, %v3209_v33  ;;  %v3211_v56 = vpop.f32.mrb[41].mxu1  ;;  %v7148_v21 = vld [vmem:[#allocation22_spill] sm:$0xff] }
 0x56f   : > { %v3608_v38 = vadd.f32 %v7142_v58, %v3576_v59  ;;  %v3435_v26 = vadd.f32 %v4553_v39, %v6604_v48 }
 0x570   : > { %v3214_v41 = vpop.f32.mrb[42].mxu1 }
 0x571   : > { %3640 = vst [vmem:[%s6817_s10 + $0x18] sm:$0xff] %v3608_v38  ;;  %v3577_v28 = vmax.f32 %v3435_v26, 0.0  ;;  %v4554_v1 = vadd.f32 %v6808_v14, %v3214_v41  ;;  %v3216_v31 = vpop.f32.mrb[43].mxu1  ;;  %v7149_v38 = vld [vmem:[#allocation23_spill] sm:$0xff] }
 0x573   : > { %v3609_v57 = vadd.f32 %v7143_v61, %v3577_v28  ;;  %v3440_v6 = vadd.f32 %v4554_v1, %v6599_v18  ;;  %v7150_v61 = vld [vmem:[#allocation24_spill] sm:$0xff] }
 0x574   : > { %v3219_v49 = vpop.f32.mrb[44].mxu1 }
 0x575   : > { %3641 = vst [vmem:[%s6817_s10 + $0x20] sm:$0xff] %v3609_v57  ;;  %v3578_v10 = vmax.f32 %v3440_v6, 0.0  ;;  %v4555_v13 = vadd.f32 %v6808_v14, %v3219_v49  ;;  %v3221_v29 = vpop.f32.mrb[45].mxu1 }
 0x576   : > { %v7151_v29 = vld [vmem:[#allocation25_spill] sm:$0xff] }
 0x577   : > { %v3610_v48 = vadd.f32 %v7144_v54, %v3578_v10  ;;  %v3445_v23 = vadd.f32 %v4555_v13, %v6613_v43 }
 0x578   : > { %v3224_v2 = vpop.f32.mrb[46].mxu1 }
 0x579   : > { %3642 = vst [vmem:[%s6817_s10 + $0x28] sm:$0xff] %v3610_v48  ;;  %v3579_v37 = vmax.f32 %v3445_v23, 0.0  ;;  %v4556_v45 = vadd.f32 %v6808_v14, %v3224_v2  ;;  %v3226_v11 = vpop.f32.mrb[47].mxu1 }
 0x57b   : > { %v3611_v18 = vadd.f32 %v7145_v24, %v3579_v37  ;;  %v3450_v55 = vadd.f32 %v4556_v45, %v6611_v4  ;;  %v7152_v45 = vld [vmem:[#allocation26_spill] sm:$0xff] }
 0x57c   : > { %v3229_v62 = vpop.f32.mrb[48].mxu1 }
 0x57d   : > { %3643 = vst [vmem:[%s6817_s10 + $0x30] sm:$0xff] %v3611_v18  ;;  %v3580_v40 = vmax.f32 %v3450_v55, 0.0  ;;  %v4557_v36 = vadd.f32 %v6808_v14, %v3229_v62  ;;  %v3231_v32 = vpop.f32.mrb[49].mxu1 }
 0x57f   : > { %v3612_v43 = vadd.f32 %v7146_v47, %v3580_v40  ;;  %v3455_v12 = vadd.f32 %v4557_v36, %v6623_v22  ;;  %v7153_v40 = vld [vmem:[#allocation27_spill] sm:$0xff] }
 0x580   : > { %v3234_v63 = vpop.f32.mrb[50].mxu1 }
 0x581   : > { %3644 = vst [vmem:[%s6817_s10 + $0x38] sm:$0xff] %v3612_v43  ;;  %v3581_v19 = vmax.f32 %v3455_v12, 0.0  ;;  %v4558_v42 = vadd.f32 %v6808_v14, %v3234_v63  ;;  %v3236_v35 = vpop.f32.mrb[51].mxu1  ;;  %v7154_v63 = vld [vmem:[#allocation28_spill] sm:$0xff] }
 0x583   : > { %v3613_v4 = vadd.f32 %v7147_v34, %v3581_v19  ;;  %v3460_v44 = vadd.f32 %v4558_v42, %v6620_v8 }
 0x584   : > { %v3239_v30 = vpop.f32.mrb[52].mxu1 }
 0x585   : > { %3645 = vst [vmem:[%s6817_s10 + $0x40] sm:$0xff] %v3613_v4  ;;  %v3582_v51 = vmax.f32 %v3460_v44, 0.0  ;;  %v4559_v3 = vadd.f32 %v6808_v14, %v3239_v30  ;;  %v3241_v25 = vpop.f32.mrb[53].mxu1  ;;  %v7155_v44 = vld [vmem:[#allocation29_spill] sm:$0xff] }
 0x587   : > { %v3614_v22 = vadd.f32 %v7148_v21, %v3582_v51  ;;  %v3465_v33 = vadd.f32 %v4559_v3, %v6635_v16 }
 0x588   : > { %v3244_v59 = vpop.f32.mrb[54].mxu1 }
 0x589   : > { %3646 = vst [vmem:[%s6817_s10 + $0x48] sm:$0xff] %v3614_v22  ;;  %v3583_v39 = vmax.f32 %v3465_v33, 0.0  ;;  %v4560_v56 = vadd.f32 %v6808_v14, %v3244_v59  ;;  %v3246_v58 = vpop.f32.mrb[55].mxu1  ;;  %v7156_v22 = vld [vmem:[#allocation30_spill] sm:$0xff] }
 0x58b   : > { %v3615_v8 = vadd.f32 %v7149_v38, %v3583_v39  ;;  %v3470_v26 = vadd.f32 %v4560_v56, %v6632_v17  ;;  %v7157_v38 = vld [vmem:[#allocation31_spill] sm:$0xff] }
 0x58c   : > { %v3249_v41 = vpop.f32.mrb[56].mxu1 }
 0x58d   : > { %3647 = vst [vmem:[%s6817_s10 + $0x50] sm:$0xff] %v3615_v8  ;;  %v3584_v28 = vmax.f32 %v3470_v26, 0.0  ;;  %v4561_v1 = vadd.f32 %v6808_v14, %v3249_v41  ;;  %v3251_v31 = vpop.f32.mrb[57].mxu1 }
 0x58e   : > { %v7158_v31 = vld [vmem:[#allocation32_spill] sm:$0xff] }
 0x58f   : > { %v3616_v16 = vadd.f32 %v7150_v61, %v3584_v28  ;;  %v3475_v57 = vadd.f32 %v4561_v1, %v6647_v52 }
 0x590   : > { %v3254_v6 = vpop.f32.mrb[58].mxu1 }
 0x591   : > { %3648 = vst [vmem:[%s6817_s10 + $0x58] sm:$0xff] %v3616_v16  ;;  %v3585_v49 = vmax.f32 %v3475_v57, 0.0  ;;  %v4562_v10 = vadd.f32 %v6808_v14, %v3254_v6  ;;  %v3256_v13 = vpop.f32.mrb[59].mxu1 }
 0x593   : > { %v3617_v17 = vadd.f32 %v7151_v29, %v3585_v49  ;;  %v3480_v54 = vadd.f32 %v4562_v10, %v6644_v60  ;;  %v7159_v10 = vld [vmem:[#allocation33_spill] sm:$0xff] }
 0x594   : > { %v3259_v48 = vpop.f32.mrb[60].mxu1 }
 0x595   : > { %3649 = vst [vmem:[%s6817_s10 + $0x60] sm:$0xff] %v3617_v17  ;;  %v3586_v23 = vmax.f32 %v3480_v54, 0.0  ;;  %v4563_v2 = vadd.f32 %v6808_v14, %v3259_v48  ;;  %v3261_v37 = vpop.f32.mrb[61].mxu1 }
 0x597   : > { %v3618_v52 = vadd.f32 %v7152_v45, %v3586_v23  ;;  %v3485_v11 = vadd.f32 %v4563_v2, %v6659_v9  ;;  %v7160_v23 = vld [vmem:[#allocation34_spill] sm:$0xff] }
 0x598   : > { %v3264_v24 = vpop.f32.mrb[62].mxu1 }
 0x599   : > { %3650 = vst [vmem:[%s6817_s10 + $0x68] sm:$0xff] %v3618_v52  ;;  %v3587_v18 = vmax.f32 %v3485_v11, 0.0  ;;  %v4564_v55 = vadd.f32 %v6808_v14, %v3264_v24  ;;  %v3266_v62 = vpop.f32.mrb[63].mxu1  ;;  %v7161_v24 = vld [vmem:[#allocation35_spill] sm:$0xff] }
 0x59b   : > { %v3619_v60 = vadd.f32 %v7153_v40, %v3587_v18  ;;  %v3490_v36 = vadd.f32 %v4564_v55, %v6656_v53 }
 0x59c   : > { %v3269_v32 = vpop.f32.mrb[64].mxu1 }
 0x59d   : > { %3651 = vst [vmem:[%s6817_s10 + $0x70] sm:$0xff] %v3619_v60  ;;  %v3588_v47 = vmax.f32 %v3490_v36, 0.0  ;;  %v4565_v43 = vadd.f32 %v6808_v14, %v3269_v32  ;;  %v3271_v12 = vpop.f32.mrb[65].mxu1  ;;  %v7162_v60 = vld [vmem:[#allocation36_spill] sm:$0xff] }
 0x59f   : > { %v3620_v9 = vadd.f32 %v7154_v63, %v3588_v47  ;;  %v3495_v19 = vadd.f32 %v4565_v43, %v6671_v20 }
 0x5a0   : > { %v3274_v42 = vpop.f32.mrb[66].mxu1 }
 0x5a1   : > { %3652 = vst [vmem:[%s6817_s10 + $0x78] sm:$0xff] %v3620_v9  ;;  %v3589_v35 = vmax.f32 %v3495_v19, 0.0  ;;  %v4566_v34 = vadd.f32 %v6808_v14, %v3274_v42  ;;  %v3276_v4 = vpop.f32.mrb[67].mxu1 }
 0x5a3   : > { %v3621_v53 = vadd.f32 %v7155_v44, %v3589_v35  ;;  %v3500_v30 = vadd.f32 %v4566_v34, %v6668_v15 }
 0x5a4   : > { %v3279_v51 = vpop.f32.mrb[68].mxu1 }
 0x5a5   : > { %3653 = vst [vmem:[%s6817_s10 + $0x80] sm:$0xff] %v3621_v53  ;;  %v3590_v3 = vmax.f32 %v3500_v30, 0.0  ;;  %v4567_v25 = vadd.f32 %v6808_v14, %v3279_v51  ;;  %v3281_v21 = vpop.f32.mrb[69].mxu1 }
 0x5a7   : > { %v3622_v20 = vadd.f32 %v7156_v22, %v3590_v3  ;;  %v3505_v33 = vadd.f32 %v4567_v25, %v6683_v5 }
 0x5a8   : > { %v3284_v59 = vpop.f32.mrb[70].mxu1 }
 0x5a9   : > { %3654 = vst [vmem:[%s6817_s10 + $0x88] sm:$0xff] %v3622_v20  ;;  %v3591_v39 = vmax.f32 %v3505_v33, 0.0  ;;  %v4568_v56 = vadd.f32 %v6808_v14, %v3284_v59  ;;  %v3286_v58 = vpop.f32.mrb[71].mxu1 }
 0x5ab   : > { %v3623_v15 = vadd.f32 %v7157_v38, %v3591_v39  ;;  %v3510_v8 = vadd.f32 %v4568_v56, %v6680_v46  ;;  %v7163_v56 = vld [vmem:[#allocation38_spill] sm:$0xff] }
 0x5ac   : > { %v3289_v26 = vpop.f32.mrb[72].mxu1 }
 0x5ad   : > { %3655 = vst [vmem:[%s6817_s10 + $0x90] sm:$0xff] %v3623_v15  ;;  %v3592_v41 = vmax.f32 %v3510_v8, 0.0  ;;  %v4569_v28 = vadd.f32 %v6808_v14, %v3289_v26  ;;  %v3291_v1 = vpop.f32.mrb[73].mxu1  ;;  %v7164_v8 = vld [vmem:[#allocation37_spill] sm:$0xff] }
 0x5af   : > { %v3624_v5 = vadd.f32 %v7158_v31, %v3592_v41  ;;  %v3515_v61 = vadd.f32 %v4569_v28, %v6695_v7 }
 0x5b0   : > { %v3294_v16 = vpop.f32.mrb[74].mxu1 }
 0x5b1   : > { %3656 = vst [vmem:[%s6817_s10 + $0x98] sm:$0xff] %v3624_v5  ;;  %v3593_v57 = vmax.f32 %v3515_v61, 0.0  ;;  %v4570_v6 = vadd.f32 %v6808_v14, %v3294_v16  ;;  %v3296_v49 = vpop.f32.mrb[75].mxu1  ;;  %v7165_v16 = vld [vmem:[#allocation40_spill] sm:$0xff] }
 0x5b3   : > { %v3625_v46 = vadd.f32 %v7159_v10, %v3593_v57  ;;  %v3520_v13 = vadd.f32 %v4570_v6, %v6692_v50  ;;  %v7166_v10 = vld [vmem:[#allocation39_spill] sm:$0xff] }
 0x5b4   : > { %v3299_v29 = vpop.f32.mrb[76].mxu1 }
 0x5b5   : > { %3657 = vst [vmem:[%s6817_s10 + $0xa0] sm:$0xff] %v3625_v46  ;;  %v3594_v17 = vmax.f32 %v3520_v13, 0.0  ;;  %v4571_v54 = vadd.f32 %v6808_v14, %v3299_v29  ;;  %v3301_v48 = vpop.f32.mrb[77].mxu1 }
 0x5b7   : > { %v3626_v7 = vadd.f32 %v7160_v23, %v3594_v17  ;;  %v3525_v2 = vadd.f32 %v4571_v54, %v6708_v0 }
 0x5b8   : > { %v3304_v37 = vpop.f32.mrb[78].mxu1 }
 0x5b9   : > { %3658 = vst [vmem:[%s6817_s10 + $0xa8] sm:$0xff] %v3626_v7  ;;  %v3595_v45 = vmax.f32 %v3525_v2, 0.0  ;;  %v4572_v52 = vadd.f32 %v6808_v14, %v3304_v37  ;;  %v3306_v11 = vpop.f32.mrb[79].mxu1  ;;  %v7167_v7 = vld [vmem:[#allocation42_spill] sm:$0xff] }
 0x5bb   : > { %v3627_v50 = vadd.f32 %v7161_v24, %v3595_v45  ;;  %v3530_v18 = vadd.f32 %v4572_v52, %v6705_v27  ;;  %v7168_v52 = vld [vmem:[#allocation41_spill] sm:$0xff] }
 0x5bc   : > { %v3309_v55 = vpop.f32.mrb[80].mxu1 }
 0x5bd   : > { %3659 = vst [vmem:[%s6817_s10 + $0xb0] sm:$0xff] %v3627_v50  ;;  %v3596_v62 = vmax.f32 %v3530_v18, 0.0  ;;  %v3311_v40 = vpop.f32.mrb[81].mxu1  ;;  %v4573_v30 = vadd.f32 %v6808_v14, %v3309_v55  ;;  %v7169_v18 = vld [vmem:[#allocation52_spill] sm:$0xff] }
 0x5bf   : > { %v3628_v36 = vadd.f32 %v7162_v60, %v3596_v62  ;;  %v7170_v62 = vld [vmem:[#allocation51_spill] sm:$0xff] }
 0x5c0   : > { %v3314_v32 = vpop.f32.mrb[82].mxu1 }
 0x5c1   : > { %3660 = vst [vmem:[%s6817_s10 + $0xb8] sm:$0xff] %v3628_v36  ;;  %v3316_v47 = vpop.f32.mrb[83].mxu1  ;;  %v4574_v53 = vadd.f32 %v6808_v14, %v3314_v32 }
 0x5c4   : > { %v3319_v0 = vpop.f32.mrb[84].mxu1 }
 0x5c5   : > { %v3321_v43 = vpop.f32.mrb[85].mxu1  ;;  %v4575_v33 = vadd.f32 %v6808_v14, %v3319_v0 }
 0x5c8   : > { %v3324_v12 = vpop.f32.mrb[86].mxu1 }
 0x5c9   : > { %v3326_v63 = vpop.f32.mrb[87].mxu1  ;;  %v4576_v22 = vadd.f32 %v6808_v14, %v3324_v12 }
 0x5cc   : > { %v3329_v9 = vpop.f32.mrb[88].mxu1 }
 0x5cd   : > { %v3331_v19 = vpop.f32.mrb[89].mxu1  ;;  %v4577_v31 = vadd.f32 %v6808_v14, %v3329_v9 }
 0x5d0   : > { %v3334_v42 = vpop.f32.mrb[90].mxu1 }
 0x5d1   : > { %v3336_v35 = vpop.f32.mrb[91].mxu1  ;;  %v4578_v28 = vadd.f32 %v6808_v14, %v3334_v42 }
 0x5d4   : > { %v3339_v34 = vpop.f32.mrb[92].mxu1 }
 0x5d5   : > { %v3341_v4 = vpop.f32.mrb[93].mxu1  ;;  %v4579_v54 = vadd.f32 %v6808_v14, %v3339_v34 }
 0x5d8   : > { %v3344_v27 = vpop.f32.mrb[94].mxu1 }
 0x5d9   : > { %v3346_v44 = vpop.f32.mrb[95].mxu1  ;;  %v4580_v29 = vadd.f32 %v6808_v14, %v3344_v27 }
 0x5dc   : > { %v4043_v51 = vpop.f32.mrb[96].mxu1 }
 0x5dd   : > { %v3540_v3 = vadd.f32 %v4574_v53, %v4043_v51  ;;  %v3534_v25 = vpop.f32.mrb[97].mxu1 }
 0x5de   : > { %v3535_v21 = vadd.f32 %v4573_v30, %v3534_v25 }
 0x5df   : > { %v3598_v20 = vmax.f32 %v3540_v3, 0.0 }
 0x5e0   : > { %v3597_v59 = vmax.f32 %v3535_v21, 0.0  ;;  %v4046_v39 = vpop.f32.mrb[98].mxu1 }
 0x5e1   : > { %v3630_v58 = vadd.f32 %v7163_v56, %v3598_v20  ;;  %v3550_v38 = vadd.f32 %v4576_v22, %v4046_v39  ;;  %v3544_v15 = vpop.f32.mrb[99].mxu1 }
 0x5e2   : > { %v3629_v26 = vadd.f32 %v7164_v8, %v3597_v59  ;;  %v3545_v41 = vadd.f32 %v4575_v33, %v3544_v15 }
 0x5e3   : > { %3662 = vst [vmem:[%s6817_s10 + $0xc8] sm:$0xff] %v3630_v58  ;;  %v3600_v1 = vmax.f32 %v3550_v38, 0.0 }
 0x5e4   : > { %3661 = vst [vmem:[%s6817_s10 + $0xc0] sm:$0xff] %v3629_v26  ;;  %v3599_v5 = vmax.f32 %v3545_v41, 0.0  ;;  %v4049_v61 = vpop.f32.mrb[100].mxu1 }
 0x5e5   : > { %v3632_v57 = vadd.f32 %v7165_v16, %v3600_v1  ;;  %v3560_v6 = vadd.f32 %v4578_v28, %v4049_v61  ;;  %v3554_v49 = vpop.f32.mrb[101].mxu1 }
 0x5e6   : > { %v3631_v46 = vadd.f32 %v7166_v10, %v3599_v5  ;;  %v3555_v13 = vadd.f32 %v4577_v31, %v3554_v49 }
 0x5e7   : > { %3664 = vst [vmem:[%s6817_s10 + $0xd8] sm:$0xff] %v3632_v57  ;;  %v3602_v17 = vmax.f32 %v3560_v6, 0.0 }
 0x5e8   : > { %3663 = vst [vmem:[%s6817_s10 + $0xd0] sm:$0xff] %v3631_v46  ;;  %v3601_v48 = vmax.f32 %v3555_v13, 0.0  ;;  %v4052_v23 = vpop.f32.mrb[102].mxu1 }
 0x5e9   : > { %v3634_v2 = vadd.f32 %v7167_v7, %v3602_v17  ;;  %v3570_v37 = vadd.f32 %v4580_v29, %v4052_v23  ;;  %v3564_v45 = vpop.f32.mrb[103].mxu1 }
 0x5ea   : > { %v3633_v11 = vadd.f32 %v7168_v52, %v3601_v48  ;;  %v3565_v24 = vadd.f32 %v4579_v54, %v3564_v45 }
 0x5eb   : > { %3666 = vst [vmem:[%s6817_s10 + $0xe8] sm:$0xff] %v3634_v2  ;;  %v3604_v50 = vmax.f32 %v3570_v37, 0.0 }
 0x5ec   : > { %3665 = vst [vmem:[%s6817_s10 + $0xe0] sm:$0xff] %v3633_v11  ;;  %v3603_v14 = vmax.f32 %v3565_v24, 0.0 }
 0x5ed   : > { %v3636_v55 = vadd.f32 %v7169_v18, %v3604_v50 }
 0x5ee   : > { %v3635_v40 = vadd.f32 %v7170_v62, %v3603_v14 }
 0x5ef   : > { %3668 = vst [vmem:[%s6817_s10 + $0xf8] sm:$0xff] %v3636_v55 }
 0x5f0   : > { %3667 = vst [vmem:[%s6817_s10 + $0xf0] sm:$0xff] %v3635_v40 }
 0x5f1   : > { %5171 = shalt.err (!%p5168_p1)
}
 0x5f2   : > { %s5172_s12 = scalar_lea.hbm %s6936_s11, 4096  ;;  %s5176_s15 = scalar_lea.hbm %s6990_s5, 8192 }
 0x5f3   : > { %p5173_p13 = scmp.ne.s32.totalorder %s6936_s11, %s5172_s12  ;;  %p5177_p4 = scmp.lt.u32.totalorder %s6936_s11, %s6990_s5 }
 0x5f4   : > { %p5178_p5 = scmp.lt.u32.totalorder %s5176_s15, %s5172_s12  ;;  %p5180_p11 = scmp.lt.u32.totalorder %s5172_s12, %s6936_s11 }
 0x5f5   : > { %p5174_p6 = pnand %p5173_p13, %p7171_p0 }
 0x5f6   : > { %p5179_p8 = por %p5178_p5, %p5177_p4 }
 0x5f7   : > { %p5175_p10 = pneg %p5174_p6 }
 0x5f8   : > { %p5181_p2 = por %p5180_p11, %p5179_p8 }
 0x5fa   : > { %p5182_p3 = pnand %p5181_p2, %p5175_p10 }
 0x5fc   : > { %5185 = shalt.err (!%p5182_p3)
}
 0x5fd   : > { %s5238_s28 = smov 128   ;;  %s5239_s9 = smov 8  }
 0x5fe   : > { %4975 = dma.vmem_to_hbm [thread:$0]  (%p7171_p0), %s6938_s13, 4096, %s6936_s11, %s3670_s22, %s5238_s28, %s5238_s28, %s5239_s9  }
 0x5ff PF: > { %s3698_s30 = sand.u32 1, %s5216_s18   ;;  %p7172_p7 = scmp.ne.s32.totalorder %s7059_s25, 0 }
 0x600   : > { %p7173_p9 = scmp.ge.s32.totalorder %s5228_s21, 2  ;;  %s3699_s17 = scalar_lea.sflag [#allocation5], %s3698_s30 }
 0x602   : > { %p4989_p12 = pnand %p7173_p9, %p7172_p7 }
 0x604   : > { %5211 = dma.done.wait (!%p4989_p12), %s3699_s17, 4096  }
 0x605   : > { %5213 = vsyncadd (!%p4989_p12), %s3699_s17, 4294963200  ;;  %p19_p1 = scmp.ge.s32.totalorder %s5386_s29, 4   ;;  %s7174_s18 = smov %s5220_s19 }
 0x606   : > { %s7175_s19 = smov %s5224_s20  ;;  %s7176_s20 = smov %s5402_s27 }
 0x607   : > { %s7177_s21 = smov %s5386_s29  ;;  %21 = sbr.rel (!%p19_p1) target bundleno = 6 (0x6), region = 96 }
 0x60e   :  { %3704 = vsyncpa [#allocation4], 1 }
 0x60f   :  { %3706 = vsyncpa [#allocation4 + $0x1], 1 }
 0x610   :  { %3707 = vsyncpa [#allocation7], 1 }
 0x611   :  { %3708 = vsyncpa [#allocation5], 1 }
 0x612   :  { %3710 = vsyncpa [#allocation5 + $0x1], 1 }

</bundles_post_ra>
